<compile_context>
chip_gen: v5e
topology: v5e:2x2
jax: 0.10.0
libtpu: 0.0.40
codegen_flags: <defaults>
</compile_context>

<pallas_src>
import functools

import jax
import jax.numpy as jnp
import numpy as np
from jax.experimental import pallas as pl
from jax.experimental.pallas import tpu as pltpu


# ---------------------------------------------------------------------------
# In-kernel helpers (all compute happens on VMEM tiles inside the kernel)
# ---------------------------------------------------------------------------
def _layer_norm(x, g, b, eps=1e-6):
    # Matches the module's custom LayerNorm exactly:
    #   a_2 * (x - mean) / (std + eps) + b_2   with UNBIASED std (ddof=1),
    #   eps added to std OUTSIDE the sqrt (this is NOT torch.nn.LayerNorm).
    d = x.shape[-1]
    mean = jnp.mean(x, axis=-1, keepdims=True)
    var = jnp.sum((x - mean) ** 2, axis=-1, keepdims=True) / (d - 1)
    std = jnp.sqrt(var)
    return g * (x - mean) / (std + eps) + b


def _mha_core(q, k, v, bias, wo, bo, *, n_heads, cdt):
    """Attention with heads batched into a single dot_general pair.

    q: (Tq, D) f32 (already projected), k/v: (Tk, D) f32 (already projected),
    bias: (Tq, Tk) or (1, Tk) additive f32 mask, wo: (D, D) cdt, bo: (1, D) f32.
    Returns (Tq, D) f32.
    """
    Tq, D = q.shape
    Tk = k.shape[0]
    dk = D // n_heads
    scale = jnp.float32(1.0 / np.sqrt(dk))

    qh = q.reshape(Tq, n_heads, dk).transpose(1, 0, 2)     # (H, Tq, dk)
    kh = k.reshape(Tk, n_heads, dk).transpose(1, 0, 2)     # (H, Tk, dk)
    vh = v.reshape(Tk, n_heads, dk).transpose(1, 0, 2)     # (H, Tk, dk)

    # One batched MXU call for all heads: (H, Tq, dk) x (H, Tk, dk) -> (H, Tq, Tk)
    s = jax.lax.dot_general(
        qh.astype(cdt), kh.astype(cdt),
        (((2,), (2,)), ((0,), (0,))),
        preferred_element_type=jnp.float32)
    s = s * scale + bias[None, :, :]

    # Softmax in f32; divide goes to the EUP via approximate reciprocal.
    m = jnp.max(s, axis=-1, keepdims=True)
    e = jnp.exp(s - m)
    l = jnp.sum(e, axis=-1, keepdims=True)
    p = e * pl.reciprocal(l, approx=True)

    o = jax.lax.dot_general(
        p.astype(cdt), vh.astype(cdt),
        (((2,), (1,)), ((0,), (0,))),
        preferred_element_type=jnp.float32)                # (H, Tq, dk)
    o = o.transpose(1, 0, 2).reshape(Tq, D)                # (Tq, D)
    return jnp.dot(o.astype(cdt), wo, preferred_element_type=jnp.float32) + bo


# ---------------------------------------------------------------------------
# Kernel: one (batch, T-tile) block of the decoder layer per grid step.
# ---------------------------------------------------------------------------
def decoder_layer_kernel(
        x_tile_ref, x_full_ref, mem_ref, tgt_mask_ref, src_mask_ref,
        sa_wq_ref, sa_bq_ref, sa_wkv_ref, sa_bkv_ref, sa_wo_ref, sa_bo_ref,
        ca_wq_ref, ca_bq_ref, ca_wkv_ref, ca_bkv_ref, ca_wo_ref, ca_bo_ref,
        w1_ref, b1_ref, w2_ref, b2_ref, ln_g_ref, ln_b_ref,
        o_ref, *, n_heads, cdt):
    D = x_tile_ref.shape[-1]

    x = x_tile_ref[0].astype(jnp.float32)     # (TT, D) residual / query rows
    xf = x_full_ref[0].astype(jnp.float32)    # (T, D)  full seq for self-attn K/V
    mem = mem_ref[0].astype(jnp.float32)      # (S, D)  raw encoder memory

    ln_g = ln_g_ref[...]                      # (3, D)
    ln_b = ln_b_ref[...]                      # (3, D)

    # Additive mask biases computed ONCE (not per head).
    tgt_bias = jnp.where(tgt_mask_ref[0] == 0.0,
                         jnp.float32(-1e9), jnp.float32(0.0))   # (TT, T)
    src_bias = jnp.where(src_mask_ref[0] == 0.0,
                         jnp.float32(-1e9), jnp.float32(0.0))   # (1, S)

    # --- sublayer 0: x = x + self_attn(norm(x), norm(x), norm(x), tgt_mask) ---
    xn_q = _layer_norm(x, ln_g[0:1, :], ln_b[0:1, :])
    xn_kv = _layer_norm(xf, ln_g[0:1, :], ln_b[0:1, :])
    q = jnp.dot(xn_q.astype(cdt), sa_wq_ref[...],
                preferred_element_type=jnp.float32) + sa_bq_ref[...]
    kv = jnp.dot(xn_kv.astype(cdt), sa_wkv_ref[...],
                 preferred_element_type=jnp.float32) + sa_bkv_ref[...]
    x = x + _mha_core(q, kv[:, :D], kv[:, D:], tgt_bias,
                      sa_wo_ref[...], sa_bo_ref[...], n_heads=n_heads, cdt=cdt)

    # --- sublayer 1: x = x + src_attn(norm(x), memory, memory, src_mask) ---
    xn_q = _layer_norm(x, ln_g[1:2, :], ln_b[1:2, :])
    q = jnp.dot(xn_q.astype(cdt), ca_wq_ref[...],
                preferred_element_type=jnp.float32) + ca_bq_ref[...]
    kv = jnp.dot(mem.astype(cdt), ca_wkv_ref[...],
                 preferred_element_type=jnp.float32) + ca_bkv_ref[...]
    x = x + _mha_core(q, kv[:, :D], kv[:, D:], src_bias,
                      ca_wo_ref[...], ca_bo_ref[...], n_heads=n_heads, cdt=cdt)

    # --- sublayer 2: x = x + feed_forward(norm(x)) ---
    xn = _layer_norm(x, ln_g[2:3, :], ln_b[2:3, :])
    h = jnp.dot(xn.astype(cdt), w1_ref[...],
                preferred_element_type=jnp.float32) + b1_ref[...]
    h = jnp.maximum(h, 0.0)
    ff = jnp.dot(h.astype(cdt), w2_ref[...],          # bf16 hidden -> 2nd matmul
                 preferred_element_type=jnp.float32) + b2_ref[...]
    x = x + ff

    o_ref[0] = x.astype(o_ref.dtype)


# ---------------------------------------------------------------------------
# Wrapper: parameter fusion / casting + pallas_call with (B, T-tile) grid.
# ---------------------------------------------------------------------------
def decoder_layer(x, memory, src_mask, tgt_mask, params, n_heads,
                  compute_dtype=jnp.bfloat16, tile_t=128):
    B, T, D = x.shape
    S = memory.shape[1]
    F = params["w1"].shape[-1]
    assert D % n_heads == 0
    TT = min(tile_t, T)
    nt = pl.cdiv(T, TT)

    f32 = jnp.float32
    cdt = compute_dtype

    sa_w, sa_b = params["sa_w"], params["sa_b"]
    ca_w, ca_b = params["ca_w"], params["ca_b"]

    # Layout plumbing, once per call: fuse K/V projections along the lane dim
    # and cast weight matrices to the MXU compute dtype (accumulation in f32
    # stays inside the kernel; halves weight DMA bytes & VMEM residency).
    sa_wq = sa_w[0].astype(cdt)
    sa_wkv = jnp.concatenate([sa_w[1], sa_w[2]], axis=-1).astype(cdt)      # (D, 2D)
    sa_wo = sa_w[3].astype(cdt)
    sa_bq = sa_b[0:1].astype(f32)
    sa_bkv = jnp.concatenate([sa_b[1:2], sa_b[2:3]], axis=-1).astype(f32)  # (1, 2D)
    sa_bo = sa_b[3:4].astype(f32)

    ca_wq = ca_w[0].astype(cdt)
    ca_wkv = jnp.concatenate([ca_w[1], ca_w[2]], axis=-1).astype(cdt)
    ca_wo = ca_w[3].astype(cdt)
    ca_bq = ca_b[0:1].astype(f32)
    ca_bkv = jnp.concatenate([ca_b[1:2], ca_b[2:3]], axis=-1).astype(f32)
    ca_bo = ca_b[3:4].astype(f32)

    w1 = params["w1"].astype(cdt)
    b1 = params["b1"].astype(f32)
    w2 = params["w2"].astype(cdt)
    b2 = params["b2"].astype(f32)
    ln_g = params["ln_g"].astype(f32)
    ln_b = params["ln_b"].astype(f32)

    tile_map = lambda b, t: (b, t, 0)      # per (batch, T-tile) block
    batch_map = lambda b, t: (b, 0, 0)     # per batch, full length
    fix2 = lambda b, t: (0, 0)             # weights: same block every step

    def wspec(a):
        return pl.BlockSpec(a.shape, fix2)

    in_specs = [
        pl.BlockSpec((1, TT, D), tile_map),    # x   (query / residual tile)
        pl.BlockSpec((1, T, D), batch_map),    # x   (full, self-attn K/V)
        pl.BlockSpec((1, S, D), batch_map),    # memory
        pl.BlockSpec((1, TT, T), tile_map),    # tgt_mask rows for this tile
        pl.BlockSpec((1, 1, S), batch_map),    # src_mask
        wspec(sa_wq), wspec(sa_bq), wspec(sa_wkv), wspec(sa_bkv),
        wspec(sa_wo), wspec(sa_bo),
        wspec(ca_wq), wspec(ca_bq), wspec(ca_wkv), wspec(ca_bkv),
        wspec(ca_wo), wspec(ca_bo),
        wspec(w1), wspec(b1), wspec(w2), wspec(b2),
        wspec(ln_g), wspec(ln_b),
    ]

    # Explicit scoped-VMEM budget: double-buffered blocks + live intermediates
    # (scores, fused KV, FFN hidden) with headroom, capped well below physical.
    def nb(*arrs):
        return sum(int(np.prod(a.shape)) * a.dtype.itemsize for a in arrs)
    act_blk = 4 * (TT * D + T * D + S * D + TT * T + S + TT * D)
    w_blk = nb(sa_wq, sa_bq, sa_wkv, sa_bkv, sa_wo, sa_bo,
               ca_wq, ca_bq, ca_wkv, ca_bkv, ca_wo, ca_bo,
               w1, b1, w2, b2, ln_g, ln_b)
    inter = 4 * (2 * n_heads * TT * max(T, S) + 2 * max(T, S) * D + TT * (F + 4 * D))
    vmem_limit = int(min(96 << 20,
                         max(16 << 20, 2 * (act_blk + w_blk) + 2 * inter + (2 << 20))))

    kernel = functools.partial(decoder_layer_kernel, n_heads=n_heads, cdt=cdt)
    return pl.pallas_call(
        kernel,
        out_shape=jax.ShapeDtypeStruct((B, T, D), x.dtype),
        grid_spec=pltpu.PrefetchScalarGridSpec(
            num_scalar_prefetch=0,
            grid=(B, nt),
            in_specs=in_specs,
            out_specs=pl.BlockSpec((1, TT, D), tile_map),
        ),
        compiler_params=pltpu.CompilerParams(
            dimension_semantics=("parallel", "parallel"),
            vmem_limit_bytes=vmem_limit),
    )(x, x, memory, tgt_mask, src_mask,
      sa_wq, sa_bq, sa_wkv, sa_bkv, sa_wo, sa_bo,
      ca_wq, ca_bq, ca_wkv, ca_bkv, ca_wo, ca_bo,
      w1, b1, w2, b2, ln_g, ln_b)


# ---------------------------------------------------------------------------
# Pure-JAX f32 reference (same math as the PyTorch module) for a sanity check
# ---------------------------------------------------------------------------
def ref_decoder_layer(x, memory, src_mask, tgt_mask, p, n_heads):
    def ln(x, g, b, eps=1e-6):
        d = x.shape[-1]
        mean = x.mean(-1, keepdims=True)
        var = ((x - mean) ** 2).sum(-1, keepdims=True) / (d - 1)
        return g * (x - mean) / (jnp.sqrt(var) + eps) + b

    def mha(q, k, v, mask, w, b):
        B, T, D = q.shape
        S = k.shape[1]
        dk = D // n_heads
        qp = (q @ w[0] + b[0]).reshape(B, T, n_heads, dk).transpose(0, 2, 1, 3)
        kp = (k @ w[1] + b[1]).reshape(B, S, n_heads, dk).transpose(0, 2, 1, 3)
        vp = (v @ w[2] + b[2]).reshape(B, S, n_heads, dk).transpose(0, 2, 1, 3)
        s = jnp.einsum('bhtd,bhsd->bhts', qp, kp) / jnp.sqrt(jnp.float32(dk))
        s = jnp.where(mask[:, None, :, :] == 0, -1e9, s)
        a = jax.nn.softmax(s, axis=-1)
        o = jnp.einsum('bhts,bhsd->bhtd', a, vp).transpose(0, 2, 1, 3).reshape(B, T, D)
        return o @ w[3] + b[3]

    xn = ln(x, p["ln_g"][0], p["ln_b"][0])
    x = x + mha(xn, xn, xn, tgt_mask, p["sa_w"], p["sa_b"])
    xn = ln(x, p["ln_g"][1], p["ln_b"][1])
    x = x + mha(xn, memory, memory, src_mask, p["ca_w"], p["ca_b"])
    xn = ln(x, p["ln_g"][2], p["ln_b"][2])
    ff = jnp.maximum(xn @ p["w1"] + p["b1"], 0.0) @ p["w2"] + p["b2"]
    return x + ff


# ---------------------------------------------------------------------------
if __name__ == "__main__":
    B, T, S, D, H, F = 2, 8, 16, 32, 4, 64

    key = jax.random.PRNGKey(0)
    ks = jax.random.split(key, 12)

    params = {
        "sa_w": 0.1 * jax.random.normal(ks[0], (4, D, D), jnp.float32),
        "sa_b": 0.1 * jax.random.normal(ks[1], (4, D), jnp.float32),
        "ca_w": 0.1 * jax.random.normal(ks[2], (4, D, D), jnp.float32),
        "ca_b": 0.1 * jax.random.normal(ks[3], (4, D), jnp.float32),
        "w1":   0.1 * jax.random.normal(ks[4], (D, F), jnp.float32),
        "b1":   0.1 * jax.random.normal(ks[5], (1, F), jnp.float32),
        "w2":   0.1 * jax.random.normal(ks[6], (F, D), jnp.float32),
        "b2":   0.1 * jax.random.normal(ks[7], (1, D), jnp.float32),
        "ln_g": jnp.ones((3, D), jnp.float32),
        "ln_b": jnp.zeros((3, D), jnp.float32),
    }

    x = jax.random.normal(ks[8], (B, T, D), jnp.float32)
    memory = jax.random.normal(ks[9], (B, S, D), jnp.float32)

    # causal target mask (B, T, T); src mask (B, 1, S) with a few padded keys
    tgt_mask = jnp.broadcast_to(
        jnp.tril(jnp.ones((T, T), jnp.float32)), (B, T, T))
    src_mask = jnp.ones((B, 1, S), jnp.float32)
    src_mask = src_mask.at[1, 0, S - 3:].set(0.0)

    out = decoder_layer(x, memory, src_mask, tgt_mask, params, n_heads=H,
                        compute_dtype=jnp.bfloat16, tile_t=128)
    out = jax.block_until_ready(out)

    ref = ref_decoder_layer(x, memory, src_mask, tgt_mask, params, n_heads=H)
    np.testing.assert_allclose(np.asarray(out), np.asarray(ref),
                               rtol=5e-2, atol=5e-2)

    print("KERNEL_OK")
</pallas_src>

<mosaic_0001>
module attributes {stable_mosaic.version = 11 : i64} {
  func.func @decoder_layer_kernel(%arg0: i32, %arg1: i32, %arg2: memref<1x8x32xf32, #tpu.memory_space<vmem>>, %arg3: memref<1x8x32xf32, #tpu.memory_space<vmem>>, %arg4: memref<1x16x32xf32, #tpu.memory_space<vmem>>, %arg5: memref<1x8x8xf32, #tpu.memory_space<vmem>>, %arg6: memref<1x1x16xf32, #tpu.memory_space<vmem>>, %arg7: memref<32x32xbf16, #tpu.memory_space<vmem>>, %arg8: memref<1x32xf32, #tpu.memory_space<vmem>>, %arg9: memref<32x64xbf16, #tpu.memory_space<vmem>>, %arg10: memref<1x64xf32, #tpu.memory_space<vmem>>, %arg11: memref<32x32xbf16, #tpu.memory_space<vmem>>, %arg12: memref<1x32xf32, #tpu.memory_space<vmem>>, %arg13: memref<32x32xbf16, #tpu.memory_space<vmem>>, %arg14: memref<1x32xf32, #tpu.memory_space<vmem>>, %arg15: memref<32x64xbf16, #tpu.memory_space<vmem>>, %arg16: memref<1x64xf32, #tpu.memory_space<vmem>>, %arg17: memref<32x32xbf16, #tpu.memory_space<vmem>>, %arg18: memref<1x32xf32, #tpu.memory_space<vmem>>, %arg19: memref<32x64xbf16, #tpu.memory_space<vmem>>, %arg20: memref<1x64xf32, #tpu.memory_space<vmem>>, %arg21: memref<64x32xbf16, #tpu.memory_space<vmem>>, %arg22: memref<1x32xf32, #tpu.memory_space<vmem>>, %arg23: memref<3x32xf32, #tpu.memory_space<vmem>>, %arg24: memref<3x32xf32, #tpu.memory_space<vmem>>, %arg25: memref<1x8x32xf32, #tpu.memory_space<vmem>>) attributes {dimension_semantics = [#tpu.dimension_semantics<parallel>, #tpu.dimension_semantics<parallel>], iteration_bounds = array<i64: 2, 1>, scalar_prefetch = 0 : i64, scratch_operands = 0 : i64, tpu.core_type = #tpu.core_type<tc>, window_params = [{transform_indices = @transform_0, window_bounds = array<i64: 1, 8, 32>}, {transform_indices = @transform_1, window_bounds = array<i64: 1, 8, 32>}, {transform_indices = @transform_2, window_bounds = array<i64: 1, 16, 32>}, {transform_indices = @transform_3, window_bounds = array<i64: 1, 8, 8>}, {transform_indices = @transform_4, window_bounds = array<i64: 1, 1, 16>}, {pipeline_mode = #tpu.pipeline_mode<synchronous>, transform_indices = @transform_5, window_bounds = array<i64: 32, 32>}, {pipeline_mode = #tpu.pipeline_mode<synchronous>, transform_indices = @transform_6, window_bounds = array<i64: 1, 32>}, {pipeline_mode = #tpu.pipeline_mode<synchronous>, transform_indices = @transform_7, window_bounds = array<i64: 32, 64>}, {pipeline_mode = #tpu.pipeline_mode<synchronous>, transform_indices = @transform_8, window_bounds = array<i64: 1, 64>}, {pipeline_mode = #tpu.pipeline_mode<synchronous>, transform_indices = @transform_9, window_bounds = array<i64: 32, 32>}, {pipeline_mode = #tpu.pipeline_mode<synchronous>, transform_indices = @transform_10, window_bounds = array<i64: 1, 32>}, {pipeline_mode = #tpu.pipeline_mode<synchronous>, transform_indices = @transform_11, window_bounds = array<i64: 32, 32>}, {pipeline_mode = #tpu.pipeline_mode<synchronous>, transform_indices = @transform_12, window_bounds = array<i64: 1, 32>}, {pipeline_mode = #tpu.pipeline_mode<synchronous>, transform_indices = @transform_13, window_bounds = array<i64: 32, 64>}, {pipeline_mode = #tpu.pipeline_mode<synchronous>, transform_indices = @transform_14, window_bounds = array<i64: 1, 64>}, {pipeline_mode = #tpu.pipeline_mode<synchronous>, transform_indices = @transform_15, window_bounds = array<i64: 32, 32>}, {pipeline_mode = #tpu.pipeline_mode<synchronous>, transform_indices = @transform_16, window_bounds = array<i64: 1, 32>}, {pipeline_mode = #tpu.pipeline_mode<synchronous>, transform_indices = @transform_17, window_bounds = array<i64: 32, 64>}, {pipeline_mode = #tpu.pipeline_mode<synchronous>, transform_indices = @transform_18, window_bounds = array<i64: 1, 64>}, {pipeline_mode = #tpu.pipeline_mode<synchronous>, transform_indices = @transform_19, window_bounds = array<i64: 64, 32>}, {pipeline_mode = #tpu.pipeline_mode<synchronous>, transform_indices = @transform_20, window_bounds = array<i64: 1, 32>}, {pipeline_mode = #tpu.pipeline_mode<synchronous>, transform_indices = @transform_21, window_bounds = array<i64: 3, 32>}, {pipeline_mode = #tpu.pipeline_mode<synchronous>, transform_indices = @transform_22, window_bounds = array<i64: 3, 32>}, {transform_indices = @transform_23, window_bounds = array<i64: 1, 8, 32>}]} {
    %c0 = arith.constant 0 : index
    %c0_0 = arith.constant 0 : index
    %c0_1 = arith.constant 0 : index
    %0 = vector.load %arg2[%c0, %c0_0, %c0_1] : memref<1x8x32xf32, #tpu.memory_space<vmem>>, vector<1x8x32xf32>
    %1 = vector.shape_cast %0 : vector<1x8x32xf32> to vector<8x32xf32>
    %c0_2 = arith.constant 0 : index
    %c0_3 = arith.constant 0 : index
    %c0_4 = arith.constant 0 : index
    %2 = vector.load %arg3[%c0_2, %c0_3, %c0_4] : memref<1x8x32xf32, #tpu.memory_space<vmem>>, vector<1x8x32xf32>
    %3 = vector.shape_cast %2 : vector<1x8x32xf32> to vector<8x32xf32>
    %c0_5 = arith.constant 0 : index
    %c0_6 = arith.constant 0 : index
    %c0_7 = arith.constant 0 : index
    %4 = vector.load %arg4[%c0_5, %c0_6, %c0_7] : memref<1x16x32xf32, #tpu.memory_space<vmem>>, vector<1x16x32xf32>
    %5 = vector.shape_cast %4 : vector<1x16x32xf32> to vector<16x32xf32>
    %c0_8 = arith.constant 0 : index
    %c0_9 = arith.constant 0 : index
    %6 = vector.load %arg23[%c0_8, %c0_9] : memref<3x32xf32, #tpu.memory_space<vmem>>, vector<3x32xf32>
    %c0_10 = arith.constant 0 : index
    %c0_11 = arith.constant 0 : index
    %7 = vector.load %arg24[%c0_10, %c0_11] : memref<3x32xf32, #tpu.memory_space<vmem>>, vector<3x32xf32>
    %c0_12 = arith.constant 0 : index
    %c0_13 = arith.constant 0 : index
    %c0_14 = arith.constant 0 : index
    %8 = vector.load %arg5[%c0_12, %c0_13, %c0_14] : memref<1x8x8xf32, #tpu.memory_space<vmem>>, vector<1x8x8xf32>
    %9 = vector.shape_cast %8 : vector<1x8x8xf32> to vector<8x8xf32>
    %cst = arith.constant 0.000000e+00 : f32
    %10 = vector.broadcast %cst : f32 to vector<8x8xf32>
    %11 = arith.cmpf oeq, %9, %10 : vector<8x8xf32>
    %cst_15 = arith.constant -1.000000e+09 : f32
    %cst_16 = arith.constant 0.000000e+00 : f32
    %12 = vector.broadcast %cst_15 : f32 to vector<8x8xf32>
    %13 = vector.broadcast %cst_16 : f32 to vector<8x8xf32>
    %14 = arith.select %11, %12, %13 : vector<8x8xi1>, vector<8x8xf32>
    %c0_17 = arith.constant 0 : index
    %c0_18 = arith.constant 0 : index
    %c0_19 = arith.constant 0 : index
    %15 = vector.load %arg6[%c0_17, %c0_18, %c0_19] : memref<1x1x16xf32, #tpu.memory_space<vmem>>, vector<1x1x16xf32>
    %16 = vector.shape_cast %15 : vector<1x1x16xf32> to vector<1x16xf32>
    %cst_20 = arith.constant 0.000000e+00 : f32
    %17 = vector.broadcast %cst_20 : f32 to vector<1x16xf32>
    %18 = arith.cmpf oeq, %16, %17 : vector<1x16xf32>
    %cst_21 = arith.constant -1.000000e+09 : f32
    %cst_22 = arith.constant 0.000000e+00 : f32
    %19 = vector.broadcast %cst_21 : f32 to vector<1x16xf32>
    %20 = vector.broadcast %cst_22 : f32 to vector<1x16xf32>
    %21 = arith.select %18, %19, %20 : vector<1x16xi1>, vector<1x16xf32>
    %22 = vector.extract_strided_slice %6 {offsets = [0, 0], sizes = [1, 32], strides = [1, 1]} : vector<3x32xf32> to vector<1x32xf32>
    %23 = vector.extract_strided_slice %7 {offsets = [0, 0], sizes = [1, 32], strides = [1, 1]} : vector<3x32xf32> to vector<1x32xf32>
    %cst_23 = arith.constant dense<0.000000e+00> : vector<8xf32>
    %24 = vector.multi_reduction <add>, %1, %cst_23 [1] : vector<8x32xf32> to vector<8xf32>
    %25 = vector.shape_cast %24 : vector<8xf32> to vector<8x1xf32>
    %cst_24 = arith.constant 3.200000e+01 : f32
    %26 = vector.broadcast %cst_24 : f32 to vector<8x1xf32>
    %27 = arith.divf %25, %26 : vector<8x1xf32>
    %28 = vector.broadcast %27 : vector<8x1xf32> to vector<8x32xf32>
    %29 = arith.subf %1, %28 : vector<8x32xf32>
    %30 = arith.mulf %29, %29 : vector<8x32xf32>
    %cst_25 = arith.constant dense<0.000000e+00> : vector<8xf32>
    %31 = vector.multi_reduction <add>, %30, %cst_25 [1] : vector<8x32xf32> to vector<8xf32>
    %32 = vector.shape_cast %31 : vector<8xf32> to vector<8x1xf32>
    %cst_26 = arith.constant 3.100000e+01 : f32
    %33 = vector.broadcast %cst_26 : f32 to vector<8x1xf32>
    %34 = arith.divf %32, %33 : vector<8x1xf32>
    %35 = math.sqrt %34 : vector<8x1xf32>
    %36 = vector.broadcast %27 : vector<8x1xf32> to vector<8x32xf32>
    %37 = arith.subf %1, %36 : vector<8x32xf32>
    %38 = vector.broadcast %22 : vector<1x32xf32> to vector<8x32xf32>
    %39 = arith.mulf %38, %37 : vector<8x32xf32>
    %cst_27 = arith.constant 9.99999997E-7 : f32
    %40 = vector.broadcast %cst_27 : f32 to vector<8x1xf32>
    %41 = arith.addf %35, %40 : vector<8x1xf32>
    %42 = vector.broadcast %41 : vector<8x1xf32> to vector<8x32xf32>
    %43 = arith.divf %39, %42 : vector<8x32xf32>
    %44 = vector.broadcast %23 : vector<1x32xf32> to vector<8x32xf32>
    %45 = arith.addf %43, %44 : vector<8x32xf32>
    %46 = vector.extract_strided_slice %6 {offsets = [0, 0], sizes = [1, 32], strides = [1, 1]} : vector<3x32xf32> to vector<1x32xf32>
    %47 = vector.extract_strided_slice %7 {offsets = [0, 0], sizes = [1, 32], strides = [1, 1]} : vector<3x32xf32> to vector<1x32xf32>
    %cst_28 = arith.constant dense<0.000000e+00> : vector<8xf32>
    %48 = vector.multi_reduction <add>, %3, %cst_28 [1] : vector<8x32xf32> to vector<8xf32>
    %49 = vector.shape_cast %48 : vector<8xf32> to vector<8x1xf32>
    %cst_29 = arith.constant 3.200000e+01 : f32
    %50 = vector.broadcast %cst_29 : f32 to vector<8x1xf32>
    %51 = arith.divf %49, %50 : vector<8x1xf32>
    %52 = vector.broadcast %51 : vector<8x1xf32> to vector<8x32xf32>
    %53 = arith.subf %3, %52 : vector<8x32xf32>
    %54 = arith.mulf %53, %53 : vector<8x32xf32>
    %cst_30 = arith.constant dense<0.000000e+00> : vector<8xf32>
    %55 = vector.multi_reduction <add>, %54, %cst_30 [1] : vector<8x32xf32> to vector<8xf32>
    %56 = vector.shape_cast %55 : vector<8xf32> to vector<8x1xf32>
    %cst_31 = arith.constant 3.100000e+01 : f32
    %57 = vector.broadcast %cst_31 : f32 to vector<8x1xf32>
    %58 = arith.divf %56, %57 : vector<8x1xf32>
    %59 = math.sqrt %58 : vector<8x1xf32>
    %60 = vector.broadcast %51 : vector<8x1xf32> to vector<8x32xf32>
    %61 = arith.subf %3, %60 : vector<8x32xf32>
    %62 = vector.broadcast %46 : vector<1x32xf32> to vector<8x32xf32>
    %63 = arith.mulf %62, %61 : vector<8x32xf32>
    %cst_32 = arith.constant 9.99999997E-7 : f32
    %64 = vector.broadcast %cst_32 : f32 to vector<8x1xf32>
    %65 = arith.addf %59, %64 : vector<8x1xf32>
    %66 = vector.broadcast %65 : vector<8x1xf32> to vector<8x32xf32>
    %67 = arith.divf %63, %66 : vector<8x32xf32>
    %68 = vector.broadcast %47 : vector<1x32xf32> to vector<8x32xf32>
    %69 = arith.addf %67, %68 : vector<8x32xf32>
    %70 = arith.truncf %45 : vector<8x32xf32> to vector<8x32xbf16>
    %c0_33 = arith.constant 0 : index
    %c0_34 = arith.constant 0 : index
    %71 = vector.load %arg7[%c0_33, %c0_34] : memref<32x32xbf16, #tpu.memory_space<vmem>>, vector<32x32xbf16>
    %cst_35 = arith.constant dense<0.000000e+00> : vector<8x32xf32>
    %72 = tpu.matmul %70, %71, %cst_35 {dimension_numbers = #tpu.dot_dimension_numbers<[1], [0], [0], [1], [0, 0, 1, 1], [], []>} : vector<8x32xbf16>, vector<32x32xbf16>, vector<8x32xf32> -> vector<8x32xf32>
    %c0_36 = arith.constant 0 : index
    %c0_37 = arith.constant 0 : index
    %73 = vector.load %arg8[%c0_36, %c0_37] : memref<1x32xf32, #tpu.memory_space<vmem>>, vector<1x32xf32>
    %74 = vector.broadcast %73 : vector<1x32xf32> to vector<8x32xf32>
    %75 = arith.addf %72, %74 : vector<8x32xf32>
    %76 = arith.truncf %69 : vector<8x32xf32> to vector<8x32xbf16>
    %c0_38 = arith.constant 0 : index
    %c0_39 = arith.constant 0 : index
    %77 = vector.load %arg9[%c0_38, %c0_39] : memref<32x64xbf16, #tpu.memory_space<vmem>>, vector<32x64xbf16>
    %cst_40 = arith.constant dense<0.000000e+00> : vector<8x64xf32>
    %78 = tpu.matmul %76, %77, %cst_40 {dimension_numbers = #tpu.dot_dimension_numbers<[1], [0], [0], [1], [0, 0, 1, 1], [], []>} : vector<8x32xbf16>, vector<32x64xbf16>, vector<8x64xf32> -> vector<8x64xf32>
    %c0_41 = arith.constant 0 : index
    %c0_42 = arith.constant 0 : index
    %79 = vector.load %arg10[%c0_41, %c0_42] : memref<1x64xf32, #tpu.memory_space<vmem>>, vector<1x64xf32>
    %80 = vector.broadcast %79 : vector<1x64xf32> to vector<8x64xf32>
    %81 = arith.addf %78, %80 : vector<8x64xf32>
    %82 = vector.extract_strided_slice %81 {offsets = [0, 0], sizes = [8, 32], strides = [1, 1]} : vector<8x64xf32> to vector<8x32xf32>
    %83 = vector.extract_strided_slice %81 {offsets = [0, 32], sizes = [8, 32], strides = [1, 1]} : vector<8x64xf32> to vector<8x32xf32>
    %c0_43 = arith.constant 0 : index
    %c0_44 = arith.constant 0 : index
    %84 = vector.load %arg11[%c0_43, %c0_44] : memref<32x32xbf16, #tpu.memory_space<vmem>>, vector<32x32xbf16>
    %c0_45 = arith.constant 0 : index
    %c0_46 = arith.constant 0 : index
    %85 = vector.load %arg12[%c0_45, %c0_46] : memref<1x32xf32, #tpu.memory_space<vmem>>, vector<1x32xf32>
    %86 = vector.shape_cast %75 : vector<8x32xf32> to vector<8x4x8xf32>
    %87 = tpu.transpose %86, [1, 0, 2] : vector<8x4x8xf32> -> vector<4x8x8xf32>
    %88 = vector.shape_cast %82 : vector<8x32xf32> to vector<8x4x8xf32>
    %89 = tpu.transpose %88, [1, 0, 2] : vector<8x4x8xf32> -> vector<4x8x8xf32>
    %90 = vector.shape_cast %83 : vector<8x32xf32> to vector<8x4x8xf32>
    %91 = tpu.transpose %90, [1, 0, 2] : vector<8x4x8xf32> -> vector<4x8x8xf32>
    %92 = arith.truncf %87 : vector<4x8x8xf32> to vector<4x8x8xbf16>
    %93 = arith.truncf %89 : vector<4x8x8xf32> to vector<4x8x8xbf16>
    %cst_47 = arith.constant dense<0.000000e+00> : vector<4x8x8xf32>
    %94 = tpu.matmul %92, %93, %cst_47 {dimension_numbers = #tpu.dot_dimension_numbers<[2], [2], [1], [1], [0, 0, 0, 1, 1, 1], [0], [0]>} : vector<4x8x8xbf16>, vector<4x8x8xbf16>, vector<4x8x8xf32> -> vector<4x8x8xf32>
    %cst_48 = arith.constant 0.353553385 : f32
    %95 = vector.broadcast %cst_48 : f32 to vector<4x8x8xf32>
    %96 = arith.mulf %94, %95 : vector<4x8x8xf32>
    %97 = vector.shape_cast %14 : vector<8x8xf32> to vector<1x8x8xf32>
    %98 = vector.broadcast %97 : vector<1x8x8xf32> to vector<4x8x8xf32>
    %99 = arith.addf %96, %98 : vector<4x8x8xf32>
    %cst_49 = arith.constant dense<0xFF800000> : vector<4x8xf32>
    %100 = vector.multi_reduction <maximumf>, %99, %cst_49 [2] : vector<4x8x8xf32> to vector<4x8xf32>
    %101 = vector.shape_cast %100 : vector<4x8xf32> to vector<4x8x1xf32>
    %102 = vector.broadcast %101 : vector<4x8x1xf32> to vector<4x8x8xf32>
    %103 = arith.subf %99, %102 : vector<4x8x8xf32>
    %104 = math.exp %103 : vector<4x8x8xf32>
    %cst_50 = arith.constant dense<0.000000e+00> : vector<4x8xf32>
    %105 = vector.multi_reduction <add>, %104, %cst_50 [2] : vector<4x8x8xf32> to vector<4x8xf32>
    %106 = vector.shape_cast %105 : vector<4x8xf32> to vector<4x8x1xf32>
    %107 = tpu.reciprocal %106 {approx = true} : vector<4x8x1xf32> -> vector<4x8x1xf32>
    %108 = vector.broadcast %107 : vector<4x8x1xf32> to vector<4x8x8xf32>
    %109 = arith.mulf %104, %108 : vector<4x8x8xf32>
    %110 = arith.truncf %109 : vector<4x8x8xf32> to vector<4x8x8xbf16>
    %111 = arith.truncf %91 : vector<4x8x8xf32> to vector<4x8x8xbf16>
    %cst_51 = arith.constant dense<0.000000e+00> : vector<4x8x8xf32>
    %112 = tpu.matmul %110, %111, %cst_51 {dimension_numbers = #tpu.dot_dimension_numbers<[2], [1], [1], [2], [0, 0, 0, 1, 1, 2], [0], [0]>} : vector<4x8x8xbf16>, vector<4x8x8xbf16>, vector<4x8x8xf32> -> vector<4x8x8xf32>
    %113 = tpu.transpose %112, [1, 0, 2] : vector<4x8x8xf32> -> vector<8x4x8xf32>
    %114 = vector.shape_cast %113 : vector<8x4x8xf32> to vector<8x32xf32>
    %115 = arith.truncf %114 : vector<8x32xf32> to vector<8x32xbf16>
    %cst_52 = arith.constant dense<0.000000e+00> : vector<8x32xf32>
    %116 = tpu.matmul %115, %84, %cst_52 {dimension_numbers = #tpu.dot_dimension_numbers<[1], [0], [0], [1], [0, 0, 1, 1], [], []>} : vector<8x32xbf16>, vector<32x32xbf16>, vector<8x32xf32> -> vector<8x32xf32>
    %117 = vector.broadcast %85 : vector<1x32xf32> to vector<8x32xf32>
    %118 = arith.addf %116, %117 : vector<8x32xf32>
    %119 = arith.addf %1, %118 : vector<8x32xf32>
    %120 = vector.extract_strided_slice %6 {offsets = [1, 0], sizes = [1, 32], strides = [1, 1]} : vector<3x32xf32> to vector<1x32xf32>
    %121 = vector.extract_strided_slice %7 {offsets = [1, 0], sizes = [1, 32], strides = [1, 1]} : vector<3x32xf32> to vector<1x32xf32>
    %cst_53 = arith.constant dense<0.000000e+00> : vector<8xf32>
    %122 = vector.multi_reduction <add>, %119, %cst_53 [1] : vector<8x32xf32> to vector<8xf32>
    %123 = vector.shape_cast %122 : vector<8xf32> to vector<8x1xf32>
    %cst_54 = arith.constant 3.200000e+01 : f32
    %124 = vector.broadcast %cst_54 : f32 to vector<8x1xf32>
    %125 = arith.divf %123, %124 : vector<8x1xf32>
    %126 = vector.broadcast %125 : vector<8x1xf32> to vector<8x32xf32>
    %127 = arith.subf %119, %126 : vector<8x32xf32>
    %128 = arith.mulf %127, %127 : vector<8x32xf32>
    %cst_55 = arith.constant dense<0.000000e+00> : vector<8xf32>
    %129 = vector.multi_reduction <add>, %128, %cst_55 [1] : vector<8x32xf32> to vector<8xf32>
    %130 = vector.shape_cast %129 : vector<8xf32> to vector<8x1xf32>
    %cst_56 = arith.constant 3.100000e+01 : f32
    %131 = vector.broadcast %cst_56 : f32 to vector<8x1xf32>
    %132 = arith.divf %130, %131 : vector<8x1xf32>
    %133 = math.sqrt %132 : vector<8x1xf32>
    %134 = vector.broadcast %125 : vector<8x1xf32> to vector<8x32xf32>
    %135 = arith.subf %119, %134 : vector<8x32xf32>
    %136 = vector.broadcast %120 : vector<1x32xf32> to vector<8x32xf32>
    %137 = arith.mulf %136, %135 : vector<8x32xf32>
    %cst_57 = arith.constant 9.99999997E-7 : f32
    %138 = vector.broadcast %cst_57 : f32 to vector<8x1xf32>
    %139 = arith.addf %133, %138 : vector<8x1xf32>
    %140 = vector.broadcast %139 : vector<8x1xf32> to vector<8x32xf32>
    %141 = arith.divf %137, %140 : vector<8x32xf32>
    %142 = vector.broadcast %121 : vector<1x32xf32> to vector<8x32xf32>
    %143 = arith.addf %141, %142 : vector<8x32xf32>
    %144 = arith.truncf %143 : vector<8x32xf32> to vector<8x32xbf16>
    %c0_58 = arith.constant 0 : index
    %c0_59 = arith.constant 0 : index
    %145 = vector.load %arg13[%c0_58, %c0_59] : memref<32x32xbf16, #tpu.memory_space<vmem>>, vector<32x32xbf16>
    %cst_60 = arith.constant dense<0.000000e+00> : vector<8x32xf32>
    %146 = tpu.matmul %144, %145, %cst_60 {dimension_numbers = #tpu.dot_dimension_numbers<[1], [0], [0], [1], [0, 0, 1, 1], [], []>} : vector<8x32xbf16>, vector<32x32xbf16>, vector<8x32xf32> -> vector<8x32xf32>
    %c0_61 = arith.constant 0 : index
    %c0_62 = arith.constant 0 : index
    %147 = vector.load %arg14[%c0_61, %c0_62] : memref<1x32xf32, #tpu.memory_space<vmem>>, vector<1x32xf32>
    %148 = vector.broadcast %147 : vector<1x32xf32> to vector<8x32xf32>
    %149 = arith.addf %146, %148 : vector<8x32xf32>
    %150 = arith.truncf %5 : vector<16x32xf32> to vector<16x32xbf16>
    %c0_63 = arith.constant 0 : index
    %c0_64 = arith.constant 0 : index
    %151 = vector.load %arg15[%c0_63, %c0_64] : memref<32x64xbf16, #tpu.memory_space<vmem>>, vector<32x64xbf16>
    %cst_65 = arith.constant dense<0.000000e+00> : vector<16x64xf32>
    %152 = tpu.matmul %150, %151, %cst_65 {dimension_numbers = #tpu.dot_dimension_numbers<[1], [0], [0], [1], [0, 0, 1, 1], [], []>} : vector<16x32xbf16>, vector<32x64xbf16>, vector<16x64xf32> -> vector<16x64xf32>
    %c0_66 = arith.constant 0 : index
    %c0_67 = arith.constant 0 : index
    %153 = vector.load %arg16[%c0_66, %c0_67] : memref<1x64xf32, #tpu.memory_space<vmem>>, vector<1x64xf32>
    %154 = vector.broadcast %153 : vector<1x64xf32> to vector<16x64xf32>
    %155 = arith.addf %152, %154 : vector<16x64xf32>
    %156 = vector.extract_strided_slice %155 {offsets = [0, 0], sizes = [16, 32], strides = [1, 1]} : vector<16x64xf32> to vector<16x32xf32>
    %157 = vector.extract_strided_slice %155 {offsets = [0, 32], sizes = [16, 32], strides = [1, 1]} : vector<16x64xf32> to vector<16x32xf32>
    %c0_68 = arith.constant 0 : index
    %c0_69 = arith.constant 0 : index
    %158 = vector.load %arg17[%c0_68, %c0_69] : memref<32x32xbf16, #tpu.memory_space<vmem>>, vector<32x32xbf16>
    %c0_70 = arith.constant 0 : index
    %c0_71 = arith.constant 0 : index
    %159 = vector.load %arg18[%c0_70, %c0_71] : memref<1x32xf32, #tpu.memory_space<vmem>>, vector<1x32xf32>
    %160 = vector.shape_cast %149 : vector<8x32xf32> to vector<8x4x8xf32>
    %161 = tpu.transpose %160, [1, 0, 2] : vector<8x4x8xf32> -> vector<4x8x8xf32>
    %162 = vector.shape_cast %156 : vector<16x32xf32> to vector<16x4x8xf32>
    %163 = tpu.transpose %162, [1, 0, 2] : vector<16x4x8xf32> -> vector<4x16x8xf32>
    %164 = vector.shape_cast %157 : vector<16x32xf32> to vector<16x4x8xf32>
    %165 = tpu.transpose %164, [1, 0, 2] : vector<16x4x8xf32> -> vector<4x16x8xf32>
    %166 = arith.truncf %161 : vector<4x8x8xf32> to vector<4x8x8xbf16>
    %167 = arith.truncf %163 : vector<4x16x8xf32> to vector<4x16x8xbf16>
    %cst_72 = arith.constant dense<0.000000e+00> : vector<4x8x16xf32>
    %168 = tpu.matmul %166, %167, %cst_72 {dimension_numbers = #tpu.dot_dimension_numbers<[2], [2], [1], [1], [0, 0, 0, 1, 1, 1], [0], [0]>} : vector<4x8x8xbf16>, vector<4x16x8xbf16>, vector<4x8x16xf32> -> vector<4x8x16xf32>
    %cst_73 = arith.constant 0.353553385 : f32
    %169 = vector.broadcast %cst_73 : f32 to vector<4x8x16xf32>
    %170 = arith.mulf %168, %169 : vector<4x8x16xf32>
    %171 = vector.shape_cast %21 : vector<1x16xf32> to vector<1x1x16xf32>
    %172 = vector.broadcast %171 : vector<1x1x16xf32> to vector<4x8x16xf32>
    %173 = arith.addf %170, %172 : vector<4x8x16xf32>
    %cst_74 = arith.constant dense<0xFF800000> : vector<4x8xf32>
    %174 = vector.multi_reduction <maximumf>, %173, %cst_74 [2] : vector<4x8x16xf32> to vector<4x8xf32>
    %175 = vector.shape_cast %174 : vector<4x8xf32> to vector<4x8x1xf32>
    %176 = vector.broadcast %175 : vector<4x8x1xf32> to vector<4x8x16xf32>
    %177 = arith.subf %173, %176 : vector<4x8x16xf32>
    %178 = math.exp %177 : vector<4x8x16xf32>
    %cst_75 = arith.constant dense<0.000000e+00> : vector<4x8xf32>
    %179 = vector.multi_reduction <add>, %178, %cst_75 [2] : vector<4x8x16xf32> to vector<4x8xf32>
    %180 = vector.shape_cast %179 : vector<4x8xf32> to vector<4x8x1xf32>
    %181 = tpu.reciprocal %180 {approx = true} : vector<4x8x1xf32> -> vector<4x8x1xf32>
    %182 = vector.broadcast %181 : vector<4x8x1xf32> to vector<4x8x16xf32>
    %183 = arith.mulf %178, %182 : vector<4x8x16xf32>
    %184 = arith.truncf %183 : vector<4x8x16xf32> to vector<4x8x16xbf16>
    %185 = arith.truncf %165 : vector<4x16x8xf32> to vector<4x16x8xbf16>
    %cst_76 = arith.constant dense<0.000000e+00> : vector<4x8x8xf32>
    %186 = tpu.matmul %184, %185, %cst_76 {dimension_numbers = #tpu.dot_dimension_numbers<[2], [1], [1], [2], [0, 0, 0, 1, 1, 2], [0], [0]>} : vector<4x8x16xbf16>, vector<4x16x8xbf16>, vector<4x8x8xf32> -> vector<4x8x8xf32>
    %187 = tpu.transpose %186, [1, 0, 2] : vector<4x8x8xf32> -> vector<8x4x8xf32>
    %188 = vector.shape_cast %187 : vector<8x4x8xf32> to vector<8x32xf32>
    %189 = arith.truncf %188 : vector<8x32xf32> to vector<8x32xbf16>
    %cst_77 = arith.constant dense<0.000000e+00> : vector<8x32xf32>
    %190 = tpu.matmul %189, %158, %cst_77 {dimension_numbers = #tpu.dot_dimension_numbers<[1], [0], [0], [1], [0, 0, 1, 1], [], []>} : vector<8x32xbf16>, vector<32x32xbf16>, vector<8x32xf32> -> vector<8x32xf32>
    %191 = vector.broadcast %159 : vector<1x32xf32> to vector<8x32xf32>
    %192 = arith.addf %190, %191 : vector<8x32xf32>
    %193 = arith.addf %119, %192 : vector<8x32xf32>
    %194 = vector.extract_strided_slice %6 {offsets = [2, 0], sizes = [1, 32], strides = [1, 1]} : vector<3x32xf32> to vector<1x32xf32>
    %195 = vector.extract_strided_slice %7 {offsets = [2, 0], sizes = [1, 32], strides = [1, 1]} : vector<3x32xf32> to vector<1x32xf32>
    %cst_78 = arith.constant dense<0.000000e+00> : vector<8xf32>
    %196 = vector.multi_reduction <add>, %193, %cst_78 [1] : vector<8x32xf32> to vector<8xf32>
    %197 = vector.shape_cast %196 : vector<8xf32> to vector<8x1xf32>
    %cst_79 = arith.constant 3.200000e+01 : f32
    %198 = vector.broadcast %cst_79 : f32 to vector<8x1xf32>
    %199 = arith.divf %197, %198 : vector<8x1xf32>
    %200 = vector.broadcast %199 : vector<8x1xf32> to vector<8x32xf32>
    %201 = arith.subf %193, %200 : vector<8x32xf32>
    %202 = arith.mulf %201, %201 : vector<8x32xf32>
    %cst_80 = arith.constant dense<0.000000e+00> : vector<8xf32>
    %203 = vector.multi_reduction <add>, %202, %cst_80 [1] : vector<8x32xf32> to vector<8xf32>
    %204 = vector.shape_cast %203 : vector<8xf32> to vector<8x1xf32>
    %cst_81 = arith.constant 3.100000e+01 : f32
    %205 = vector.broadcast %cst_81 : f32 to vector<8x1xf32>
    %206 = arith.divf %204, %205 : vector<8x1xf32>
    %207 = math.sqrt %206 : vector<8x1xf32>
    %208 = vector.broadcast %199 : vector<8x1xf32> to vector<8x32xf32>
    %209 = arith.subf %193, %208 : vector<8x32xf32>
    %210 = vector.broadcast %194 : vector<1x32xf32> to vector<8x32xf32>
    %211 = arith.mulf %210, %209 : vector<8x32xf32>
    %cst_82 = arith.constant 9.99999997E-7 : f32
    %212 = vector.broadcast %cst_82 : f32 to vector<8x1xf32>
    %213 = arith.addf %207, %212 : vector<8x1xf32>
    %214 = vector.broadcast %213 : vector<8x1xf32> to vector<8x32xf32>
    %215 = arith.divf %211, %214 : vector<8x32xf32>
    %216 = vector.broadcast %195 : vector<1x32xf32> to vector<8x32xf32>
    %217 = arith.addf %215, %216 : vector<8x32xf32>
    %218 = arith.truncf %217 : vector<8x32xf32> to vector<8x32xbf16>
    %c0_83 = arith.constant 0 : index
    %c0_84 = arith.constant 0 : index
    %219 = vector.load %arg19[%c0_83, %c0_84] : memref<32x64xbf16, #tpu.memory_space<vmem>>, vector<32x64xbf16>
    %cst_85 = arith.constant dense<0.000000e+00> : vector<8x64xf32>
    %220 = tpu.matmul %218, %219, %cst_85 {dimension_numbers = #tpu.dot_dimension_numbers<[1], [0], [0], [1], [0, 0, 1, 1], [], []>} : vector<8x32xbf16>, vector<32x64xbf16>, vector<8x64xf32> -> vector<8x64xf32>
    %c0_86 = arith.constant 0 : index
    %c0_87 = arith.constant 0 : index
    %221 = vector.load %arg20[%c0_86, %c0_87] : memref<1x64xf32, #tpu.memory_space<vmem>>, vector<1x64xf32>
    %222 = vector.broadcast %221 : vector<1x64xf32> to vector<8x64xf32>
    %223 = arith.addf %220, %222 : vector<8x64xf32>
    %cst_88 = arith.constant 0.000000e+00 : f32
    %224 = vector.broadcast %cst_88 : f32 to vector<8x64xf32>
    %225 = arith.maximumf %223, %224 : vector<8x64xf32>
    %226 = arith.truncf %225 : vector<8x64xf32> to vector<8x64xbf16>
    %c0_89 = arith.constant 0 : index
    %c0_90 = arith.constant 0 : index
    %227 = vector.load %arg21[%c0_89, %c0_90] : memref<64x32xbf16, #tpu.memory_space<vmem>>, vector<64x32xbf16>
    %cst_91 = arith.constant dense<0.000000e+00> : vector<8x32xf32>
    %228 = tpu.matmul %226, %227, %cst_91 {dimension_numbers = #tpu.dot_dimension_numbers<[1], [0], [0], [1], [0, 0, 1, 1], [], []>} : vector<8x64xbf16>, vector<64x32xbf16>, vector<8x32xf32> -> vector<8x32xf32>
    %c0_92 = arith.constant 0 : index
    %c0_93 = arith.constant 0 : index
    %229 = vector.load %arg22[%c0_92, %c0_93] : memref<1x32xf32, #tpu.memory_space<vmem>>, vector<1x32xf32>
    %230 = vector.broadcast %229 : vector<1x32xf32> to vector<8x32xf32>
    %231 = arith.addf %228, %230 : vector<8x32xf32>
    %232 = arith.addf %193, %231 : vector<8x32xf32>
    %c0_94 = arith.constant 0 : index
    %c0_95 = arith.constant 0 : index
    %c0_96 = arith.constant 0 : index
    %233 = vector.load %arg25[%c0_94, %c0_95, %c0_96] : memref<1x8x32xf32, #tpu.memory_space<vmem>>, vector<1x8x32xf32>
    %234 = vector.shape_cast %233 : vector<1x8x32xf32> to vector<8x32xf32>
    %235 = vector.shape_cast %232 : vector<8x32xf32> to vector<1x8x32xf32>
    tpu.vector_store %arg25[%c0_94, %c0_95, %c0_96], %235 {strides = array<i32>} : memref<1x8x32xf32, #tpu.memory_space<vmem>>, vector<1x8x32xf32>,
    return
  }
  func.func @transform_0(%arg0: i32, %arg1: i32) -> (i32, i32, i32) {
    %c0_i32 = arith.constant 0 : i32
    %c0_i32_0 = arith.constant 0 : i32
    return %arg0, %arg1, %c0_i32 : i32, i32, i32
  }
  func.func @transform_1(%arg0: i32, %arg1: i32) -> (i32, i32, i32) {
    %c0_i32 = arith.constant 0 : i32
    %c0_i32_0 = arith.constant 0 : i32
    %c0_i32_1 = arith.constant 0 : i32
    return %arg0, %c0_i32, %c0_i32_0 : i32, i32, i32
  }
  func.func @transform_2(%arg0: i32, %arg1: i32) -> (i32, i32, i32) {
    %c0_i32 = arith.constant 0 : i32
    %c0_i32_0 = arith.constant 0 : i32
    %c0_i32_1 = arith.constant 0 : i32
    return %arg0, %c0_i32, %c0_i32_0 : i32, i32, i32
  }
  func.func @transform_3(%arg0: i32, %arg1: i32) -> (i32, i32, i32) {
    %c0_i32 = arith.constant 0 : i32
    %c0_i32_0 = arith.constant 0 : i32
    return %arg0, %arg1, %c0_i32 : i32, i32, i32
  }
  func.func @transform_4(%arg0: i32, %arg1: i32) -> (i32, i32, i32) {
    %c0_i32 = arith.constant 0 : i32
    %c0_i32_0 = arith.constant 0 : i32
    %c0_i32_1 = arith.constant 0 : i32
    return %arg0, %c0_i32, %c0_i32_0 : i32, i32, i32
  }
  func.func @transform_5(%arg0: i32, %arg1: i32) -> (i32, i32) {
    %c0_i32 = arith.constant 0 : i32
    %c0_i32_0 = arith.constant 0 : i32
    %c0_i32_1 = arith.constant 0 : i32
    return %c0_i32, %c0_i32_0 : i32, i32
  }
  func.func @transform_6(%arg0: i32, %arg1: i32) -> (i32, i32) {
    %c0_i32 = arith.constant 0 : i32
    %c0_i32_0 = arith.constant 0 : i32
    %c0_i32_1 = arith.constant 0 : i32
    return %c0_i32, %c0_i32_0 : i32, i32
  }
  func.func @transform_7(%arg0: i32, %arg1: i32) -> (i32, i32) {
    %c0_i32 = arith.constant 0 : i32
    %c0_i32_0 = arith.constant 0 : i32
    %c0_i32_1 = arith.constant 0 : i32
    return %c0_i32, %c0_i32_0 : i32, i32
  }
  func.func @transform_8(%arg0: i32, %arg1: i32) -> (i32, i32) {
    %c0_i32 = arith.constant 0 : i32
    %c0_i32_0 = arith.constant 0 : i32
    %c0_i32_1 = arith.constant 0 : i32
    return %c0_i32, %c0_i32_0 : i32, i32
  }
  func.func @transform_9(%arg0: i32, %arg1: i32) -> (i32, i32) {
    %c0_i32 = arith.constant 0 : i32
    %c0_i32_0 = arith.constant 0 : i32
    %c0_i32_1 = arith.constant 0 : i32
    return %c0_i32, %c0_i32_0 : i32, i32
  }
  func.func @transform_10(%arg0: i32, %arg1: i32) -> (i32, i32) {
    %c0_i32 = arith.constant 0 : i32
    %c0_i32_0 = arith.constant 0 : i32
    %c0_i32_1 = arith.constant 0 : i32
    return %c0_i32, %c0_i32_0 : i32, i32
  }
  func.func @transform_11(%arg0: i32, %arg1: i32) -> (i32, i32) {
    %c0_i32 = arith.constant 0 : i32
    %c0_i32_0 = arith.constant 0 : i32
    %c0_i32_1 = arith.constant 0 : i32
    return %c0_i32, %c0_i32_0 : i32, i32
  }
  func.func @transform_12(%arg0: i32, %arg1: i32) -> (i32, i32) {
    %c0_i32 = arith.constant 0 : i32
    %c0_i32_0 = arith.constant 0 : i32
    %c0_i32_1 = arith.constant 0 : i32
    return %c0_i32, %c0_i32_0 : i32, i32
  }
  func.func @transform_13(%arg0: i32, %arg1: i32) -> (i32, i32) {
    %c0_i32 = arith.constant 0 : i32
    %c0_i32_0 = arith.constant 0 : i32
    %c0_i32_1 = arith.constant 0 : i32
    return %c0_i32, %c0_i32_0 : i32, i32
  }
  func.func @transform_14(%arg0: i32, %arg1: i32) -> (i32, i32) {
    %c0_i32 = arith.constant 0 : i32
    %c0_i32_0 = arith.constant 0 : i32
    %c0_i32_1 = arith.constant 0 : i32
    return %c0_i32, %c0_i32_0 : i32, i32
  }
  func.func @transform_15(%arg0: i32, %arg1: i32) -> (i32, i32) {
    %c0_i32 = arith.constant 0 : i32
    %c0_i32_0 = arith.constant 0 : i32
    %c0_i32_1 = arith.constant 0 : i32
    return %c0_i32, %c0_i32_0 : i32, i32
  }
  func.func @transform_16(%arg0: i32, %arg1: i32) -> (i32, i32) {
    %c0_i32 = arith.constant 0 : i32
    %c0_i32_0 = arith.constant 0 : i32
    %c0_i32_1 = arith.constant 0 : i32
    return %c0_i32, %c0_i32_0 : i32, i32
  }
  func.func @transform_17(%arg0: i32, %arg1: i32) -> (i32, i32) {
    %c0_i32 = arith.constant 0 : i32
    %c0_i32_0 = arith.constant 0 : i32
    %c0_i32_1 = arith.constant 0 : i32
    return %c0_i32, %c0_i32_0 : i32, i32
  }
  func.func @transform_18(%arg0: i32, %arg1: i32) -> (i32, i32) {
    %c0_i32 = arith.constant 0 : i32
    %c0_i32_0 = arith.constant 0 : i32
    %c0_i32_1 = arith.constant 0 : i32
    return %c0_i32, %c0_i32_0 : i32, i32
  }
  func.func @transform_19(%arg0: i32, %arg1: i32) -> (i32, i32) {
    %c0_i32 = arith.constant 0 : i32
    %c0_i32_0 = arith.constant 0 : i32
    %c0_i32_1 = arith.constant 0 : i32
    return %c0_i32, %c0_i32_0 : i32, i32
  }
  func.func @transform_20(%arg0: i32, %arg1: i32) -> (i32, i32) {
    %c0_i32 = arith.constant 0 : i32
    %c0_i32_0 = arith.constant 0 : i32
    %c0_i32_1 = arith.constant 0 : i32
    return %c0_i32, %c0_i32_0 : i32, i32
  }
  func.func @transform_21(%arg0: i32, %arg1: i32) -> (i32, i32) {
    %c0_i32 = arith.constant 0 : i32
    %c0_i32_0 = arith.constant 0 : i32
    %c0_i32_1 = arith.constant 0 : i32
    return %c0_i32, %c0_i32_0 : i32, i32
  }
  func.func @transform_22(%arg0: i32, %arg1: i32) -> (i32, i32) {
    %c0_i32 = arith.constant 0 : i32
    %c0_i32_0 = arith.constant 0 : i32
    %c0_i32_1 = arith.constant 0 : i32
    return %c0_i32, %c0_i32_0 : i32, i32
  }
  func.func @transform_23(%arg0: i32, %arg1: i32) -> (i32, i32, i32) {
    %c0_i32 = arith.constant 0 : i32
    %c0_i32_0 = arith.constant 0 : i32
    return %arg0, %arg1, %c0_i32 : i32, i32, i32
  }
}

</mosaic_0001>

<bundles_post_ra>
// kernel: tpu_custom_call.1
= control target key start
LH: loop header
LB: loop body
LE: loop exit
PB: predicated region body
PF: predicated region fallthrough
CT: control target
= control target key end

     0   :  { %s5973_s0 = inlined_call_operand.vmem [shape: f32[2,8,32], index: 0, kind: input, shape index: {}]   ;;  %s5974_s1 = inlined_call_operand.hbm [shape: f32[2,8,32], index: 1, kind: input, shape index: {}]   ;;  %s5975_s2 = inlined_call_operand.vmem [shape: f32[2,16,32], index: 2, kind: input, shape index: {}]   ;;  %s5976_s3 = inlined_call_operand.hbm [shape: f32[2,8,8], index: 3, kind: input, shape index: {}]   ;;  %s5977_s4 = inlined_call_operand.hbm [shape: f32[2,1,16], index: 4, kind: input, shape index: {}]   ;;  %s5978_s5 = inlined_call_operand.hbm [shape: bf16[32,32], index: 5, kind: input, shape index: {}]   ;;  %s5979_s6 = inlined_call_operand.hbm [shape: f32[1,32], index: 6, kind: input, shape index: {}]   ;;  %s5980_s7 = inlined_call_operand.hbm [shape: bf16[32,64], index: 7, kind: input, shape index: {}]   ;;  %s5981_s8 = inlined_call_operand.hbm [shape: f32[1,64], index: 8, kind: input, shape index: {}]   ;;  %s5982_s9 = inlined_call_operand.hbm [shape: bf16[32,32], index: 9, kind: input, shape index: {}]   ;;  %s5983_s10 = inlined_call_operand.hbm [shape: f32[1,32], index: 10, kind: input, shape index: {}]   ;;  %s5984_s11 = inlined_call_operand.hbm [shape: bf16[32,32], index: 11, kind: input, shape index: {}]   ;;  %s5985_s12 = inlined_call_operand.hbm [shape: f32[1,32], index: 12, kind: input, shape index: {}]   ;;  %s5986_s13 = inlined_call_operand.hbm [shape: bf16[32,64], index: 13, kind: input, shape index: {}]   ;;  %s5987_s14 = inlined_call_operand.hbm [shape: f32[1,64], index: 14, kind: input, shape index: {}]   ;;  %s5988_s15 = inlined_call_operand.hbm [shape: bf16[32,32], index: 15, kind: input, shape index: {}]   ;;  %s5989_s16 = inlined_call_operand.hbm [shape: f32[1,32], index: 16, kind: input, shape index: {}]   ;;  %s5990_s17 = inlined_call_operand.hbm [shape: bf16[32,64], index: 17, kind: input, shape index: {}]   ;;  %s5991_s18 = inlined_call_operand.hbm [shape: f32[1,64], index: 18, kind: input, shape index: {}]   ;;  %s5992_s19 = inlined_call_operand.vmem [shape: bf16[64,32], index: 19, kind: input, shape index: {}]   ;;  %s5993_s20 = inlined_call_operand.hbm [shape: f32[1,32], index: 20, kind: input, shape index: {}]   ;;  %s5994_s21 = inlined_call_operand.vmem [shape: f32[3,32], index: 21, kind: input, shape index: {}]   ;;  %s5995_s22 = inlined_call_operand.hbm [shape: f32[3,32], index: 22, kind: input, shape index: {}]   ;;  %s5996_s23 = inlined_call_operand.hbm [shape: f32[2,8,32], index: 23, kind: output, shape index: {}]  }
   0x1   :  { %6005 = sst [smem:[#allocation48_spill]] %s5973_s0 }
   0x2   :  { %6006 = sst [smem:[#allocation49_spill]] %s5974_s1 }
   0x3   :  { %6007 = sst [smem:[#allocation50_spill]] %s5975_s2 }
   0x4   :  { %6008 = sst [smem:[#allocation51_spill]] %s5976_s3 }
   0x5   :  { %6009 = sst [smem:[#allocation52_spill]] %s5977_s4 }
   0x6   :  { %6010 = sst [smem:[#allocation53_spill]] %s5978_s5 }
   0x7   :  { %6011 = sst [smem:[#allocation54_spill]] %s5979_s6 }
   0x8   :  { %6012 = sst [smem:[#allocation55_spill]] %s5980_s7 }
   0x9   :  { %6013 = sst [smem:[#allocation56_spill]] %s5981_s8 }
   0xa   :  { %6014 = sst [smem:[#allocation57_spill]] %s5982_s9 }
   0xb   :  { %6015 = sst [smem:[#allocation58_spill]] %s5983_s10 }
   0xc   :  { %6016 = sst [smem:[#allocation59_spill]] %s5984_s11 }
   0xd   :  { %6017 = sst [smem:[#allocation60_spill]] %s5985_s12 }
   0xe   :  { %6018 = sst [smem:[#allocation61_spill]] %s5986_s13 }
   0xf   :  { %6019 = sst [smem:[#allocation62_spill]] %s5988_s15 }
  0x10   :  { %6020 = sst [smem:[#allocation63_spill]] %s5989_s16 }
  0x11   :  { %6021 = sst [smem:[#allocation64_spill]] %s5990_s17 }
  0x12   :  { %6022 = sst [smem:[#allocation65_spill]] %s5991_s18 }
  0x13   :  { %6023 = sst [smem:[#allocation66_spill]] %s5992_s19 }
  0x14   :  { %6024 = sst [smem:[#allocation67_spill]] %s5993_s20 }
  0x15   :  { %6025 = sst [smem:[#allocation68_spill]] %s5994_s21 }
  0x16   :  { %6026 = sst [smem:[#allocation69_spill]] %s5995_s22 }
  0x17   :  { %6027 = sst [smem:[#allocation70_spill]] %s5996_s23 }
  0x18   :  { %28 = vsyncpa [#allocation3], 0 }
  0x19   :  { %30 = vsyncpa [#allocation3 + $0x1], 0 }
  0x1a   :  { %31 = vsyncpa [#allocation6], 0 }
  0x1b   :  { %33 = vsyncpa [#allocation6 + $0x1], 0 }
  0x1c   :  { %34 = vsyncpa [#allocation9], 0 }
  0x1d   :  { %35 = vsyncpa [#allocation12], 0 }
  0x1e   :  { %36 = vsyncpa [#allocation15], 0 }
  0x1f   :  { %37 = vsyncpa [#allocation18], 0 }
  0x20   :  { %38 = vsyncpa [#allocation21], 0 }
  0x21   :  { %39 = vsyncpa [#allocation24], 0 }
  0x22   :  { %40 = vsyncpa [#allocation27], 0 }
  0x23   :  { %41 = vsyncpa [#allocation30], 0 }
  0x24   :  { %42 = vsyncpa [#allocation4], 0 }
  0x25   :  { %44 = vsyncpa [#allocation4 + $0x1], 0  ;;  %s5005_s4 = smov 0   ;;  %s5007_s30 = smov 0  }
  0x26   :  { %s5009_s24 = smov 0   ;;  %s5011_s25 = smov 0  }
  0x27   :  { %s5013_s5 = smov 0   ;;  %s5015_s1 = smov 0  }
  0x28 LB: > { %6028 = sst [smem:[#allocation44_spill]] %s4845_s25  ;;  %s5036_s26 = sadd.s32 4294967295, %s4853_s1   ;;  %s4853_s1 = sphi %s5015_s1, %s50_s1   ;;  %s4849_s5 = sphi %s5013_s5, %s6073_s5   ;;  %s4845_s25 = sphi %s5011_s25, %s6072_s25   ;;  %s4841_s24 = sphi %s5009_s24, %s6071_s24   ;;  %s4837_s30 = sphi %s5007_s30, %s6070_s30   ;;  %s4833_s4 = sphi %s5005_s4, %s6069_s4  }
  0x29   : > { %p3644_p0 = scmp.ge.s32.totalorder %s4853_s1, 1  ;;  %p111_p1 = scmp.eq.s32.totalorder %s5036_s26, 0 }
  0x2a   : > { %p607_p2 = scmp.lt.s32.totalorder %s4853_s1, 3  ;;  %s6029_s27 = sld [smem:[#allocation53_spill]] }
  0x2b   : > { %s4855_s29 = smov [#allocation8]   ;;  %s4856_s19 = smov 64  }
  0x2c   : > { %p5044_p3 = pnand %p3644_p0, %p607_p2  ;;  %s620_s3 = sshll.u32 %s4855_s29, 4  ;;  %s621_s3 = int_to_ptr.vmem [resolvable:$true] %s620_s3 }
  0x2d   : > { %s4857_s21 = smov 4   ;;  %s4858_s29 = smov [#allocation11]  }
  0x2e   : > { %s6030_s28 = scalar_select %p5044_p3, 1, 0 }
  0x2f   : > { %p3880_p4 = pneg %p5044_p3  ;;  %s646_s25 = sshll.u32 %s4858_s29, 4  ;;  %s647_s25 = int_to_ptr.vmem [resolvable:$true] %s646_s25 }
  0x30   : > { %s618_s7 = sshll.u32 %s6029_s27, 4  ;;  %6031 = sst [smem:[#allocation45_spill]] %s6030_s28  ;;  %s619_s7 = int_to_ptr.hbm [resolvable:$true] %s618_s7 }
  0x31   : > { %p5052_p5 = pnand %p3880_p4, %p111_p1  ;;  %s6033_s27 = sld [smem:[#allocation55_spill]] }
  0x32   : > { %s6034_s9 = sld [smem:[#allocation57_spill]]  ;;  %s4859_s16 = smov [#allocation14]  }
  0x33   : > { %3883 = dma.hbm_to_vmem [thread:$0]  (!%p5052_p5), %s619_s7, 256, %s621_s3, [#allocation9], %s4856_s19, %s4856_s19, %s4857_s21  }
  0x34   : > { %s6035_s11 = sld [smem:[#allocation59_spill]]  ;;  %s672_s7 = sshll.u32 %s4859_s16, 4  ;;  %s673_s7 = int_to_ptr.vmem [resolvable:$true] %s672_s7 }
  0x35   : > { %s4860_s22 = smov [#allocation17]   ;;  %s6036_s13 = sld [smem:[#allocation61_spill]] }
  0x36   : > { %s698_s28 = sshll.u32 %s4860_s22, 4  ;;  %s6037_s15 = sld [smem:[#allocation62_spill]]  ;;  %s699_s28 = int_to_ptr.vmem [resolvable:$true] %s698_s28 }
  0x37   : > { %s644_s23 = sshll.u32 %s6033_s27, 4  ;;  %s4861_s6 = smov [#allocation20]   ;;  %s645_s23 = int_to_ptr.hbm [resolvable:$true] %s644_s23 }
  0x38   : > { %s670_s18 = sshll.u32 %s6034_s9, 4  ;;  %s6038_s17 = sld [smem:[#allocation64_spill]]  ;;  %s671_s18 = int_to_ptr.hbm [resolvable:$true] %s670_s18 }
  0x39   : > { %3889 = dma.hbm_to_vmem [thread:$0]  (!%p5052_p5), %s645_s23, 256, %s647_s25, [#allocation12], %s4856_s19, %s4856_s19, %s4857_s21  }
  0x3a   : > { %s696_s27 = sshll.u32 %s6035_s11, 4  ;;  %s6039_s20 = sld [smem:[#allocation67_spill]]  ;;  %s697_s27 = int_to_ptr.hbm [resolvable:$true] %s696_s27 }
  0x3b   : > { %3895 = dma.hbm_to_vmem [thread:$0]  (!%p5052_p5), %s671_s18, 256, %s673_s7, [#allocation15], %s4856_s19, %s4856_s19, %s4857_s21  }
  0x3c   : > { %s722_s23 = sshll.u32 %s6036_s13, 4  ;;  %s748_s2 = sshll.u32 %s6037_s15, 4  ;;  %s723_s23 = int_to_ptr.hbm [resolvable:$true] %s722_s23  ;;  %s749_s2 = int_to_ptr.hbm [resolvable:$true] %s748_s2 }
  0x3d   : > { %3901 = dma.hbm_to_vmem [thread:$0]  (!%p5052_p5), %s697_s27, 256, %s699_s28, [#allocation18], %s4856_s19, %s4856_s19, %s4857_s21  }
  0x3e   : > { %s724_s18 = sshll.u32 %s4861_s6, 4  ;;  %s4862_s7 = smov [#allocation23]   ;;  %s725_s18 = int_to_ptr.vmem [resolvable:$true] %s724_s18 }
  0x3f   : > { %3907 = dma.hbm_to_vmem [thread:$0]  (!%p5052_p5), %s723_s23, 256, %s725_s18, [#allocation21], %s4856_s19, %s4856_s19, %s4857_s21  }
  0x40   : > { %s750_s22 = sshll.u32 %s4862_s7, 4  ;;  %s774_s28 = sshll.u32 %s6038_s17, 4  ;;  %s751_s22 = int_to_ptr.vmem [resolvable:$true] %s750_s22  ;;  %s775_s28 = int_to_ptr.hbm [resolvable:$true] %s774_s28 }
  0x41   : > { %3913 = dma.hbm_to_vmem [thread:$0]  (!%p5052_p5), %s749_s2, 256, %s751_s22, [#allocation24], %s4856_s19, %s4856_s19, %s4857_s21  }
  0x42   : > { %s804_s16 = sshll.u32 %s6039_s20, 4  ;;  %s4863_s25 = smov [#allocation26]   ;;  %s805_s16 = int_to_ptr.hbm [resolvable:$true] %s804_s16 }
  0x43   : > { %s776_s6 = sshll.u32 %s4863_s25, 4  ;;  %s4864_s18 = smov [#allocation29]   ;;  %s777_s6 = int_to_ptr.vmem [resolvable:$true] %s776_s6 }
  0x44   : > { %3919 = dma.hbm_to_vmem [thread:$0]  (!%p5052_p5), %s775_s28, 256, %s777_s6, [#allocation27], %s4856_s19, %s4856_s19, %s4857_s21  }
  0x45   : > { %s806_s2 = sshll.u32 %s4864_s18, 4  ;;  %s3643_s7 = sadd.s32 4294967294, %s4853_s1   ;;  %s807_s2 = int_to_ptr.vmem [resolvable:$true] %s806_s2 }
  0x46   : > { %3925 = dma.hbm_to_vmem [thread:$0]  (!%p5052_p5), %s805_s16, 16, %s807_s2, [#allocation30]  }
  0x47   : > { %s62_s22 = sadd.s32 1, %s4849_s5  ;;  %s97_s3 = sadd.s32 1, %s4841_s24 }
  0x48   : > { %p64_p7 = scmp.ge.s32.totalorder %s62_s22, 2  ;;  %p104_p8 = scmp.ne.s32.totalorder %s4841_s24, %s4837_s30 }
  0x49   : > { %p105_p9 = scmp.eq.s32.totalorder %s4853_s1, 0  ;;  %p110_p11 = scmp.ne.s32.totalorder %s4837_s30, %s4833_s4 }
  0x4a   : > { %s6075_s22 = smov (%p64_p7, %s62_s22), 0  ;;  %p594_p12 = scmp.eq.s32.totalorder %s5036_s26, 1 }
  0x4b   : > { %6040 = sst [smem:[#allocation46_spill]] %s6075_s22  ;;  %p5123_p10 = por %p105_p9, %p104_p8 }
  0x4c   : > { %s94_s21 = ssub.s32 %s4849_s5, %s6075_s22  ;;  %p5134_p0 = por %p111_p1, %p110_p11 }
  0x4d   : > { %p95_p13 = scmp.eq.s32.totalorder %s94_s21, 0  ;;  %p5138_p2 = por %p594_p12, %p104_p8 }
  0x4e   : > { %p600_p4 = scmp.eq.s32.totalorder %s3643_s7, 1  ;;  %p3959_p9 = scmp.lt.s32.totalorder %s4853_s1, 2 }
  0x4f   : > { %s5143_s29 = scalar_select %p95_p13, %s4841_s24, %s97_s3  }
  0x50   : > { %p5145_p7 = por %p600_p4, %p110_p11  ;;  %s5151_s16 = sand.u32 1, %s4841_s24  }
  0x51   : > { %6044 = sst [smem:[#allocation47_spill]] %s5143_s29  ;;  %s6003_s25 = sshll.u32 %s4849_s5, 3 }
  0x52   : > { %s6004_s6 = sshll.u32 %s5151_s16, 3  ;;  %p5157_p6 = pnand %p3959_p9, %p5123_p10 }
  0x53   : > { %s869_s2 = sand.u32 1, %s4853_s1   ;;  %s6047_s21 = sld [smem:[#allocation51_spill]] }
  0x54   : > { %s873_s11 = scalar_lea.vmem [#allocation5], %s6004_s6  ;;  %s6048_s20 = sld [smem:[#allocation54_spill]] }
  0x55   : > { %s882_s13 = sshll.u32 %s873_s11, 4  ;;  %s5172_s29 = scalar_lea.sflag [#allocation6], %s869_s2  ;;  %s883_s13 = int_to_ptr.vmem [resolvable:$true] %s882_s13 }
  0x56   : > { %s4865_s7 = smov [#allocation10]   ;;  %s6049_s8 = sld [smem:[#allocation56_spill]] }
  0x57   : > { %s635_s3 = sshll.u32 %s4865_s7, 4  ;;  %s6050_s10 = sld [smem:[#allocation58_spill]]  ;;  %s636_s3 = int_to_ptr.vmem [resolvable:$true] %s635_s3 }
  0x58   : > { %s4866_s2 = smov [#allocation13]   ;;  %s6051_s12 = sld [smem:[#allocation60_spill]] }
  0x59   : > { %s878_s9 = scalar_lea.hbm %s6047_s21, %s6003_s25  ;;  %s661_s19 = sshll.u32 %s4866_s2, 4  ;;  %s662_s19 = int_to_ptr.vmem [resolvable:$true] %s661_s19 }
  0x5a   : > { %s880_s15 = sshll.u32 %s878_s9, 4  ;;  %s633_s22 = sshll.u32 %s6048_s20, 4  ;;  %s881_s15 = int_to_ptr.hbm [resolvable:$true] %s880_s15  ;;  %s634_s22 = int_to_ptr.hbm [resolvable:$true] %s633_s22 }
  0x5b   : > { %3935 = dma.hbm_to_vmem [thread:$0]  (!%p5157_p6), %s881_s15, 128, %s883_s13, %s5172_s29  }
  0x5c   : > { %s659_s9 = sshll.u32 %s6049_s8, 4  ;;  %s4867_s13 = smov [#allocation16]   ;;  %s660_s9 = int_to_ptr.hbm [resolvable:$true] %s659_s9 }
  0x5d   : > { %3886 = dma.hbm_to_vmem [thread:$0]  (!%p5052_p5), %s634_s22, 16, %s636_s3, [#allocation9]  }
  0x5e   : > { %s685_s20 = sshll.u32 %s6050_s10, 4  ;;  %s687_s15 = sshll.u32 %s4867_s13, 4  ;;  %s686_s20 = int_to_ptr.hbm [resolvable:$true] %s685_s20  ;;  %s688_s15 = int_to_ptr.vmem [resolvable:$true] %s687_s15 }
  0x5f   : > { %3892 = dma.hbm_to_vmem [thread:$0]  (!%p5052_p5), %s660_s9, 16, %s662_s19, [#allocation12]  }
  0x60   : > { %s711_s21 = sshll.u32 %s6051_s12, 4  ;;  %s737_s11 = sshll.u32 %s5987_s14, 4  ;;  %s712_s21 = int_to_ptr.hbm [resolvable:$true] %s711_s21  ;;  %s738_s11 = int_to_ptr.hbm [resolvable:$true] %s737_s11 }
  0x61   : > { %3898 = dma.hbm_to_vmem [thread:$0]  (!%p5052_p5), %s686_s20, 16, %s688_s15, [#allocation15]  }
  0x62   : > { %s4868_s17 = smov [#allocation19]   ;;  %s4869_s9 = smov [#allocation22]  }
  0x63   : > { %s713_s2 = sshll.u32 %s4868_s17, 4  ;;  %s739_s19 = sshll.u32 %s4869_s9, 4  ;;  %s714_s2 = int_to_ptr.vmem [resolvable:$true] %s713_s2  ;;  %s740_s19 = int_to_ptr.vmem [resolvable:$true] %s739_s19 }
  0x64   : > { %3904 = dma.hbm_to_vmem [thread:$0]  (!%p5052_p5), %s712_s21, 16, %s714_s2, [#allocation18]  }
  0x65   : > { %s6052_s7 = sld [smem:[#allocation63_spill]]  ;;  %s4870_s17 = smov [#allocation25]  }
  0x66   : > { %3910 = dma.hbm_to_vmem [thread:$0]  (!%p5052_p5), %s738_s11, 16, %s740_s19, [#allocation21]  }
  0x67   : > { %s6053_s22 = sld [smem:[#allocation65_spill]]  ;;  %s765_s8 = sshll.u32 %s4870_s17, 4  ;;  %s766_s8 = int_to_ptr.vmem [resolvable:$true] %s765_s8 }
  0x68   : > { %s4871_s21 = smov [#allocation28]   ;;  %s6054_s25 = sld [smem:[#allocation69_spill]] }
  0x69   : > { %s791_s2 = sshll.u32 %s4871_s21, 4  ;;  %s4872_s19 = smov [#allocation31]   ;;  %s792_s2 = int_to_ptr.vmem [resolvable:$true] %s791_s2 }
  0x6a   : > { %s6055_s20 = sshll.u32 %s4849_s5, 3  ;;  %s6057_s21 = sshll.u32 %s5151_s16, 3 }
  0x6b   : > { %s763_s6 = sshll.u32 %s6052_s7, 4  ;;  %s821_s7 = sshll.u32 %s4872_s19, 4  ;;  %s764_s6 = int_to_ptr.hbm [resolvable:$true] %s763_s6  ;;  %s822_s7 = int_to_ptr.vmem [resolvable:$true] %s821_s7 }
  0x6c   : > { %3916 = dma.hbm_to_vmem [thread:$0]  (!%p5052_p5), %s764_s6, 16, %s766_s8, [#allocation24]  }
  0x6d   : > { %s789_s3 = sshll.u32 %s6053_s22, 4  ;;  %s6056_s6 = sld [smem:[#allocation49_spill]]  ;;  %s790_s3 = int_to_ptr.hbm [resolvable:$true] %s789_s3 }
  0x6e   : > { %s819_s11 = sshll.u32 %s6054_s25, 4  ;;  %s846_s9 = scalar_lea.vmem [#allocation2], %s6057_s21  ;;  %s820_s11 = int_to_ptr.hbm [resolvable:$true] %s819_s11 }
  0x6f   : > { %3922 = dma.hbm_to_vmem [thread:$0]  (!%p5052_p5), %s790_s3, 16, %s792_s2, [#allocation27]  }
  0x70   : > { %3928 = dma.hbm_to_vmem [thread:$0]  (!%p5052_p5), %s820_s11, 64, %s822_s7, [#allocation30]  }
  0x71   : > { %s854_s13 = sshll.u32 %s846_s9, 4  ;;  %s843_s25 = scalar_lea.sflag [#allocation3], %s5151_s16  ;;  %s855_s13 = int_to_ptr.vmem [resolvable:$true] %s854_s13 }
  0x72   : > { %s6058_s19 = sld [smem:[#allocation52_spill]]  ;;  %s892_s15 = scalar_lea.vmem [#allocation7], %s5151_s16 }
  0x73   : > { %s850_s22 = scalar_lea.hbm %s6056_s6, %s6055_s20  ;;  %s899_s8 = sshll.u32 %s892_s15, 4  ;;  %s900_s8 = int_to_ptr.vmem [resolvable:$true] %s899_s8 }
  0x74   : > { %s852_s17 = sshll.u32 %s850_s22, 4  ;;  %s5235_s11 = sand.u32 (!%p5044_p3), 1, %s4837_s30   ;;  %s853_s17 = int_to_ptr.hbm [resolvable:$true] %s852_s17 }
  0x75   : > { %3932 = dma.hbm_to_vmem [thread:$0]  (!%p5157_p6), %s853_s17, 128, %s855_s13, %s843_s25  }
  0x76   : > { %908 = sbr.rel (%p5044_p3) target bundleno = 3457 (0xd81), region = 112  ;;  %s5238_s7 = sshll.u32 (!%p5044_p3), %s5235_s11, 3 }
  0x77   : > { %s911_s20 = scalar_lea.sflag (!%p5044_p3), [#allocation3], %s5235_s11 }
  0x78   : > { %s895_s10 = scalar_lea.hbm %s6058_s19, %s4849_s5 }
  0x79   : > { %s897_s12 = sshll.u32 %s895_s10, 4  ;;  %s914_s10 = scalar_lea.vmem (!%p5044_p3), [#allocation2], %s5238_s7  ;;  %s898_s12 = int_to_ptr.hbm [resolvable:$true] %s897_s12 }
  0x7a   : > { %3938 = dma.hbm_to_vmem [thread:$0]  (!%p5157_p6), %s898_s12, 16, %s900_s8, %s5172_s29  }
  0x7b   : > { %4788 = dma.done.wait (%p5134_p0), %s911_s20, 128  }
  0x7c   : > { %4790 = vsyncadd (%p5134_p0), %s911_s20, 4294967168  ;;  %s920_s12 = sand.u32 1, %s5036_s26   ;;  %s924_s16 = scalar_lea.vmem [#allocation5], %s5238_s7 }
  0x7d   : > { %s921_s29 = scalar_lea.sflag [#allocation6], %s920_s12 }
  0x7e   : > { %4792 = dma.done.wait (%p5134_p0), %s921_s29, 144  }
  0x7f   : > { %4794 = vsyncadd (%p5134_p0), %s921_s29, 4294967152  ;;  %s933_s18 = scalar_lea.vmem [#allocation7], %s5235_s11 }
  0x80   : > { %4796 = dma.done.wait (%p111_p1), [#allocation9], 272  }
  0x81   : > { %4798 = vsyncadd (%p111_p1), [#allocation9], 4294967024 }
  0x82   : > { %4800 = dma.done.wait (%p111_p1), [#allocation12], 272  }
  0x83   : > { %4802 = vsyncadd (%p111_p1), [#allocation12], 4294967024 }
  0x84   : > { %4804 = dma.done.wait (%p111_p1), [#allocation15], 272  }
  0x85   : > { %4806 = vsyncadd (%p111_p1), [#allocation15], 4294967024 }
  0x86   : > { %4808 = dma.done.wait (%p111_p1), [#allocation18], 272  }
  0x87   : > { %4810 = vsyncadd (%p111_p1), [#allocation18], 4294967024 }
  0x88   : > { %4812 = dma.done.wait (%p111_p1), [#allocation21], 272  }
  0x89   : > { %4814 = vsyncadd (%p111_p1), [#allocation21], 4294967024 }
  0x8a   : > { %4816 = dma.done.wait (%p111_p1), [#allocation24], 272  }
  0x8b   : > { %4818 = vsyncadd (%p111_p1), [#allocation24], 4294967024 }
  0x8c   : > { %4820 = dma.done.wait (%p111_p1), [#allocation27], 272  }
  0x8d   : > { %4822 = vsyncadd (%p111_p1), [#allocation27], 4294967024 }
  0x8e   : > { %4824 = dma.done.wait (%p111_p1), [#allocation30], 80  }
  0x8f   : > { %4826 = vsyncadd (%p111_p1), [#allocation30], 4294967216  ;;  %s6060_s27 = sld [smem:[#allocation44_spill]]  ;;  %vm1123_vm0 = vcmask 261120   ;;  %v1112_v0 = vld [vmem:[%s914_s10] sm:$0xff]  ;;  %v4873_v4 = vmov 32.0  }
  0x90   : > { %s6061_s9 = sld [smem:[#allocation48_spill]]  ;;  %v1180_v1 = vsel %vm1123_vm0, %v1112_v0, 0.0  ;;  %4108 = vrcp.f32 %v4873_v4  ;;  %v4874_v21 = vmov 31.0   ;;  %v3793_v28 = vld [vmem:[#allocation11 + $0x8] sm:$0xff]  ;;  %v3792_v30 = vld [vmem:[#allocation11] sm:$0xff]  ;;  %v3791_v40 = vld [vmem:[#allocation8 + $0x8] sm:$0xff] }
  0x91   : > { %1181 = vadd.xlane.f32.xlu0 %v1180_v1  ;;  %4110 = vrcp.f32 %v4874_v21  ;;  %1287 = vmatpush.bf16.msra.mxu1 %v3793_v28  ;;  %v3790_v43 = vld [vmem:[#allocation8] sm:$0xff]  ;;  %s6062_s3 = sld [smem:[#allocation68_spill]]  ;;  %s4875_s2 = smov 120   ;;  %vm1310_vm15 = vcmask 1047556  }
  0x92   : > { %1250 = vmatpush.bf16.msra.mxu0 %v3791_v40  ;;  %s4876_s19 = smov 104   ;;  %s4877_s15 = smov 112  }
  0x93   : > { %s4881_s8 = smov 96   ;;  %s4882_s0 = smov 16  }
  0x94   : > { %s4883_s20 = smov 8   ;;  %s4884_s10 = smov 24  }
  0x95   : > { %p1098_p3 = scmp.lt.s32.totalorder %s6060_s27, 1  ;;  %1288 = vmatpush.bf16.msra.mxu1 %v3792_v30 }
  0x96   : > { %v4109_v5 = vpop.eup %4108  ;;  %1251 = vmatpush.bf16.msra.mxu0 %v3790_v43 }
  0x97   : > { %s5287_s6 = scalar_select %p1098_p3, %s6060_s27, 1  ;;  %v1128_v6 = vmul.f32 32.0, %v4109_v5  ;;  %vm1132_vm1 = vweird.f32 %v4109_v5  ;;  %v4111_v22 = vpop.eup %4110  ;;  %v1115_v59 = vld [vmem:[%s6062_s3] sm:$0x7] }
  0x98   : > { %v1141_v23 = vmul.f32 31.0, %v4111_v22  ;;  %vm1145_vm2 = vweird.f32 %v4111_v22  ;;  %v1160_v62 = vperm.slane %v1115_v59, 0 }
  0x99   : > { %s3686_s22 = sshll.u32 %s5287_s6, 3  ;;  %v1129_v7 = vsub.f32 1.0, %v1128_v6  ;;  %s3789_s12 = sshll.u32 %s5287_s6, 4 }
  0x9a   : > { %s5293_s13 = scalar_lea.vmem %s6061_s9, %s3686_s22  ;;  %v1142_v24 = vsub.f32 1.0, %v1141_v23  ;;  %s6063_s22 = sld [smem:[#allocation50_spill]] }
  0x9b   : > { %v1111_v2 = vld [vmem:[%s5293_s13] sm:$0xff]  ;;  %v1130_v8 = vmul.f32 %v4109_v5, %v1129_v7 }
  0x9c   : > { %v1124_v3 = vsel %vm1123_vm0, %v1111_v2, 0.0  ;;  %v1143_v25 = vmul.f32 %v4111_v22, %v1142_v24 }
  0x9d   : > { %1125 = vadd.xlane.f32.xlu0 %v1124_v3  ;;  %v1131_v9 = vadd.f32 %v4109_v5, %v1130_v8 }
  0x9e   : > { %v1144_v26 = vadd.f32 %v4111_v22, %v1143_v25 }
  0x9f   : > { %v5298_v10 = vsel %vm1132_vm1, %v4109_v5, %v1131_v9  ;;  %vm1670_vm1 = vcmask 64512  }
  0xa0   : > { %v5312_v27 = vsel %vm1145_vm2, %v4111_v22, %v1144_v26  ;;  %s1109_s17 = scalar_lea.vmem %s6063_s22, %s3789_s12 }
 0x104   : > { %v1182_v11 = vpop.xlane.xlu0 %1181 }
 0x105   : > { %v1183_v12 = vmul.f32 %v1182_v11, %v5298_v10 }
 0x107   : > { %v5301_v13 = vsub.f32 %v1112_v0, %v1183_v12 }
 0x109   : > { %v1185_v14 = vmul.f32 %v5301_v13, %v5301_v13  ;;  %v1202_v5 = vmul.f32 %v5301_v13, %v1160_v62 }
 0x10b   : > { %v1186_v15 = vsel %vm1123_vm0, %v1185_v14, 0.0 }
 0x10c   : > { %1187 = vadd.xlane.f32.xlu1 %v1186_v15 }
 0x110   : > { %v1126_v16 = vpop.xlane.xlu0 %1125 }
 0x111   : > { %v1134_v17 = vmul.f32 %v5298_v10, %v1126_v16 }
 0x113   : > { %v5307_v18 = vsub.f32 %v1111_v2, %v1134_v17  ;;  %v1116_v2 = vld [vmem:[#allocation31] sm:$0x7] }
 0x114   : > { %v1178_v7 = vperm.slane %v1116_v2, 0 }
 0x115   : > { %v1136_v19 = vmul.f32 %v5307_v18, %v5307_v18  ;;  %v1161_v13 = vmul.f32 %v1160_v62, %v5307_v18  ;;  %v4101_v18 = vld [vmem:[#allocation10] ss:$0 sm:$0xff] }
 0x117   : > { %v1137_v20 = vsel %vm1123_vm0, %v1136_v19, 0.0 }
 0x118   : > { %1138 = vadd.xlane.f32.xlu1 %v1137_v20 }
 0x17f   : > { %v1188_v29 = vpop.xlane.xlu1 %1187 }
 0x180   : > { %v1189_v31 = vmul.f32 %v1188_v29, %v5312_v27  ;;  %v4100_v29 = vld [vmem:[#allocation13] ss:$0 sm:$0xff] }
 0x182   : > { %4112 = vrsqrt.f32 %v1189_v31  ;;  %vm1197_vm3 = vcmp.eq.f32.partialorder %v1189_v31, inf  ;;  %v1200_v46 = vand.u32 2147483648, %v1189_v31  ;;  %vm1199_vm4 = vcmp.eq.f32.partialorder %v1189_v31, 0.0 }
 0x188   : > { %v4113_v33 = vpop.eup %4112 }
 0x189   : > { %v1191_v35 = vmul.f32 %v4113_v33, %v1189_v31 }
 0x18b   : > { %v1139_v32 = vpop.xlane.xlu1 %1138  ;;  %v1192_v36 = vmul.f32 %v4113_v33, %v1191_v35 }
 0x18c   : > { %v1147_v34 = vmul.f32 %v5312_v27, %v1139_v32 }
 0x18d   : > { %v1193_v37 = vmul.f32 0.5, %v1192_v36 }
 0x18e   : > { %4114 = vrsqrt.f32 %v1147_v34  ;;  %vm1155_vm5 = vcmp.eq.f32.partialorder %v1147_v34, inf  ;;  %v1158_v54 = vand.u32 2147483648, %v1147_v34  ;;  %vm1157_vm6 = vcmp.eq.f32.partialorder %v1147_v34, 0.0 }
 0x18f   : > { %v1194_v38 = vsub.f32 1.5, %v1193_v37 }
 0x191   : > { %v1195_v41 = vmul.f32 %v4113_v33, %v1194_v38  ;;  %v4878_v38 = vmov 1983009808  }
 0x193   : > { %v1196_v44 = vmul.f32 %v1195_v41, %v1189_v31 }
 0x194   : > { %v4115_v39 = vpop.eup %4114 }
 0x195   : > { %v1149_v42 = vmul.f32 %v4115_v39, %v1147_v34  ;;  %v1198_v47 = vsel %vm1197_vm3, %v1189_v31, %v1196_v44  ;;  %vm1810_vm3 = vcmask 1043456  }
 0x196   : > { %v1201_v49 = vsel %vm1199_vm4, %v1200_v46, %v1198_v47  ;;  %v4879_v47 = vmov 1934713408   ;;  %vm2007_vm4 = vcmask 130048  }
 0x197   : > { %v1150_v45 = vmul.f32 %v4115_v39, %v1149_v42  ;;  %v1203_v51 = vadd.f32 1e-06, %v1201_v49 }
 0x199   : > { %v1151_v48 = vmul.f32 0.5, %v1150_v45  ;;  %4116 = vrcp.f32 %v1203_v51  ;;  %v1215_v63 = vand.u32 2147483648, %v1203_v51  ;;  %v1213_v1 = vand.u32 2147483647, %v1203_v51 }
 0x19a   : > { %vm1209_vm8 = vweird.f32 %v1203_v51 }
 0x19b   : > { %v1152_v50 = vsub.f32 1.5, %v1151_v48  ;;  %v1216_v6 = vor.u32 1.1754944e-38, %v1215_v63  ;;  %vm1214_vm10 = vcmp.eq.f32.partialorder %v1213_v1, 8.507059e+37  ;;  %v1339_v48 = vunpack.c.l.s4 %v4879_v47 }
 0x19d   : > { %v1153_v52 = vmul.f32 %v4115_v39, %v1152_v50  ;;  %v1315_v39 = vunpack.c.l.s4 %v4878_v38 }
 0x19f   : > { %v1154_v53 = vmul.f32 %v1153_v52, %v1147_v34  ;;  %v4117_v57 = vpop.eup %4116  ;;  %v5340_v42 = vunpack.c.0.s8 %v1315_v39 }
 0x1a0   : > { %v1205_v60 = vmul.f32 %v4117_v57, %v1203_v51  ;;  %vm1210_vm7 = vweird.f32 %v4117_v57 }
 0x1a1   : > { %v1156_v55 = vsel %vm1155_vm5, %v1147_v34, %v1154_v53  ;;  %vm1211_vm9 = vmor %vm1209_vm8, %vm1210_vm7  ;;  %vm2009_vm5 = vcmask 195584  }
 0x1a2   : > { %v1159_v56 = vsel %vm1157_vm6, %v1158_v54, %v1156_v55  ;;  %v1206_v61 = vsub.f32 1.0, %v1205_v60 }
 0x1a3   : > { %v1162_v58 = vadd.f32 1e-06, %v1159_v56  ;;  %v5353_v56 = vunpack.c.0.s8 %v1339_v48 }
 0x1a4   : > { %v1207_v0 = vmul.f32 %v4117_v57, %v1206_v61 }
 0x1a5   : > { %4118 = vrcp.f32 %v1162_v58  ;;  %v1174_v15 = vand.u32 2147483648, %v1162_v58  ;;  %v1172_v19 = vand.u32 2147483647, %v1162_v58  ;;  %vm1168_vm12 = vweird.f32 %v1162_v58 }
 0x1a6   : > { %v1208_v3 = vadd.f32 %v4117_v57, %v1207_v0 }
 0x1a7   : > { %v1175_v22 = vor.u32 1.1754944e-38, %v1174_v15  ;;  %vm1173_vm14 = vcmp.eq.f32.partialorder %v1172_v19, 8.507059e+37 }
 0x1a8   : > { %v1212_v8 = vsel %vm1211_vm9, %v4117_v57, %v1208_v3 }
 0x1a9   : > { %v1217_v11 = vsel %vm1214_vm10, %v1216_v6, %v1212_v8 }
 0x1aa   : > { %v1218_v12 = vmul.f32 %v1217_v11, %v1202_v5 }
 0x1ab   : > { %v4119_v4 = vpop.eup %4118 }
 0x1ac   : > { %v1164_v9 = vmul.f32 %v4119_v4, %v1162_v58  ;;  %v1219_v16 = vadd.f32 %v1218_v12, %v1178_v7  ;;  %vm1169_vm11 = vweird.f32 %v4119_v4 }
 0x1ad   : > { %vm1170_vm13 = vmor %vm1168_vm12, %vm1169_vm11 }
 0x1ae   : > { %v1165_v14 = vsub.f32 1.0, %v1164_v9  ;;  %v1257_v20 = vpack.c.bf16 %v1219_v16, %v1219_v16 }
 0x1b0   : > { %v1166_v17 = vmul.f32 %v4119_v4, %v1165_v14  ;;  %3706 = vmatmul.msk.bf16.vlgmr.msra.gmra.mxu1 %vm1123_vm0, %v1257_v20 }
 0x1b2   : > { %v1167_v21 = vadd.f32 %v4119_v4, %v1166_v17 }
 0x1b4   : > { %v1171_v23 = vsel %vm1170_vm13, %v4119_v4, %v1167_v21 }
 0x1b5   : > { %v1176_v24 = vsel %vm1173_vm14, %v1175_v22, %v1171_v23 }
 0x1b6   : > { %v1177_v25 = vmul.f32 %v1176_v24, %v1161_v13 }
 0x1b8   : > { %v1179_v26 = vadd.f32 %v1178_v7, %v1177_v25 }
 0x1ba   : > { %v1220_v28 = vpack.c.bf16 %v1179_v26, %v1179_v26 }
 0x1bc   : > { %3697 = vmatmul.msk.bf16.vlgmr.msra.gmra.mxu0 %vm1123_vm0, %v1220_v28 }
 0x22d   : > { %v1290_v30 = vpop.f32.mrf.mxu1 }
 0x22e   : > { %v5323_v31 = vadd.f32 %v4100_v29, %v1290_v30 }
 0x230   : > { %1421 = vrot.lane.b32.xlu2 %v5323_v31, %s4875_s2  ;;  %1427 = vrot.lane.b32.xlu0 %v5323_v31, %s4876_s19  ;;  %v1432_v41 = vrot.slane %v5323_v31, 4 }
 0x235   : > { %v1292_v33 = vpop.f32.mrf.mxu1 }
 0x238   : > { %1424 = vrot.lane.b32.xlu2 %v5323_v31, %s4877_s15 }
 0x239   : > { %v1253_v32 = vpop.f32.mrf.mxu0 }
 0x23a   : > { %v1254_v34 = vadd.f32 %v4101_v18, %v1253_v32 }
 0x23c   : > { %1300 = vrot.lane.b32.xlu1 %v1254_v34, %s4875_s2  ;;  %v1312_v50 = vrot.slane %v1254_v34, 4 }
 0x240   : > { %1303 = vrot.lane.b32.xlu2 %v1254_v34, %s4877_s15 }
 0x241   : > { %v1255_v35 = vpop.f32.mrf.mxu0 }
 0x248   : > { %1306 = vrot.lane.b32.xlu2 %v1254_v34, %s4876_s19 }
 0x28a   : > { %v5334_v36 = vpop.permute.xlu2 %1421 }
 0x28b   : > { %v1444_v51 = vrot.slane %v5334_v36, 4 }
 0x292   : > { %v5336_v37 = vpop.permute.xlu2 %1424 }
 0x293   : > { %v1430_v40 = vrot.slane %v5336_v37, 4  ;;  %v1433_v44 = vsel %vm1310_vm15, %v5336_v37, %v1432_v41 }
 0x294   : > { %v1441_v49 = vperm.slane %v1433_v44, %v5340_v42 }
 0x295   : > { %v1431_v45 = vsel %vm1310_vm15, %v1430_v40, %v5323_v31 }
 0x296   : > { %v1437_v52 = vperm.slane %v1431_v45, %v5340_v42  ;;  %v1468_v59 = vrot.slane %v1441_v49, 4 }
 0x298   : > { %v1456_v61 = vrot.slane %v1437_v52, 4 }
 0x29a   : > { %v1304_v43 = vpop.permute.xlu2 %1303 }
 0x29b   : > { %v1309_v46 = vrot.slane %v1304_v43, 4  ;;  %v1313_v53 = vsel %vm1310_vm15, %v1304_v43, %v1312_v50 }
 0x29c   : > { %v1321_v62 = vperm.slane %v1313_v53, %v5340_v42 }
 0x29d   : > { %v1311_v55 = vsel %vm1310_vm15, %v1309_v46, %v1254_v34 }
 0x29e   : > { %v1317_v0 = vperm.slane %v1311_v55, %v5340_v42  ;;  %v1348_v15 = vrot.slane %v1321_v62, 4 }
 0x2a0   : > { %v1336_v14 = vrot.slane %v1317_v0, 4 }
 0x2a2   : > { %v5350_v54 = vpop.permute.xlu0 %1427  ;;  %v1307_v4 = vpop.permute.xlu2 %1306 }
 0x2a3   : > { %v1442_v57 = vrot.slane %v5350_v54, 4  ;;  %v1445_v58 = vsel %vm1310_vm15, %v5350_v54, %v1444_v51  ;;  %v1322_v16 = vrot.slane %v1307_v4, 4 }
 0x2a4   : > { %v1453_v60 = vperm.slane %v1445_v58, %v5340_v42 }
 0x2a5   : > { %v1443_v63 = vsel %vm1310_vm15, %v1442_v57, %v5334_v36 }
 0x2a6   : > { %v1449_v1 = vperm.slane %v1443_v63, %v5340_v42  ;;  %v1466_v2 = vrot.slane %v1453_v60, 4  ;;  %v1469_v3 = vsel %vm1310_vm15, %v1453_v60, %v1468_v59 }
 0x2a7   : > { %v1477_v5 = vperm.slane %v1469_v3, %v5353_v56 }
 0x2a8   : > { %v1454_v6 = vrot.slane %v1449_v1, 4  ;;  %v1457_v7 = vsel %vm1310_vm15, %v1449_v1, %v1456_v61  ;;  %v1467_v8 = vsel %vm1310_vm15, %v1466_v2, %v1441_v49 }
 0x2a9   : > { %v1465_v9 = vperm.slane %v1457_v7, %v5353_v56  ;;  %v1473_v11 = vperm.slane %v1467_v8, %v5353_v56  ;;  %v1484_v12 = vrot.slane %v1477_v5, 4 }
 0x2aa   : > { %v1455_v17 = vsel %vm1310_vm15, %v1454_v6, %v1437_v52 }
 0x2ab   : > { %v1461_v20 = vperm.slane %v1455_v17, %v5353_v56  ;;  %v1480_v21 = vrot.slane %v1465_v9, 4  ;;  %v1482_v22 = vrot.slane %v1473_v11, 4  ;;  %v1485_v13 = vsel %vm1310_vm15, 0.0, %v1484_v12 }
 0x2ac   : > { %v1497_v23 = vsel %vm1310_vm15, %v1484_v12, %v1473_v11  ;;  %v1502_v24 = vrot.slane %v1485_v13, 4 }
 0x2ad   : > { %v1481_v28 = vsel %vm1310_vm15, 0.0, %v1480_v21  ;;  %v1483_v29 = vsel %vm1310_vm15, 0.0, %v1482_v22  ;;  %v1501_v30 = vperm.slane %v1497_v23, %v5340_v42  ;;  %v1478_v34 = vrot.slane %v1461_v20, 4 }
 0x2ae   : > { %v1301_v19 = vpop.permute.xlu1 %1300  ;;  %v1491_v32 = vrot.slane %v1481_v28, 4  ;;  %v1486_v35 = vsel %vm1310_vm15, %v1480_v21, %v1461_v20  ;;  %v1503_v45 = vsel %vm1310_vm15, %v1502_v24, %v1483_v29 }
 0x2af   : > { %v1323_v25 = vsel %vm1310_vm15, %v1322_v16, %v1301_v19  ;;  %v1324_v26 = vrot.slane %v1301_v19, 4  ;;  %v1490_v41 = vperm.slane %v1486_v35, %v5340_v42  ;;  %v1479_v44 = vsel %vm1310_vm15, 0.0, %v1478_v34 }
 0x2b0   : > { %v1329_v18 = vperm.slane %v1323_v25, %v5340_v42  ;;  %v1522_v46 = vrot.slane %v1501_v30, 4  ;;  %v1492_v50 = vsel %vm1310_vm15, %v1491_v32, %v1479_v44  ;;  %v1507_v58 = vperm.slane %v1503_v45, %v5340_v42 }
 0x2b1   : > { %v1325_v33 = vsel %vm1310_vm15, %v1307_v4, %v1324_v26  ;;  %v1496_v55 = vperm.slane %v1492_v50, %v5340_v42  ;;  %v1510_v59 = vrot.slane %v1490_v41, 4 }
 0x2b2   : > { %v1333_v38 = vperm.slane %v1325_v33, %v5340_v42  ;;  %v1334_v39 = vrot.slane %v1329_v18, 4  ;;  %v1337_v40 = vsel %vm1310_vm15, %v1329_v18, %v1336_v14  ;;  %v1523_v4 = vsel %vm1310_vm15, %v1507_v58, %v1522_v46 }
 0x2b3   : > { %v1345_v43 = vperm.slane %v1337_v40, %v5353_v56  ;;  %v1511_v3 = vsel %vm1310_vm15, %v1496_v55, %v1510_v59  ;;  %v1531_v20 = vperm.slane %v1523_v4, %v5353_v56  ;;  %v1508_v21 = vrot.slane %v1496_v55, 4 }
 0x2b4   : > { %v1335_v47 = vsel %vm1310_vm15, %v1334_v39, %v1317_v0  ;;  %v1346_v48 = vrot.slane %v1333_v38, 4  ;;  %v1349_v49 = vsel %vm1310_vm15, %v1333_v38, %v1348_v15  ;;  %v1519_v12 = vperm.slane %v1511_v3, %v5353_v56 }
 0x2b5   : > { %v1341_v51 = vperm.slane %v1335_v47, %v5353_v56  ;;  %v1357_v52 = vperm.slane %v1349_v49, %v5353_v56  ;;  %v1360_v53 = vrot.slane %v1345_v43, 4  ;;  %v1520_v22 = vrot.slane %v1507_v58, 4 }
 0x2b6   : > { %v1347_v57 = vsel %vm1310_vm15, %v1346_v48, %v1321_v62  ;;  %v1538_v13 = vrot.slane %v1519_v12, 4  ;;  %v1536_v26 = vrot.slane %v1531_v20, 4  ;;  %v1509_v28 = vsel %vm1310_vm15, %v1508_v21, %v1490_v41 }
 0x2b7   : > { %v1353_v60 = vperm.slane %v1347_v57, %v5353_v56  ;;  %v1358_v61 = vrot.slane %v1341_v51, 4  ;;  %v1361_v63 = vsel %vm1310_vm15, 0.0, %v1360_v53  ;;  %v1364_v0 = vrot.slane %v1357_v52, 4 }
 0x2b8   : > { %v1366_v1 = vsel %vm1310_vm15, %v1360_v53, %v1341_v51  ;;  %v1371_v2 = vrot.slane %v1361_v63, 4  ;;  %v1521_v29 = vsel %vm1310_vm15, %v1520_v22, %v1501_v30  ;;  %v1515_v32 = vperm.slane %v1509_v28, %v5353_v56 }
 0x2b9   : > { %v1359_v5 = vsel %vm1310_vm15, 0.0, %v1358_v61  ;;  %v1362_v62 = vrot.slane %v1353_v60, 4  ;;  %v1365_v6 = vsel %vm1310_vm15, 0.0, %v1364_v0  ;;  %v1370_v7 = vperm.slane %v1366_v1, %v5340_v42 }
 0x2ba   : > { %v1372_v8 = vsel %vm1310_vm15, %v1371_v2, %v1359_v5  ;;  %v1377_v9 = vsel %vm1310_vm15, %v1364_v0, %v1353_v60  ;;  %v1382_v11 = vrot.slane %v1365_v6, 4  ;;  %v1527_v33 = vperm.slane %v1521_v29, %v5353_v56 }
 0x2bb   : > { %v1363_v14 = vsel %vm1310_vm15, 0.0, %v1362_v62  ;;  %v1376_v15 = vperm.slane %v1372_v8, %v5340_v42  ;;  %v1381_v16 = vperm.slane %v1377_v9, %v5340_v42  ;;  %v1390_v17 = vrot.slane %v1370_v7, 4  ;;  %v1117_v8 = vld [vmem:[%s924_s16] sm:$0xff]  ;;  %s6065_s16 = sld [smem:[#allocation70_spill]] }
 0x2bc   : > { %v1383_v19 = vsel %vm1310_vm15, %v1382_v11, %v1363_v14  ;;  %v1539_v34 = vsel %vm1310_vm15, %v1531_v20, %v1538_v13  ;;  %v1537_v38 = vsel %vm1310_vm15, %v1536_v26, %v1519_v12  ;;  %v1532_v41 = vrot.slane %v1527_v33, 4 }
 0x2bd   : > { %v1387_v23 = vperm.slane %v1383_v19, %v5340_v42  ;;  %v1391_v24 = vsel %vm1310_vm15, %v1376_v15, %v1390_v17  ;;  %v1402_v25 = vrot.slane %v1381_v16, 4  ;;  %v1669_v39 = vpack.c.bf16 %v1539_v34, %v1539_v34 }
 0x2be   : > { %v1399_v18 = vperm.slane %v1391_v24, %v5353_v56  ;;  %v1668_v44 = vpack.c.bf16 %v1537_v38, %v1537_v38  ;;  %v1534_v45 = vrot.slane %v1515_v32, 4  ;;  %v1388_v30 = vrot.slane %v1376_v15, 4 }
 0x2bf   : > { %v1403_v35 = vsel %vm1310_vm15, %v1387_v23, %v1402_v25  ;;  %v1732_v46 = vsel %vm1670_vm1, %v1669_v39, 0  ;;  %v1400_v48 = vrot.slane %v1387_v23, 4  ;;  %v1533_v50 = vsel %vm1310_vm15, %v1532_v41, %v1515_v32 }
 0x2c0   : > { %v1411_v40 = vperm.slane %v1403_v35, %v5353_v56  ;;  %v1418_v43 = vrot.slane %v1399_v18, 4  ;;  %v1713_v49 = vsel %vm1670_vm1, %v1668_v44, 0  ;;  %1741 = vmatpush.bf16.xpose.msrb.mxu1 %v1732_v46  ;;  %v1535_v51 = vsel %vm1310_vm15, %v1527_v33, %v1534_v45 }
 0x2c1   : > { %1722 = vmatpush.bf16.xpose.msrb.mxu0 %v1713_v49  ;;  %v1666_v52 = vpack.c.bf16 %v1533_v50, %v1533_v50  ;;  %v1667_v53 = vpack.c.bf16 %v1535_v51, %v1535_v51  ;;  %v1389_v57 = vsel %vm1310_vm15, %v1388_v30, %v1370_v7  ;;  %v1401_v60 = vsel %vm1310_vm15, %v1400_v48, %v1381_v16 }
 0x2c2   : > { %v1416_v47 = vrot.slane %v1411_v40, 4  ;;  %v1419_v58 = vsel %vm1310_vm15, %v1411_v40, %v1418_v43  ;;  %v1395_v59 = vperm.slane %v1389_v57, %v5353_v56  ;;  %v1407_v0 = vperm.slane %v1401_v60, %v5353_v56 }
 0x2c3   : > { %v1675_v61 = vsel %vm1670_vm1, %v1666_v52, 0  ;;  %v1694_v63 = vsel %vm1670_vm1, %v1667_v53, 0  ;;  %v1665_v3 = vpack.c.bf16 %v1419_v58, %v1419_v58  ;;  %vm1118_vm2 = vcmp.eq.f32.partialorder %v1117_v8, 0.0 }
 0x2c4   : > { %v1417_v55 = vsel %vm1310_vm15, %v1416_v47, %v1399_v18  ;;  %1684 = vmatpush.bf16.xpose.msra.mxu2 %v1675_v61  ;;  %1703 = vmatpush.bf16.xpose.msra.mxu3 %v1694_v63  ;;  %v1414_v2 = vrot.slane %v1395_v59, 4  ;;  %v1412_v4 = vrot.slane %v1407_v0, 4  ;;  %v4880_v11 = vmov 0.0  }
 0x2c5   : > { %v1664_v1 = vpack.c.bf16 %v1417_v55, %v1417_v55  ;;  %v1119_v12 = vsel %vm1118_vm2, -1e+09, %v4880_v11  ;;  %v4055_v35 = vpack.i.bf16 %v5334_v36, %v5323_v31  ;;  %v4060_v38 = vpack.i.bf16 %v5350_v54, %v5336_v37 }
 0x2c6   : > { %v1415_v5 = vsel %vm1310_vm15, %v1407_v0, %v1414_v2  ;;  %v1413_v62 = vsel %vm1310_vm15, %v1412_v4, %v1395_v59 }
 0x2c7   : > { %3710 = vmatmul.msk.bf16.vlgmr.msrb.gmra.mxu1 %vm1670_vm1, %v1665_v3  ;;  %v1662_v6 = vpack.c.bf16 %v1413_v62, %v1413_v62  ;;  %v1663_v7 = vpack.c.bf16 %v1415_v5, %v1415_v5 }
 0x2c8   : > { %3709 = vmatmul.msk.bf16.vlgmr.msrb.gmra.mxu0 %vm1670_vm1, %v1664_v1 }
 0x2cb   : > { %3707 = vmatmul.msk.bf16.vlgmr.msra.gmra.mxu2 %vm1670_vm1, %v1662_v6  ;;  %3708 = vmatmul.msk.bf16.vlgmr.msra.gmra.mxu3 %vm1670_vm1, %v1663_v7 }
 0x344   : > { %v1743_v9 = vpop.f32.mrf.mxu1 }
 0x345   : > { %v1724_v14 = vpop.f32.mrf.mxu0  ;;  %v1750_v15 = vmul.f32 0.35355338, %v1743_v9 }
 0x346   : > { %v1749_v16 = vmul.f32 0.35355338, %v1724_v14 }
 0x347   : > { %v1754_v17 = vadd.f32 %v1750_v15, %v1119_v12 }
 0x348   : > { %v1753_v19 = vadd.f32 %v1749_v16, %v1119_v12 }
 0x349   : > { %v1764_v20 = vsel %vm1670_vm1, %v1754_v17, -inf }
 0x34a   : > { %1765 = vmax.xlane.f32.xlu2 %v1764_v20  ;;  %v1761_v21 = vsel %vm1670_vm1, %v1753_v19, -inf }
 0x34b   : > { %1762 = vmax.xlane.f32.xlu1 %v1761_v21 }
 0x34c   : > { %v1745_v22 = vpop.f32.mrf.mxu1 }
 0x34d   : > { %v1726_v13 = vpop.f32.mrf.mxu0 }
 0x34e   : > { %v1686_v23 = vpop.f32.mrf.mxu2  ;;  %v1705_v24 = vpop.f32.mrf.mxu3 }
 0x34f   : > { %v1747_v25 = vmul.f32 0.35355338, %v1686_v23  ;;  %v1748_v26 = vmul.f32 0.35355338, %v1705_v24 }
 0x351   : > { %v1752_v28 = vadd.f32 %v1748_v26, %v1119_v12  ;;  %v1751_v29 = vadd.f32 %v1747_v25, %v1119_v12 }
 0x353   : > { %v1758_v18 = vsel %vm1670_vm1, %v1752_v28, -inf  ;;  %v1755_v32 = vsel %vm1670_vm1, %v1751_v29, -inf }
 0x354   : > { %1759 = vmax.xlane.f32.xlu0 %v1758_v18  ;;  %1756 = vmax.xlane.f32.xlu2 %v1755_v32 }
 0x356   : > { %v1688_v33 = vpop.f32.mrf.mxu2  ;;  %v1707_v34 = vpop.f32.mrf.mxu3 }
 0x368   : > { %4056 = vrot.lane.b32.xlu0 %v4055_v35, %s4881_s8 }
 0x36c   : > { %4061 = vrot.lane.b32.xlu2 %v4060_v38, %s4881_s8 }
 0x3bd   : > { %v1766_v39 = vpop.xlane.xlu2 %1765 }
 0x3be   : > { %v1763_v40 = vpop.xlane.xlu1 %1762  ;;  %v1770_v54 = vsub.f32 %v1754_v17, %v1766_v39 }
 0x3bf   : > { %v1769_v43 = vsub.f32 %v1753_v19, %v1763_v40 }
 0x3c0   : > { %v1777_v51 = vmul.f32 1.442695, %v1770_v54 }
 0x3c1   : > { %v1775_v44 = vmul.f32 1.442695, %v1769_v43 }
 0x3c3   : > { %4120 = vpow2.f32 %v1775_v44 }
 0x3c7   : > { %v1757_v41 = vpop.xlane.xlu2 %1756  ;;  %v1760_v45 = vpop.xlane.xlu0 %1759 }
 0x3c8   : > { %v1767_v30 = vsub.f32 %v1751_v29, %v1757_v41  ;;  %v1768_v36 = vsub.f32 %v1752_v28, %v1760_v45 }
 0x3c9   : > { %v5453_v46 = vpop.eup %4120 }
 0x3ca   : > { %v1771_v47 = vmul.f32 1.442695, %v1767_v30  ;;  %v1785_v31 = vsel %vm1670_vm1, %v5453_v46, 0.0  ;;  %v1773_v37 = vmul.f32 1.442695, %v1768_v36 }
 0x3cb   : > { %1786 = vadd.xlane.f32.xlu0 %v1785_v31 }
 0x3cc   : > { %4122 = vpow2.f32 %v1771_v47 }
 0x3cd   : > { %4124 = vpow2.f32 %v1773_v37 }
 0x3ce   : > { %4126 = vpow2.f32 %v1777_v51 }
 0x3cf   : > { %v4062_v49 = vpop.permute.xlu2 %4061 }
 0x3d0   : > { %v4064_v52 = vunpack.i.h.bf16 %v4062_v49  ;;  %v4063_v53 = vunpack.i.l.bf16 %v4062_v49 }
 0x3d2   : > { %v5457_v48 = vpop.eup %4122  ;;  %v1564_v58 = vrot.slane %v4064_v52, 4  ;;  %v1552_v59 = vrot.slane %v4063_v53, 4 }
 0x3d3   : > { %v1779_v50 = vsel %vm1670_vm1, %v5457_v48, 0.0  ;;  %v5461_v55 = vpop.eup %4124 }
 0x3d4   : > { %1780 = vadd.xlane.f32.xlu1 %v1779_v50  ;;  %v1782_v63 = vsel %vm1670_vm1, %v5461_v55, 0.0  ;;  %v5471_v7 = vpop.eup %4126 }
 0x3d5   : > { %v1788_v23 = vsel %vm1670_vm1, %v5471_v7, 0.0 }
 0x3da   : > { %v4057_v57 = vpop.permute.xlu0 %4056 }
 0x3db   : > { %v4059_v60 = vunpack.i.h.bf16 %v4057_v57  ;;  %v4058_v61 = vunpack.i.l.bf16 %v4057_v57 }
 0x3dc   : > { %1783 = vadd.xlane.f32.xlu1 %v1782_v63 }
 0x3dd   : > { %v1566_v0 = vrot.slane %v4059_v60, 4  ;;  %v1553_v1 = vsel %vm1310_vm15, %v1552_v59, %v4058_v61  ;;  %v1554_v2 = vrot.slane %v4058_v61, 4  ;;  %v1565_v3 = vsel %vm1310_vm15, %v1564_v58, %v4059_v60 }
 0x3de   : > { %v1559_v4 = vperm.slane %v1553_v1, %v5340_v42  ;;  %v1571_v5 = vperm.slane %v1565_v3, %v5340_v42 }
 0x3df   : > { %v1555_v62 = vsel %vm1310_vm15, %v4063_v53, %v1554_v2  ;;  %v1567_v6 = vsel %vm1310_vm15, %v4064_v52, %v1566_v0 }
 0x3e0   : > { %v1563_v8 = vperm.slane %v1555_v62, %v5340_v42  ;;  %v1575_v9 = vperm.slane %v1567_v6, %v5340_v42  ;;  %v1576_v12 = vrot.slane %v1571_v5, 4  ;;  %v1578_v14 = vrot.slane %v1559_v4, 4 }
 0x3e2   : > { %v1577_v15 = vsel %vm1310_vm15, %v1576_v12, %v1559_v4  ;;  %v1579_v16 = vsel %vm1310_vm15, %v1571_v5, %v1578_v14  ;;  %v1588_v17 = vrot.slane %v1575_v9, 4  ;;  %v1590_v19 = vrot.slane %v1563_v8, 4 }
 0x3e3   : > { %v1583_v20 = vperm.slane %v1577_v15, %v5353_v56  ;;  %v1587_v21 = vperm.slane %v1579_v16, %v5353_v56 }
 0x3e4   : > { %v1589_v22 = vsel %vm1310_vm15, %v1588_v17, %v1563_v8  ;;  %v1591_v13 = vsel %vm1310_vm15, %v1575_v9, %v1590_v19  ;;  %1789 = vadd.xlane.f32.xlu1 %v1788_v23 }
 0x3e5   : > { %v1595_v24 = vperm.slane %v1589_v22, %v5353_v56  ;;  %v1599_v25 = vperm.slane %v1591_v13, %v5353_v56  ;;  %v1600_v26 = vrot.slane %v1583_v20, 4  ;;  %v1602_v28 = vrot.slane %v1587_v21, 4 }
 0x3e7   : > { %v1603_v29 = vsel %vm1310_vm15, 0.0, %v1602_v28  ;;  %v1604_v18 = vrot.slane %v1595_v24, 4  ;;  %v1606_v32 = vrot.slane %v1599_v25, 4  ;;  %v1608_v33 = vsel %vm1310_vm15, %v1602_v28, %v1583_v20 }
 0x3e8   : > { %v1613_v34 = vrot.slane %v1603_v29, 4  ;;  %v1601_v35 = vsel %vm1310_vm15, 0.0, %v1600_v26  ;;  %v1612_v39 = vperm.slane %v1608_v33, %v5340_v42 }
 0x3e9   : > { %v1607_v38 = vsel %vm1310_vm15, 0.0, %v1606_v32  ;;  %v1619_v40 = vsel %vm1310_vm15, %v1606_v32, %v1595_v24  ;;  %v1605_v45 = vsel %vm1310_vm15, 0.0, %v1604_v18 }
 0x3ea   : > { %v1624_v43 = vrot.slane %v1607_v38, 4  ;;  %v1614_v44 = vsel %vm1310_vm15, %v1613_v34, %v1601_v35  ;;  %v1623_v41 = vperm.slane %v1619_v40, %v5340_v42  ;;  %v1632_v47 = vrot.slane %v1612_v39, 4 }
 0x3eb   : > { %v1618_v30 = vperm.slane %v1614_v44, %v5340_v42 }
 0x3ec   : > { %v1625_v31 = vsel %vm1310_vm15, %v1624_v43, %v1605_v45  ;;  %v1644_v36 = vrot.slane %v1623_v41, 4 }
 0x3ed   : > { %v1629_v37 = vperm.slane %v1625_v31, %v5340_v42  ;;  %v1633_v54 = vsel %vm1310_vm15, %v1618_v30, %v1632_v47  ;;  %v1630_v49 = vrot.slane %v1618_v30, 4 }
 0x3ee   : > { %v1641_v50 = vperm.slane %v1633_v54, %v5353_v56 }
 0x3ef   : > { %v1645_v51 = vsel %vm1310_vm15, %v1629_v37, %v1644_v36  ;;  %v1631_v52 = vsel %vm1310_vm15, %v1630_v49, %v1612_v39  ;;  %v1642_v53 = vrot.slane %v1629_v37, 4 }
 0x3f0   : > { %v1653_v57 = vperm.slane %v1645_v51, %v5353_v56  ;;  %v1660_v58 = vrot.slane %v1641_v50, 4  ;;  %v1637_v59 = vperm.slane %v1631_v52, %v5353_v56 }
 0x3f1   : > { %v1643_v60 = vsel %vm1310_vm15, %v1642_v53, %v1623_v41 }
 0x3f2   : > { %v1661_v61 = vsel %vm1310_vm15, %v1653_v57, %v1660_v58  ;;  %v1649_v63 = vperm.slane %v1643_v60, %v5353_v56  ;;  %v1656_v0 = vrot.slane %v1637_v59, 4  ;;  %v1658_v1 = vrot.slane %v1653_v57, 4 }
 0x3f3   : > { %v1806_v2 = vpack.c.bf16 %v1661_v61, %v1661_v61 }
 0x3f4   : > { %v1657_v3 = vsel %vm1310_vm15, %v1649_v63, %v1656_v0  ;;  %v1659_v4 = vsel %vm1310_vm15, %v1658_v1, %v1641_v50  ;;  %v1654_v5 = vrot.slane %v1649_v63, 4 }
 0x3f5   : > { %v1869_v62 = vsel %vm1810_vm3, %v1806_v2, 0  ;;  %v1804_v6 = vpack.c.bf16 %v1657_v3, %v1657_v3  ;;  %v1805_v8 = vpack.c.bf16 %v1659_v4, %v1659_v4 }
 0x3f6   : > { %1878 = vmatpush.bf16.msra.mxu1 %v1869_v62  ;;  %v1655_v9 = vsel %vm1310_vm15, %v1654_v5, %v1637_v59 }
 0x3f7   : > { %v1831_v12 = vsel %vm1810_vm3, %v1804_v6, 0  ;;  %v1850_v14 = vsel %vm1810_vm3, %v1805_v8, 0  ;;  %v1803_v15 = vpack.c.bf16 %v1655_v9, %v1655_v9 }
 0x3f8   : > { %1840 = vmatpush.bf16.msrb.mxu3 %v1831_v12  ;;  %1859 = vmatpush.bf16.msra.mxu0 %v1850_v14 }
 0x3f9   : > { %v1812_v16 = vsel %vm1810_vm3, %v1803_v15, 0 }
 0x3fa   : > { %1821 = vmatpush.bf16.msrb.mxu2 %v1812_v16 }
 0x43e   : > { %v1787_v17 = vpop.xlane.xlu0 %1786 }
 0x43f   : > { %4128 = vrcp.f32 %v1787_v17 }
 0x445   : > { %v4129_v19 = vpop.eup %4128 }
 0x446   : > { %v1797_v20 = vmul.f32 %v4129_v19, %v5453_v46 }
 0x447   : > { %v1781_v22 = vpop.xlane.xlu1 %1780 }
 0x448   : > { %v1801_v21 = vpack.c.bf16 %v1797_v20, %v1797_v20  ;;  %4130 = vrcp.f32 %v1781_v22 }
 0x44a   : > { %3713 = vmatmul.msk.bf16.vlgmr.msra.gmra.mxu0 %vm1670_vm1, %v1801_v21 }
 0x44e   : > { %v4131_v13 = vpop.eup %4130 }
 0x44f   : > { %v1795_v23 = vmul.f32 %v4131_v13, %v5457_v48  ;;  %v1784_v24 = vpop.xlane.xlu1 %1783 }
 0x450   : > { %4132 = vrcp.f32 %v1784_v24 }
 0x451   : > { %v1799_v25 = vpack.c.bf16 %v1795_v23, %v1795_v23 }
 0x453   : > { %3711 = vmatmul.msk.bf16.vlgmr.msrb.gmra.mxu2 %vm1670_vm1, %v1799_v25 }
 0x456   : > { %v4133_v26 = vpop.eup %4132 }
 0x457   : > { %v1796_v28 = vmul.f32 %v4133_v26, %v5461_v55  ;;  %v1790_v29 = vpop.xlane.xlu1 %1789 }
 0x458   : > { %4134 = vrcp.f32 %v1790_v29 }
 0x459   : > { %v1800_v18 = vpack.c.bf16 %v1796_v28, %v1796_v28 }
 0x45b   : > { %3712 = vmatmul.msk.bf16.vlgmr.msrb.gmra.mxu3 %vm1670_vm1, %v1800_v18 }
 0x45e   : > { %v4135_v46 = vpop.eup %4134 }
 0x45f   : > { %v1798_v32 = vmul.f32 %v4135_v46, %v5471_v7 }
 0x461   : > { %v1802_v33 = vpack.c.bf16 %v1798_v32, %v1798_v32 }
 0x463   : > { %3714 = vmatmul.msk.bf16.vlgmr.msra.gmra.mxu1 %vm1670_vm1, %v1802_v33 }
 0x4c7   : > { %v1861_v48 = vpop.f32.mrf.mxu0 }
 0x4c8   : > { %v1884_v39 = vrot.slane %v1861_v48, 4 }
 0x4cf   : > { %v1863_v34 = vpop.f32.mrf.mxu0 }
 0x4d6   : > { %v1823_v35 = vpop.f32.mrf.mxu2 }
 0x4d7   : > { %v1886_v38 = vrot.slane %v1823_v35, 4  ;;  %v1885_v55 = vsel %vm1310_vm15, %v1884_v39, %v1823_v35 }
 0x4d8   : > { %v1891_v30 = vperm.slane %v1885_v55, %v5340_v42 }
 0x4d9   : > { %v1887_v40 = vsel %vm1310_vm15, %v1861_v48, %v1886_v38 }
 0x4da   : > { %v1895_v43 = vperm.slane %v1887_v40, %v5340_v42  ;;  %v1910_v49 = vrot.slane %v1891_v30, 4 }
 0x4dc   : > { %v1922_v36 = vrot.slane %v1895_v43, 4 }
 0x4de   : > { %v1825_v44 = vpop.f32.mrf.mxu2  ;;  %v1842_v41 = vpop.f32.mrf.mxu3 }
 0x4df   : > { %v1898_v45 = vrot.slane %v1842_v41, 4 }
 0x4e0   : > { %v1880_v7 = vpop.f32.mrf.mxu1 }
 0x4e1   : > { %v1896_v47 = vrot.slane %v1880_v7, 4  ;;  %v1899_v31 = vsel %vm1310_vm15, %v1880_v7, %v1898_v45  ;;  %v3794_v7 = vld [vmem:[#allocation14] sm:$0xff] }
 0x4e2   : > { %v1907_v37 = vperm.slane %v1899_v31, %v5340_v42 }
 0x4e3   : > { %v1897_v54 = vsel %vm1310_vm15, %v1896_v47, %v1842_v41 }
 0x4e4   : > { %v1903_v50 = vperm.slane %v1897_v54, %v5340_v42  ;;  %v1920_v51 = vrot.slane %v1907_v37, 4  ;;  %v1923_v52 = vsel %vm1310_vm15, %v1907_v37, %v1922_v36 }
 0x4e5   : > { %v1931_v53 = vperm.slane %v1923_v52, %v5353_v56  ;;  %v4102_v52 = vld [vmem:[#allocation16] ss:$0 sm:$0xff] }
 0x4e6   : > { %v1908_v57 = vrot.slane %v1903_v50, 4  ;;  %v1911_v58 = vsel %vm1310_vm15, %v1903_v50, %v1910_v49  ;;  %v1921_v59 = vsel %vm1310_vm15, %v1920_v51, %v1895_v43  ;;  %v1844_v60 = vpop.f32.mrf.mxu3  ;;  %v3799_v51 = vld [vmem:[#allocation20 + $0x8] sm:$0xff] }
 0x4e7   : > { %v1919_v61 = vperm.slane %v1911_v58, %v5353_v56  ;;  %v1927_v63 = vperm.slane %v1921_v59, %v5353_v56  ;;  %v1938_v0 = vrot.slane %v1931_v53, 4  ;;  %2153 = vmatpush.bf16.msrb.mxu0 %v3799_v51  ;;  %v4160_v58 = vld [vmem:[%s5293_s13] sm:$0xff]  ;;  %s6064_s13 = sld [smem:[#allocation66_spill]] }
 0x4e8   : > { %v1909_v1 = vsel %vm1310_vm15, %v1908_v57, %v1891_v30  ;;  %v1882_v2 = vpop.f32.mrf.mxu1  ;;  %v3795_v30 = vld [vmem:[#allocation14 + $0x8] sm:$0xff] }
 0x4e9   : > { %v1915_v3 = vperm.slane %v1909_v1, %v5353_v56  ;;  %v1934_v4 = vrot.slane %v1919_v61, 4  ;;  %v1936_v5 = vrot.slane %v1927_v63, 4  ;;  %v1939_v62 = vsel %vm1310_vm15, 0.0, %v1938_v0  ;;  %2036 = vmatpush.bf16.msra.mxu2 %v3795_v30  ;;  %v3798_v1 = vld [vmem:[#allocation20] sm:$0xff] }
 0x4ea   : > { %v1951_v6 = vsel %vm1310_vm15, %v1938_v0, %v1927_v63  ;;  %v1956_v8 = vrot.slane %v1939_v62, 4  ;;  %v1113_v63 = vld [vmem:[%s1109_s17] sm:$0xff]  ;;  %v1114_v0 = vld [vmem:[%s1109_s17 + $0x8] sm:$0xff]  ;;  %s1097_s17 = scalar_lea.vmem [#allocation32], %s5238_s7  ;;  %s4755_s7 = scalar_lea.hbm %s6065_s16, 16 }
 0x4eb   : > { %v1932_v9 = vrot.slane %v1915_v3, 4  ;;  %v1935_v12 = vsel %vm1310_vm15, 0.0, %v1934_v4  ;;  %v1937_v14 = vsel %vm1310_vm15, 0.0, %v1936_v5  ;;  %v1955_v15 = vperm.slane %v1951_v6, %v5340_v42  ;;  %2154 = vmatpush.bf16.msrb.mxu0 %v3798_v1  ;;  %s3341_s6 = sshll.u32 %s1097_s17, 4  ;;  %s3342_s6 = int_to_ptr.vmem [resolvable:$true] %s3341_s6 }
 0x4ec   : > { %v1945_v16 = vrot.slane %v1935_v12, 4  ;;  %v1940_v17 = vsel %vm1310_vm15, %v1934_v4, %v1915_v3  ;;  %v1957_v19 = vsel %vm1310_vm15, %v1956_v8, %v1937_v14  ;;  %v2123_v2 = vpack.c.bf16 %v1114_v0, %v1113_v63 }
 0x4ed   : > { %v1933_v20 = vsel %vm1310_vm15, 0.0, %v1932_v9  ;;  %v1944_v21 = vperm.slane %v1940_v17, %v5340_v42  ;;  %v1961_v22 = vperm.slane %v1957_v19, %v5340_v42  ;;  %v1976_v13 = vrot.slane %v1955_v15, 4  ;;  %2037 = vmatpush.bf16.msra.mxu2 %v3794_v7  ;;  %v4103_v9 = vld [vmem:[#allocation22] ss:$0 sm:$0xff]  ;;  %v3797_v17 = vld [vmem:[#allocation17 + $0x8] sm:$0xff] }
 0x4ee   : > { %v1946_v23 = vsel %vm1310_vm15, %v1945_v16, %v1933_v20  ;;  %3741 = vmatmul.msk.bf16.vlgmr.msrb.gmra.mxu0 %vm1123_vm0, %v2123_v2  ;;  %2116 = vmatpush.bf16.msra.mxu3 %v3797_v17  ;;  %v3796_v19 = vld [vmem:[#allocation17] sm:$0xff] }
 0x4ef   : > { %v1950_v24 = vperm.slane %v1946_v23, %v5340_v42  ;;  %v1964_v25 = vrot.slane %v1944_v21, 4  ;;  %v1977_v26 = vsel %vm1310_vm15, %v1961_v22, %v1976_v13  ;;  %v1974_v28 = vrot.slane %v1961_v22, 4 }
 0x4f0   : > { %v1985_v29 = vperm.slane %v1977_v26, %v5353_v56 }
 0x4f1   : > { %v1965_v18 = vsel %vm1310_vm15, %v1950_v24, %v1964_v25  ;;  %v1962_v46 = vrot.slane %v1950_v24, 4  ;;  %v1975_v32 = vsel %vm1310_vm15, %v1974_v28, %v1955_v15 }
 0x4f2   : > { %v1973_v33 = vperm.slane %v1965_v18, %v5353_v56  ;;  %v1990_v48 = vrot.slane %v1985_v29, 4  ;;  %v1981_v34 = vperm.slane %v1975_v32, %v5353_v56  ;;  %2117 = vmatpush.bf16.msra.mxu3 %v3796_v19 }
 0x4f3   : > { %v1963_v35 = vsel %vm1310_vm15, %v1962_v46, %v1944_v21 }
 0x4f4   : > { %v1991_v38 = vsel %vm1310_vm15, %v1990_v48, %v1973_v33  ;;  %v1969_v39 = vperm.slane %v1963_v35, %v5353_v56  ;;  %v1986_v40 = vrot.slane %v1981_v34, 4  ;;  %v1992_v41 = vrot.slane %v1973_v33, 4 }
 0x4f5   : > { %1999 = vrot.lane.b32.xlu1 %v1991_v38, %s4882_s0  ;;  %v4161_v38 = vld [vmem:[%s6062_s3] sm:$0x7] }
 0x4f6   : > { %v1988_v55 = vrot.slane %v1969_v39, 4  ;;  %v1987_v43 = vsel %vm1310_vm15, %v1986_v40, %v1969_v39  ;;  %v1993_v45 = vsel %vm1310_vm15, %v1985_v29, %v1992_v41  ;;  %v2066_v39 = vperm.slane %v4161_v38, 1  ;;  %v4162_v41 = vld [vmem:[#allocation31] sm:$0x7] }
 0x4f8   : > { %v1989_v44 = vsel %vm1310_vm15, %v1981_v34, %v1988_v55 }
 0x4f9   : > { %1995 = vrot.lane.b32.xlu2 %v1989_v44, %s4883_s20 }
 0x501   : > { %2003 = vrot.lane.b32.xlu2 %v1993_v45, %s4884_s10  ;;  %v2084_v45 = vperm.slane %v4162_v41, 1 }
 0x553   : > { %v1996_v47 = vpop.permute.xlu2 %1995 }
 0x554   : > { %v2006_v31 = vsel %vm1670_vm1, %v1987_v43, %v1996_v47 }
 0x55b   : > { %v2004_v37 = vpop.permute.xlu2 %2003 }
 0x567   : > { %v2000_v36 = vpop.permute.xlu1 %1999 }
 0x568   : > { %v2008_v54 = vsel %vm2007_vm4, %v2006_v31, %v2000_v36 }
 0x569   : > { %v2010_v49 = vsel %vm2009_vm5, %v2008_v54, %v2004_v37 }
 0x56a   : > { %v2011_v50 = vpack.c.bf16 %v2010_v49, %v2010_v49 }
 0x56b   : > { %v2156_v8 = vpop.f32.mrf.mxu0 }
 0x56c   : > { %3723 = vmatmul.msk.bf16.vlgmr.msra.gmra.mxu2 %vm1123_vm0, %v2011_v50  ;;  %v5581_v14 = vadd.f32 %v4103_v9, %v2156_v8 }
 0x573   : > { %v2158_v12 = vpop.f32.mrf.mxu0 }
 0x574   : > { %v5583_v15 = vadd.f32 %v4103_v9, %v2158_v12 }
 0x576   : > { %v4065_v16 = vpack.i.bf16 %v5583_v15, %v5581_v14 }
 0x578   : > { %4066 = vrot.lane.b32.xlu0 %v4065_v16, %s4875_s2 }
 0x580   : > { %4071 = vrot.lane.b32.xlu0 %v4065_v16, %s4877_s15 }
 0x5ea   : > { %v5596_v54 = vpop.permute.xlu0 %4066 }
 0x5eb   : > { %v4069_v49 = vunpack.i.h.bf16 %v5596_v54  ;;  %v4068_v50 = vunpack.i.l.bf16 %v5596_v54 }
 0x5ed   : > { %v2376_v51 = vrot.slane %v4069_v49, 4 }
 0x5ef   : > { %v2039_v53 = vpop.f32.mrf.mxu2 }
 0x5f0   : > { %v2040_v57 = vadd.f32 %v4102_v52, %v2039_v53  ;;  %v2320_v52 = vrot.slane %v4068_v50, 4 }
 0x5f2   : > { %v5569_v59 = vadd.f32 %v4160_v58, %v2040_v57  ;;  %v5606_v63 = vpop.permute.xlu0 %4071 }
 0x5f4   : > { %v2044_v60 = vsel %vm1123_vm0, %v5569_v59, 0.0 }
 0x5f5   : > { %2045 = vadd.xlane.f32.xlu2 %v2044_v60  ;;  %v2364_v60 = vrot.slane %v5583_v15, 4 }
 0x5f7   : > { %v2041_v61 = vpop.f32.mrf.mxu2 }
 0x5f8   : > { %v2308_v61 = vrot.slane %v5581_v14, 4 }
 0x60d   : > { %4076 = vrot.lane.b32.xlu2 %v4065_v16, %s4876_s19 }
 0x615   : > { %4081 = vrot.lane.b32.xlu2 %v4065_v16, %s4881_s8 }
 0x668   : > { %v2046_v3 = vpop.xlane.xlu2 %2045 }
 0x669   : > { %v2047_v4 = vmul.f32 %v2046_v3, %v5298_v10 }
 0x66b   : > { %v2048_v5 = vsub.f32 %v5569_v59, %v2047_v4  ;;  %v4074_v4 = vunpack.i.h.bf16 %v5606_v63 }
 0x66d   : > { %v2049_v62 = vmul.f32 %v2048_v5, %v2048_v5  ;;  %v2067_v30 = vmul.f32 %v2066_v39, %v2048_v5  ;;  %v4073_v5 = vunpack.i.l.bf16 %v5606_v63  ;;  %v2362_v12 = vrot.slane %v4074_v4, 4 }
 0x66e   : > { %v2365_v16 = vsel %vm1310_vm15, %v4074_v4, %v2364_v60 }
 0x66f   : > { %v2050_v6 = vsel %vm1123_vm0, %v2049_v62, 0.0  ;;  %v2306_v17 = vrot.slane %v4073_v5, 4  ;;  %v2309_v19 = vsel %vm1310_vm15, %v4073_v5, %v2308_v61 }
 0x670   : > { %2051 = vadd.xlane.f32.xlu1 %v2050_v6  ;;  %v5600_v53 = vpop.permute.xlu2 %4076 }
 0x671   : > { %v4079_v57 = vunpack.i.h.bf16 %v5600_v53  ;;  %v4078_v58 = vunpack.i.l.bf16 %v5600_v53 }
 0x673   : > { %v2374_v0 = vrot.slane %v4079_v57, 4  ;;  %v2377_v1 = vsel %vm1310_vm15, %v4079_v57, %v2376_v51  ;;  %v2318_v2 = vrot.slane %v4078_v58, 4  ;;  %v2321_v3 = vsel %vm1310_vm15, %v4078_v58, %v2320_v52 }
 0x674   : > { %v2385_v62 = vperm.slane %v2377_v1, %v5340_v42  ;;  %v2329_v6 = vperm.slane %v2321_v3, %v5340_v42 }
 0x675   : > { %v2375_v8 = vsel %vm1310_vm15, %v2374_v0, %v4069_v49  ;;  %v2319_v9 = vsel %vm1310_vm15, %v2318_v2, %v4068_v50 }
 0x6e3   : > { %v2052_v20 = vpop.xlane.xlu1 %2051 }
 0x6e4   : > { %v2053_v21 = vmul.f32 %v2052_v20, %v5312_v27  ;;  %v2373_v20 = vperm.slane %v2365_v16, %v5340_v42 }
 0x6e6   : > { %4136 = vrsqrt.f32 %v2053_v21  ;;  %vm2061_vm6 = vcmp.eq.f32.partialorder %v2053_v21, inf  ;;  %v2064_v29 = vand.u32 2147483648, %v2053_v21  ;;  %vm2063_vm7 = vcmp.eq.f32.partialorder %v2053_v21, 0.0 }
 0x6ec   : > { %v4137_v22 = vpop.eup %4136 }
 0x6ed   : > { %v2055_v13 = vmul.f32 %v4137_v22, %v2053_v21 }
 0x6ef   : > { %v2056_v23 = vmul.f32 %v4137_v22, %v2055_v13  ;;  %v2398_v13 = vrot.slane %v2385_v62, 4 }
 0x6f1   : > { %v2057_v24 = vmul.f32 0.5, %v2056_v23  ;;  %v2363_v23 = vsel %vm1310_vm15, %v2362_v12, %v5583_v15 }
 0x6f3   : > { %v2058_v25 = vsub.f32 1.5, %v2057_v24  ;;  %v2307_v24 = vsel %vm1310_vm15, %v2306_v17, %v5581_v14 }
 0x6f5   : > { %v2059_v26 = vmul.f32 %v4137_v22, %v2058_v25  ;;  %v2381_v22 = vperm.slane %v2375_v8, %v5340_v42  ;;  %v2325_v25 = vperm.slane %v2319_v9, %v5340_v42 }
 0x6f7   : > { %v2060_v28 = vmul.f32 %v2059_v26, %v2053_v21  ;;  %v2342_v26 = vrot.slane %v2329_v6, 4 }
 0x6f9   : > { %v2062_v18 = vsel %vm2061_vm6, %v2053_v21, %v2060_v28  ;;  %v2317_v21 = vperm.slane %v2309_v19, %v5340_v42  ;;  %v2369_v28 = vperm.slane %v2363_v23, %v5340_v42 }
 0x6fa   : > { %v2065_v46 = vsel %vm2063_vm7, %v2064_v29, %v2062_v18  ;;  %v2400_v29 = vrot.slane %v2373_v20, 4  ;;  %v2313_v18 = vperm.slane %v2307_v24, %v5340_v42 }
 0x6fb   : > { %v2068_v32 = vadd.f32 1e-06, %v2065_v46  ;;  %v2344_v46 = vrot.slane %v2317_v21, 4 }
 0x6fc   : > { %v2332_v15 = vrot.slane %v2313_v18, 4  ;;  %v2401_v38 = vsel %vm1310_vm15, %v2385_v62, %v2400_v29 }
 0x6fd   : > { %4138 = vrcp.f32 %v2068_v32  ;;  %v2080_v35 = vand.u32 2147483648, %v2068_v32  ;;  %v2078_v55 = vand.u32 2147483647, %v2068_v32  ;;  %vm2074_vm9 = vweird.f32 %v2068_v32 }
 0x6ff   : > { %v2081_v44 = vor.u32 1.1754944e-38, %v2080_v35  ;;  %vm2079_vm11 = vcmp.eq.f32.partialorder %v2078_v55, 8.507059e+37  ;;  %v2388_v35 = vrot.slane %v2369_v28, 4 }
 0x703   : > { %v4139_v33 = vpop.eup %4138 }
 0x704   : > { %v2070_v48 = vmul.f32 %v4139_v33, %v2068_v32  ;;  %vm2075_vm8 = vweird.f32 %v4139_v33  ;;  %v2386_v32 = vrot.slane %v2381_v22, 4 }
 0x705   : > { %vm2076_vm10 = vmor %vm2074_vm9, %vm2075_vm8 }
 0x706   : > { %v2071_v34 = vsub.f32 1.0, %v2070_v48  ;;  %v2330_v48 = vrot.slane %v2325_v25, 4  ;;  %v2387_v39 = vsel %vm1310_vm15, %v2386_v32, %v2369_v28 }
 0x707   : > { %v2393_v41 = vperm.slane %v2387_v39, %v5353_v56 }
 0x708   : > { %v2072_v40 = vmul.f32 %v4139_v33, %v2071_v34  ;;  %v2343_v34 = vsel %vm1310_vm15, %v2342_v26, %v2317_v21  ;;  %v2331_v55 = vsel %vm1310_vm15, %v2330_v48, %v2313_v18 }
 0x709   : > { %v2349_v50 = vperm.slane %v2343_v34, %v5353_v56 }
 0x70a   : > { %v2073_v43 = vadd.f32 %v4139_v33, %v2072_v40  ;;  %v2409_v40 = vperm.slane %v2401_v38, %v5353_v56 }
 0x70b   : > { %v2358_v5 = vrot.slane %v2349_v50, 4 }
 0x70c   : > { %v2077_v7 = vsel %vm2076_vm10, %v4139_v33, %v2073_v43  ;;  %v2399_v33 = vsel %vm1310_vm15, %v2398_v13, %v2373_v20  ;;  %v2345_v43 = vsel %vm1310_vm15, %v2329_v6, %v2344_v46 }
 0x70d   : > { %v2082_v47 = vsel %vm2079_vm11, %v2081_v44, %v2077_v7  ;;  %v2405_v14 = vperm.slane %v2399_v33, %v5353_v56  ;;  %v2389_v44 = vsel %vm1310_vm15, %v2381_v22, %v2388_v35  ;;  %v2353_v51 = vperm.slane %v2345_v43, %v5353_v56 }
 0x70e   : > { %v2083_v31 = vmul.f32 %v2082_v47, %v2067_v30  ;;  %v2333_v30 = vsel %vm1310_vm15, %v2325_v25, %v2332_v15  ;;  %v2397_v7 = vperm.slane %v2389_v44, %v5353_v56  ;;  %v2416_v47 = vrot.slane %v2409_v40, 4 }
 0x70f   : > { %v2360_v62 = vrot.slane %v2353_v51, 4  ;;  %v2359_v17 = vsel %vm1310_vm15, 0.0, %v2358_v5 }
 0x710   : > { %v2085_v36 = vadd.f32 %v2084_v45, %v2083_v31  ;;  %v2414_v45 = vrot.slane %v2405_v14, 4  ;;  %v2337_v31 = vperm.slane %v2331_v55, %v5353_v56  ;;  %v2412_v52 = vrot.slane %v2397_v7, 4 }
 0x711   : > { %v2417_v57 = vsel %vm1310_vm15, 0.0, %v2416_v47  ;;  %v2483_v58 = vsel %vm1310_vm15, %v2416_v47, %v2405_v14  ;;  %v2361_v19 = vsel %vm1310_vm15, 0.0, %v2360_v62  ;;  %v2429_v21 = vsel %vm1310_vm15, %v2360_v62, %v2349_v50 }
 0x712   : > { %v2086_v37 = vpack.c.bf16 %v2085_v36, %v2085_v36  ;;  %v2341_v36 = vperm.slane %v2333_v30, %v5353_v56  ;;  %v2415_v49 = vsel %vm1310_vm15, 0.0, %v2414_v45  ;;  %v2354_v60 = vrot.slane %v2337_v31, 4 }
 0x713   : > { %v2487_v0 = vperm.slane %v2483_v58, %v5340_v42  ;;  %v2488_v1 = vrot.slane %v2417_v57, 4  ;;  %v2413_v3 = vsel %vm1310_vm15, 0.0, %v2412_v52  ;;  %v2434_v22 = vrot.slane %v2361_v19, 4 }
 0x714   : > { %3732 = vmatmul.msk.bf16.vlgmr.msra.gmra.mxu3 %vm1123_vm0, %v2086_v37  ;;  %v2410_v37 = vrot.slane %v2393_v41, 4  ;;  %v2356_v2 = vrot.slane %v2341_v36, 4  ;;  %v2355_v4 = vsel %vm1310_vm15, 0.0, %v2354_v60  ;;  %v2477_v6 = vrot.slane %v2413_v3, 4 }
 0x715   : > { %v2489_v8 = vsel %vm1310_vm15, %v2488_v1, %v2415_v49  ;;  %v2472_v23 = vsel %vm1310_vm15, %v2412_v52, %v2393_v41  ;;  %v2433_v24 = vperm.slane %v2429_v21, %v5340_v42  ;;  %v2435_v29 = vsel %vm1310_vm15, %v2434_v22, %v2359_v17 }
 0x716   : > { %v2411_v61 = vsel %vm1310_vm15, 0.0, %v2410_v37  ;;  %v2357_v9 = vsel %vm1310_vm15, 0.0, %v2356_v2  ;;  %v2418_v12 = vsel %vm1310_vm15, %v2356_v2, %v2337_v31  ;;  %v2493_v16 = vperm.slane %v2489_v8, %v5340_v42 }
 0x717   : > { %v2423_v20 = vrot.slane %v2357_v9, 4  ;;  %v2422_v13 = vperm.slane %v2418_v12, %v5340_v42  ;;  %v2476_v26 = vperm.slane %v2472_v23, %v5340_v42  ;;  %v2478_v28 = vsel %vm1310_vm15, %v2477_v6, %v2411_v61 }
 0x718   : > { %v2482_v46 = vperm.slane %v2478_v28, %v5340_v42  ;;  %v2506_v32 = vrot.slane %v2493_v16, 4  ;;  %v2439_v33 = vperm.slane %v2435_v29, %v5340_v42  ;;  %v2454_v34 = vrot.slane %v2433_v24, 4 }
 0x719   : > { %v2424_v25 = vsel %vm1310_vm15, %v2423_v20, %v2355_v4  ;;  %v2442_v48 = vrot.slane %v2422_v13, 4  ;;  %v2496_v35 = vrot.slane %v2476_v26, 4  ;;  %v2508_v39 = vrot.slane %v2487_v0, 4 }
 0x71a   : > { %v2428_v18 = vperm.slane %v2424_v25, %v5340_v42  ;;  %v2494_v38 = vrot.slane %v2482_v46, 4  ;;  %v2507_v14 = vsel %vm1310_vm15, %v2506_v32, %v2487_v0  ;;  %v2452_v40 = vrot.slane %v2439_v33, 4 }
 0x71b   : > { %v2513_v55 = vperm.slane %v2507_v14, %v5353_v56  ;;  %v2455_v44 = vsel %vm1310_vm15, %v2439_v33, %v2454_v34  ;;  %v2497_v51 = vsel %vm1310_vm15, %v2482_v46, %v2496_v35  ;;  %v2509_v52 = vsel %vm1310_vm15, %v2493_v16, %v2508_v39 }
 0x71c   : > { %v2440_v15 = vrot.slane %v2428_v18, 4  ;;  %v2443_v43 = vsel %vm1310_vm15, %v2428_v18, %v2442_v48  ;;  %v2495_v45 = vsel %vm1310_vm15, %v2494_v38, %v2476_v26  ;;  %v2463_v7 = vperm.slane %v2455_v44, %v5353_v56 }
 0x71d   : > { %v2451_v30 = vperm.slane %v2443_v43, %v5353_v56  ;;  %v2453_v31 = vsel %vm1310_vm15, %v2452_v40, %v2433_v24  ;;  %v2501_v36 = vperm.slane %v2495_v45, %v5353_v56  ;;  %v2518_v37 = vrot.slane %v2513_v55, 4 }
 0x71e   : > { %v2441_v41 = vsel %vm1310_vm15, %v2440_v15, %v2422_v13  ;;  %v2459_v49 = vperm.slane %v2453_v31, %v5353_v56  ;;  %v2468_v50 = vrot.slane %v2463_v7, 4  ;;  %v2505_v61 = vperm.slane %v2497_v51, %v5353_v56 }
 0x71f   : > { %v2447_v47 = vperm.slane %v2441_v41, %v5353_v56  ;;  %v2519_v57 = vsel %vm1310_vm15, %v2518_v37, %v2501_v36  ;;  %v2520_v60 = vrot.slane %v2501_v36, 4  ;;  %v2517_v3 = vperm.slane %v2509_v52, %v5353_v56 }
 0x720   : > { %v2464_v0 = vrot.slane %v2459_v49, 4  ;;  %v2775_v1 = vpack.c.bf16 %v2519_v57, %v2519_v57  ;;  %v2469_v2 = vsel %vm1310_vm15, %v2468_v50, %v2451_v30  ;;  %v2470_v62 = vrot.slane %v2451_v30, 4 }
 0x721   : > { %v2466_v58 = vrot.slane %v2447_v47, 4  ;;  %v2521_v5 = vsel %vm1310_vm15, %v2513_v55, %v2520_v60  ;;  %v2778_v12 = vpack.c.bf16 %v2469_v2, %v2469_v2  ;;  %v2522_v19 = vrot.slane %v2517_v3, 4  ;;  %v4104_v55 = vld [vmem:[#allocation19] ss:$0 sm:$0xff] }
 0x722   : > { %v2465_v6 = vsel %vm1310_vm15, %v2464_v0, %v2447_v47  ;;  %v2777_v9 = vpack.c.bf16 %v2521_v5, %v2521_v5  ;;  %v2785_v17 = vunpack.c.l.b16 %v2775_v1  ;;  %v2471_v20 = vsel %vm1310_vm15, %v2463_v7, %v2470_v62 }
 0x723   : > { %v2467_v4 = vsel %vm1310_vm15, %v2459_v49, %v2466_v58  ;;  %v2774_v16 = vpack.c.bf16 %v2465_v6, %v2465_v6  ;;  %v2524_v13 = vrot.slane %v2505_v61, 4  ;;  %v2780_v23 = vpack.c.bf16 %v2471_v20, %v2471_v20 }
 0x724   : > { %v2776_v8 = vpack.c.bf16 %v2467_v4, %v2467_v4  ;;  %v2809_v22 = vunpack.c.l.b16 %v2777_v9  ;;  %v2523_v25 = vsel %vm1310_vm15, %v2522_v19, %v2505_v61  ;;  %v2832_v29 = vunpack.c.l.b16 %v2778_v12 }
 0x725   : > { %v2784_v24 = vunpack.c.l.b16 %v2774_v16  ;;  %v2779_v28 = vpack.c.bf16 %v2523_v25, %v2523_v25  ;;  %v2525_v18 = vsel %vm1310_vm15, %v2517_v3, %v2524_v13  ;;  %v2856_v33 = vunpack.c.l.b16 %v2780_v23 }
 0x726   : > { %v2808_v21 = vunpack.c.l.b16 %v2776_v8  ;;  %v2781_v32 = vpack.c.bf16 %v2525_v18, %v2525_v18 }
 0x727   : > { %v2786_v46 = vpack.c.b16 %v2785_v17, %v2784_v24  ;;  %v2833_v34 = vunpack.c.l.b16 %v2779_v28 }
 0x728   : > { %v2810_v26 = vpack.c.b16 %v2809_v22, %v2808_v21  ;;  %v2857_v15 = vunpack.c.l.b16 %v2781_v32 }
 0x729   : > { %v2791_v35 = vsel %vm1670_vm1, %v2786_v46, 0  ;;  %v2834_v38 = vpack.c.b16 %v2833_v34, %v2832_v29 }
 0x72a   : > { %v2815_v48 = vsel %vm1670_vm1, %v2810_v26, 0  ;;  %2800 = vmatpush.bf16.xpose.msrb.mxu1 %v2791_v35  ;;  %v2858_v14 = vpack.c.b16 %v2857_v15, %v2856_v33 }
 0x72b   : > { %2824 = vmatpush.bf16.xpose.msrb.mxu2 %v2815_v48  ;;  %v2839_v39 = vsel %vm1670_vm1, %v2834_v38, 0 }
 0x72c   : > { %2848 = vmatpush.bf16.xpose.msrb.mxu3 %v2839_v39  ;;  %v2863_v40 = vsel %vm1670_vm1, %v2858_v14, 0 }
 0x72d   : > { %2872 = vmatpush.bf16.xpose.msra.mxu0 %v2863_v40 }
 0x797   : > { %v2119_v43 = vpop.f32.mrf.mxu3 }
 0x798   : > { %v2120_v44 = vadd.f32 %v4104_v55, %v2119_v43 }
 0x79a   : > { %2170 = vrot.lane.b32.xlu1 %v2120_v44, %s4877_s15  ;;  %2167 = vrot.lane.b32.xlu0 %v2120_v44, %s4875_s2  ;;  %v2178_v47 = vrot.slane %v2120_v44, 4 }
 0x79f   : > { %v2121_v41 = vpop.f32.mrf.mxu3 }
 0x7a2   : > { %2173 = vrot.lane.b32.xlu0 %v2120_v44, %s4876_s19 }
 0x80c   : > { %v2171_v45 = vpop.permute.xlu1 %2170  ;;  %v2168_v30 = vpop.permute.xlu0 %2167 }
 0x80d   : > { %v2176_v7 = vrot.slane %v2171_v45, 4  ;;  %v2179_v31 = vsel %vm1310_vm15, %v2171_v45, %v2178_v47  ;;  %v2190_v49 = vrot.slane %v2168_v30, 4 }
 0x80e   : > { %v2187_v37 = vperm.slane %v2179_v31, %v5340_v42 }
 0x80f   : > { %v2177_v36 = vsel %vm1310_vm15, %v2176_v7, %v2120_v44 }
 0x810   : > { %v2183_v50 = vperm.slane %v2177_v36, %v5340_v42  ;;  %v2214_v58 = vrot.slane %v2187_v37, 4 }
 0x812   : > { %v2202_v0 = vrot.slane %v2183_v50, 4 }
 0x814   : > { %v2174_v51 = vpop.permute.xlu0 %2173 }
 0x815   : > { %v2188_v52 = vrot.slane %v2174_v51, 4  ;;  %v2191_v57 = vsel %vm1310_vm15, %v2174_v51, %v2190_v49 }
 0x816   : > { %v2199_v60 = vperm.slane %v2191_v57, %v5340_v42 }
 0x817   : > { %v2189_v61 = vsel %vm1310_vm15, %v2188_v52, %v2168_v30 }
 0x818   : > { %v2195_v1 = vperm.slane %v2189_v61, %v5340_v42  ;;  %v2212_v2 = vrot.slane %v2199_v60, 4  ;;  %v2215_v3 = vsel %vm1310_vm15, %v2199_v60, %v2214_v58  ;;  %v1120_v61 = vld [vmem:[%s933_s18] sm:$0x1]  ;;  %s3328_s18 = scalar_lea.sflag [#allocation4], %s5235_s11 }
 0x819   : > { %v2223_v4 = vperm.slane %v2215_v3, %v5353_v56  ;;  %vm1121_vm12 = vcmp.eq.f32.partialorder %v1120_v61, 0.0 }
 0x81a   : > { %v2200_v5 = vrot.slane %v2195_v1, 4  ;;  %v2203_v62 = vsel %vm1310_vm15, %v2195_v1, %v2202_v0  ;;  %v2213_v6 = vsel %vm1310_vm15, %v2212_v2, %v2187_v37  ;;  %v1122_v0 = vsel %vm1121_vm12, -1e+09, %v4880_v11 }
 0x81b   : > { %v2211_v8 = vperm.slane %v2203_v62, %v5353_v56  ;;  %v2219_v9 = vperm.slane %v2213_v6, %v5353_v56  ;;  %v2230_v12 = vrot.slane %v2223_v4, 4  ;;  %v2883_v1 = vperm.slane %v1122_v0, 0 }
 0x81c   : > { %v2201_v16 = vsel %vm1310_vm15, %v2200_v5, %v2183_v50 }
 0x81d   : > { %v2207_v17 = vperm.slane %v2201_v16, %v5353_v56  ;;  %v2226_v19 = vrot.slane %v2211_v8, 4  ;;  %v2228_v20 = vrot.slane %v2219_v9, 4  ;;  %v2231_v21 = vsel %vm1310_vm15, 0.0, %v2230_v12 }
 0x81e   : > { %v2243_v22 = vsel %vm1310_vm15, %v2230_v12, %v2219_v9  ;;  %v2248_v13 = vrot.slane %v2231_v21, 4 }
 0x81f   : > { %v2224_v23 = vrot.slane %v2207_v17, 4  ;;  %v2227_v24 = vsel %vm1310_vm15, 0.0, %v2226_v19  ;;  %v2229_v25 = vsel %vm1310_vm15, 0.0, %v2228_v20  ;;  %v2232_v26 = vsel %vm1310_vm15, %v2226_v19, %v2207_v17 }
 0x820   : > { %v2236_v28 = vperm.slane %v2232_v26, %v5340_v42  ;;  %v2237_v29 = vrot.slane %v2227_v24, 4  ;;  %v2247_v18 = vperm.slane %v2243_v22, %v5340_v42  ;;  %v2249_v46 = vsel %vm1310_vm15, %v2248_v13, %v2229_v25  ;;  %v4082_v26 = vpop.permute.xlu2 %4081 }
 0x821   : > { %v2225_v32 = vsel %vm1310_vm15, 0.0, %v2224_v23  ;;  %v2253_v33 = vperm.slane %v2249_v46, %v5340_v42 }
 0x822   : > { %v2238_v48 = vsel %vm1310_vm15, %v2237_v29, %v2225_v32  ;;  %v2256_v34 = vrot.slane %v2236_v28, 4  ;;  %v2268_v35 = vrot.slane %v2247_v18, 4 }
 0x823   : > { %v2242_v15 = vperm.slane %v2238_v48, %v5340_v42  ;;  %v2266_v38 = vrot.slane %v2253_v33, 4 }
 0x824   : > { %v2269_v14 = vsel %vm1310_vm15, %v2253_v33, %v2268_v35 }
 0x825   : > { %v2267_v39 = vsel %vm1310_vm15, %v2266_v38, %v2247_v18  ;;  %v2257_v40 = vsel %vm1310_vm15, %v2242_v15, %v2256_v34  ;;  %v2277_v55 = vperm.slane %v2269_v14, %v5353_v56  ;;  %v2254_v43 = vrot.slane %v2242_v15, 4 }
 0x826   : > { %v2265_v44 = vperm.slane %v2257_v40, %v5353_v56  ;;  %v2273_v41 = vperm.slane %v2267_v39, %v5353_v56  ;;  %v4084_v40 = vunpack.i.h.bf16 %v4082_v26 }
 0x827   : > { %v2282_v45 = vrot.slane %v2277_v55, 4  ;;  %v2255_v30 = vsel %vm1310_vm15, %v2254_v43, %v2236_v28  ;;  %v4083_v43 = vunpack.i.l.bf16 %v4082_v26 }
 0x828   : > { %v2261_v7 = vperm.slane %v2255_v30, %v5353_v56  ;;  %v2278_v47 = vrot.slane %v2273_v41, 4  ;;  %v2284_v31 = vrot.slane %v2265_v44, 4 }
 0x829   : > { %v2283_v36 = vsel %vm1310_vm15, %v2282_v45, %v2265_v44  ;;  %v2608_v45 = vrot.slane %v4084_v40, 4 }
 0x82a   : > { %v2772_v37 = vpack.c.bf16 %v2283_v36, %v2283_v36  ;;  %v2279_v49 = vsel %vm1310_vm15, %v2278_v47, %v2261_v7  ;;  %v2285_v50 = vsel %vm1310_vm15, %v2277_v55, %v2284_v31  ;;  %v2280_v51 = vrot.slane %v2261_v7, 4 }
 0x82b   : > { %v2770_v52 = vpack.c.bf16 %v2279_v49, %v2279_v49  ;;  %v2773_v57 = vpack.c.bf16 %v2285_v50, %v2285_v50  ;;  %v2552_v31 = vrot.slane %v4083_v43, 4 }
 0x82c   : > { %3744 = vmatmul.msk.bf16.vlgmr.msrb.gmra.mxu3 %vm1670_vm1, %v2772_v37  ;;  %v2281_v58 = vsel %vm1310_vm15, %v2273_v41, %v2280_v51 }
 0x82d   : > { %3742 = vmatmul.msk.bf16.vlgmr.msrb.gmra.mxu1 %vm1670_vm1, %v2770_v52  ;;  %3745 = vmatmul.msk.bf16.vlgmr.msra.gmra.mxu0 %vm1670_vm1, %v2773_v57  ;;  %v2771_v60 = vpack.c.bf16 %v2281_v58, %v2281_v58 }
 0x82f   : > { %3743 = vmatmul.msk.bf16.vlgmr.msrb.gmra.mxu2 %vm1670_vm1, %v2771_v60 }
 0x8aa   : > { %v2802_v2 = vpop.f32.mrf.mxu1  ;;  %v2874_v3 = vpop.f32.mrf.mxu0 }
 0x8ab   : > { %v2878_v4 = vmul.f32 0.35355338, %v2802_v2  ;;  %v2881_v5 = vmul.f32 0.35355338, %v2874_v3 }
 0x8ad   : > { %v2888_v62 = vadd.f32 %v2883_v1, %v2881_v5  ;;  %v2885_v6 = vadd.f32 %v2883_v1, %v2878_v4 }
 0x8af   : > { %v2850_v8 = vpop.f32.mrf.mxu3  ;;  %v2898_v9 = vsel %vm2007_vm4, %v2888_v62, -inf  ;;  %v2889_v12 = vsel %vm2007_vm4, %v2885_v6, -inf }
 0x8b0   : > { %v2880_v16 = vmul.f32 0.35355338, %v2850_v8  ;;  %2899 = vmax.xlane.f32.xlu0 %v2898_v9  ;;  %2890 = vmax.xlane.f32.xlu1 %v2889_v12 }
 0x8b2   : > { %v2804_v17 = vpop.f32.mrf.mxu1  ;;  %v2826_v19 = vpop.f32.mrf.mxu2  ;;  %v2887_v11 = vadd.f32 %v2883_v1, %v2880_v16 }
 0x8b3   : > { %v2879_v20 = vmul.f32 0.35355338, %v2826_v19  ;;  %v2876_v21 = vpop.f32.mrf.mxu0 }
 0x8b4   : > { %v2895_v23 = vsel %vm2007_vm4, %v2887_v11, -inf }
 0x8b5   : > { %v2886_v22 = vadd.f32 %v2883_v1, %v2879_v20 }
 0x8b7   : > { %v2852_v13 = vpop.f32.mrf.mxu3  ;;  %v2892_v24 = vsel %vm2007_vm4, %v2886_v22, -inf }
 0x8b8   : > { %2896 = vmax.xlane.f32.xlu0 %v2895_v23  ;;  %2893 = vmax.xlane.f32.xlu2 %v2892_v24 }
 0x8ba   : > { %v2828_v25 = vpop.f32.mrf.mxu2 }
 0x8c9   : > { %4091 = vrot.lane.b32.xlu1 %v5606_v63, %s4881_s8 }
 0x8cc   : > { %4086 = vrot.lane.b32.xlu0 %v5596_v54, %s4881_s8 }
 0x8d0   : > { %4096 = vrot.lane.b32.xlu2 %v5600_v53, %s4881_s8 }
 0x923   : > { %v2900_v28 = vpop.xlane.xlu0 %2899  ;;  %v2891_v29 = vpop.xlane.xlu1 %2890 }
 0x924   : > { %v2901_v18 = vsub.f32 %v2885_v6, %v2891_v29  ;;  %v2904_v35 = vsub.f32 %v2888_v62, %v2900_v28 }
 0x926   : > { %v2905_v46 = vmul.f32 1.442695, %v2901_v18  ;;  %v2911_v53 = vmul.f32 1.442695, %v2904_v35 }
 0x928   : > { %4140 = vpow2.f32 %v2905_v46 }
 0x92b   : > { %v2897_v32 = vpop.xlane.xlu0 %2896  ;;  %v2894_v33 = vpop.xlane.xlu2 %2893 }
 0x92c   : > { %v2903_v48 = vsub.f32 %v2887_v11, %v2897_v32  ;;  %v2902_v34 = vsub.f32 %v2886_v22, %v2894_v33 }
 0x92e   : > { %v2909_v15 = vmul.f32 1.442695, %v2903_v48  ;;  %v2907_v38 = vmul.f32 1.442695, %v2902_v34  ;;  %v5756_v63 = vpop.eup %4140 }
 0x92f   : > { %v2913_v54 = vsel %vm2007_vm4, %v5756_v63, 0.0 }
 0x930   : > { %4142 = vpow2.f32 %v2909_v15  ;;  %2914 = vadd.xlane.f32.xlu1 %v2913_v54 }
 0x931   : > { %4144 = vpow2.f32 %v2907_v38 }
 0x932   : > { %4146 = vpow2.f32 %v2911_v53 }
 0x933   : > { %v4097_v44 = vpop.permute.xlu2 %4096 }
 0x934   : > { %v4099_v30 = vunpack.i.h.bf16 %v4097_v44  ;;  %v4098_v36 = vunpack.i.l.bf16 %v4097_v44 }
 0x936   : > { %v5760_v14 = vpop.eup %4142  ;;  %v2618_v60 = vrot.slane %v4099_v30, 4  ;;  %v2562_v2 = vrot.slane %v4098_v36, 4 }
 0x937   : > { %v5762_v39 = vpop.eup %4144  ;;  %v2919_v55 = vsel %vm2007_vm4, %v5760_v14, 0.0 }
 0x938   : > { %2920 = vadd.xlane.f32.xlu0 %v2919_v55  ;;  %v2916_v41 = vsel %vm2007_vm4, %v5762_v39, 0.0  ;;  %v5768_v47 = vpop.eup %4146 }
 0x939   : > { %2917 = vadd.xlane.f32.xlu2 %v2916_v41  ;;  %v2922_v1 = vsel %vm2007_vm4, %v5768_v47, 0.0 }
 0x93b   : > { %v4092_v7 = vpop.permute.xlu1 %4091 }
 0x93c   : > { %v4094_v37 = vunpack.i.h.bf16 %v4092_v7  ;;  %v4093_v49 = vunpack.i.l.bf16 %v4092_v7 }
 0x93e   : > { %v2606_v50 = vrot.slane %v4094_v37, 4  ;;  %v2609_v51 = vsel %vm1310_vm15, %v4094_v37, %v2608_v45  ;;  %v2550_v52 = vrot.slane %v4093_v49, 4  ;;  %v2553_v57 = vsel %vm1310_vm15, %v4093_v49, %v2552_v31  ;;  %v4087_v58 = vpop.permute.xlu0 %4086 }
 0x93f   : > { %v4089_v61 = vunpack.i.h.bf16 %v4087_v58  ;;  %v4088_v0 = vunpack.i.l.bf16 %v4087_v58  ;;  %v2561_v5 = vperm.slane %v2553_v57, %v5340_v42  ;;  %v2617_v6 = vperm.slane %v2609_v51, %v5340_v42 }
 0x940   : > { %v2607_v3 = vsel %vm1310_vm15, %v2606_v50, %v4084_v40  ;;  %v2551_v4 = vsel %vm1310_vm15, %v2550_v52, %v4083_v43  ;;  %2923 = vadd.xlane.f32.xlu0 %v2922_v1 }
 0x941   : > { %v2613_v62 = vperm.slane %v2607_v3, %v5340_v42  ;;  %v2557_v8 = vperm.slane %v2551_v4, %v5340_v42  ;;  %v2620_v9 = vrot.slane %v4089_v61, 4  ;;  %v2563_v12 = vsel %vm1310_vm15, %v2562_v2, %v4088_v0 }
 0x942   : > { %v2564_v16 = vrot.slane %v4088_v0, 4  ;;  %v2619_v17 = vsel %vm1310_vm15, %v2618_v60, %v4089_v61  ;;  %v2569_v21 = vperm.slane %v2563_v12, %v5340_v42  ;;  %v2588_v22 = vrot.slane %v2561_v5, 4 }
 0x943   : > { %v2632_v19 = vrot.slane %v2613_v62, 4  ;;  %v2576_v20 = vrot.slane %v2557_v8, 4  ;;  %v2625_v11 = vperm.slane %v2619_v17, %v5340_v42  ;;  %v2621_v23 = vsel %vm1310_vm15, %v4099_v30, %v2620_v9 }
 0x944   : > { %v2565_v13 = vsel %vm1310_vm15, %v4098_v36, %v2564_v16  ;;  %v2574_v25 = vrot.slane %v2569_v21, 4  ;;  %v2629_v28 = vperm.slane %v2621_v23, %v5340_v42  ;;  %v2644_v29 = vrot.slane %v2617_v6, 4 }
 0x945   : > { %v2573_v24 = vperm.slane %v2565_v13, %v5340_v42  ;;  %v2577_v26 = vsel %vm1310_vm15, %v2569_v21, %v2576_v20  ;;  %v2630_v46 = vrot.slane %v2625_v11, 4  ;;  %v2633_v32 = vsel %vm1310_vm15, %v2625_v11, %v2632_v19 }
 0x946   : > { %v2585_v18 = vperm.slane %v2577_v26, %v5353_v56  ;;  %v2575_v33 = vsel %vm1310_vm15, %v2574_v25, %v2557_v8  ;;  %v2641_v35 = vperm.slane %v2633_v32, %v5353_v56  ;;  %v2642_v43 = vrot.slane %v2629_v28, 4 }
 0x947   : > { %v2586_v48 = vrot.slane %v2573_v24, 4  ;;  %v2589_v34 = vsel %vm1310_vm15, %v2573_v24, %v2588_v22  ;;  %v2581_v15 = vperm.slane %v2575_v33, %v5353_v56  ;;  %v2631_v53 = vsel %vm1310_vm15, %v2630_v46, %v2613_v62 }
 0x948   : > { %v2597_v38 = vperm.slane %v2589_v34, %v5353_v56  ;;  %v2600_v54 = vrot.slane %v2585_v18, 4  ;;  %v2637_v55 = vperm.slane %v2631_v53, %v5353_v56  ;;  %v2645_v44 = vsel %vm1310_vm15, %v2629_v28, %v2644_v29 }
 0x949   : > { %v2587_v40 = vsel %vm1310_vm15, %v2586_v48, %v2561_v5  ;;  %v2598_v45 = vrot.slane %v2581_v15, 4  ;;  %v2643_v31 = vsel %vm1310_vm15, %v2642_v43, %v2617_v6  ;;  %v2653_v36 = vperm.slane %v2645_v44, %v5353_v56 }
 0x94a   : > { %v2593_v41 = vperm.slane %v2587_v40, %v5353_v56  ;;  %v2601_v30 = vsel %vm1310_vm15, 0.0, %v2600_v54  ;;  %v2604_v7 = vrot.slane %v2597_v38, 4  ;;  %v2654_v37 = vrot.slane %v2637_v55, 4 }
 0x94b   : > { %v2656_v49 = vrot.slane %v2641_v35, 4  ;;  %v2599_v50 = vsel %vm1310_vm15, 0.0, %v2598_v45  ;;  %v2649_v57 = vperm.slane %v2643_v31, %v5353_v56  ;;  %v2660_v61 = vrot.slane %v2653_v36, 4 }
 0x94c   : > { %v2602_v51 = vrot.slane %v2593_v41, 4  ;;  %v2605_v52 = vsel %vm1310_vm15, 0.0, %v2604_v7  ;;  %v2655_v58 = vsel %vm1310_vm15, 0.0, %v2654_v37  ;;  %v2662_v0 = vsel %vm1310_vm15, %v2600_v54, %v2581_v15 }
 0x94d   : > { %v2657_v60 = vsel %vm1310_vm15, 0.0, %v2656_v49  ;;  %v2658_v2 = vrot.slane %v2649_v57, 4  ;;  %v2666_v3 = vperm.slane %v2662_v0, %v5340_v42  ;;  %v2667_v4 = vrot.slane %v2601_v30, 4 }
 0x94e   : > { %v2603_v1 = vsel %vm1310_vm15, 0.0, %v2602_v51  ;;  %v2661_v5 = vsel %vm1310_vm15, 0.0, %v2660_v61  ;;  %v2673_v62 = vsel %vm1310_vm15, %v2604_v7, %v2593_v41  ;;  %v2678_v6 = vrot.slane %v2605_v52, 4 }
 0x94f   : > { %v2716_v8 = vsel %vm1310_vm15, %v2656_v49, %v2637_v55  ;;  %v2659_v9 = vsel %vm1310_vm15, 0.0, %v2658_v2  ;;  %v2668_v12 = vsel %vm1310_vm15, %v2667_v4, %v2599_v50  ;;  %v2677_v16 = vperm.slane %v2673_v62, %v5340_v42 }
 0x950   : > { %v2686_v17 = vrot.slane %v2666_v3, 4  ;;  %v2672_v19 = vperm.slane %v2668_v12, %v5340_v42  ;;  %v2720_v20 = vperm.slane %v2716_v8, %v5340_v42  ;;  %v2721_v21 = vrot.slane %v2657_v60, 4 }
 0x951   : > { %v2727_v11 = vsel %vm1310_vm15, %v2660_v61, %v2649_v57  ;;  %v2732_v13 = vrot.slane %v2661_v5, 4  ;;  %v2679_v23 = vsel %vm1310_vm15, %v2678_v6, %v2603_v1  ;;  %v2698_v24 = vrot.slane %v2677_v16, 4 }
 0x952   : > { %v2731_v22 = vperm.slane %v2727_v11, %v5340_v42  ;;  %v2722_v25 = vsel %vm1310_vm15, %v2721_v21, %v2655_v58  ;;  %v2740_v26 = vrot.slane %v2720_v20, 4  ;;  %v2683_v28 = vperm.slane %v2679_v23, %v5340_v42 }
 0x953   : > { %v2687_v29 = vsel %vm1310_vm15, %v2672_v19, %v2686_v17  ;;  %v2726_v18 = vperm.slane %v2722_v25, %v5340_v42  ;;  %v2733_v32 = vsel %vm1310_vm15, %v2732_v13, %v2659_v9  ;;  %v2684_v35 = vrot.slane %v2672_v19, 4 }
 0x954   : > { %v2695_v46 = vperm.slane %v2687_v29, %v5353_v56  ;;  %v2752_v33 = vrot.slane %v2731_v22, 4  ;;  %v2699_v48 = vsel %vm1310_vm15, %v2683_v28, %v2698_v24  ;;  %v2737_v34 = vperm.slane %v2733_v32, %v5340_v42 }
 0x955   : > { %v2696_v15 = vrot.slane %v2683_v28, 4  ;;  %v2707_v38 = vperm.slane %v2699_v48, %v5353_v56  ;;  %v2741_v53 = vsel %vm1310_vm15, %v2726_v18, %v2740_v26  ;;  %v2738_v40 = vrot.slane %v2726_v18, 4 }
 0x956   : > { %v2714_v54 = vrot.slane %v2695_v46, 4  ;;  %v2749_v55 = vperm.slane %v2741_v53, %v5353_v56  ;;  %v2753_v43 = vsel %vm1310_vm15, %v2737_v34, %v2752_v33  ;;  %v2685_v44 = vsel %vm1310_vm15, %v2684_v35, %v2666_v3 }
 0x957   : > { %v2697_v41 = vsel %vm1310_vm15, %v2696_v15, %v2677_v16  ;;  %v2761_v30 = vperm.slane %v2753_v43, %v5353_v56  ;;  %v2712_v7 = vrot.slane %v2707_v38, 4  ;;  %v2691_v31 = vperm.slane %v2685_v44, %v5353_v56 }
 0x958   : > { %v2715_v45 = vsel %vm1310_vm15, %v2707_v38, %v2714_v54  ;;  %v2768_v36 = vrot.slane %v2749_v55, 4  ;;  %v2703_v49 = vperm.slane %v2697_v41, %v5353_v56  ;;  %v2739_v50 = vsel %vm1310_vm15, %v2738_v40, %v2720_v20 }
 0x959   : > { %v2943_v37 = vpack.c.bf16 %v2715_v45, %v2715_v45  ;;  %v2713_v51 = vsel %vm1310_vm15, %v2712_v7, %v2695_v46  ;;  %v2766_v52 = vrot.slane %v2761_v30, 4  ;;  %v2710_v57 = vrot.slane %v2691_v31, 4 }
 0x95a   : > { %v2745_v58 = vperm.slane %v2739_v50, %v5353_v56  ;;  %v2769_v60 = vsel %vm1310_vm15, %v2761_v30, %v2768_v36  ;;  %v2941_v0 = vpack.c.bf16 %v2713_v51, %v2713_v51  ;;  %v2750_v1 = vrot.slane %v2737_v34, 4 }
 0x95b   : > { %v3013_v61 = vunpack.c.l.b16 %v2943_v37  ;;  %v2944_v2 = vpack.c.bf16 %v2769_v60, %v2769_v60  ;;  %v2767_v3 = vsel %vm1310_vm15, %v2766_v52, %v2749_v55  ;;  %v2711_v4 = vsel %vm1310_vm15, %v2703_v49, %v2710_v57 }
 0x95c   : > { %v2764_v5 = vrot.slane %v2745_v58, 4  ;;  %v2942_v62 = vpack.c.bf16 %v2767_v3, %v2767_v3  ;;  %v2991_v6 = vunpack.c.l.b16 %v2941_v0  ;;  %v2751_v8 = vsel %vm1310_vm15, %v2750_v1, %v2731_v22 }
 0x95d   : > { %v2939_v9 = vpack.c.bf16 %v2711_v4, %v2711_v4  ;;  %v3014_v12 = vunpack.c.l.b16 %v2944_v2  ;;  %v2757_v16 = vperm.slane %v2751_v8, %v5353_v56  ;;  %v2708_v17 = vrot.slane %v2703_v49, 4 }
 0x95e   : > { %v2992_v19 = vunpack.c.l.b16 %v2942_v62 }
 0x95f   : > { %v3015_v20 = vpack.c.b16 %v3014_v12, %v3013_v61  ;;  %v2765_v21 = vsel %vm1310_vm15, %v2757_v16, %v2764_v5  ;;  %v2709_v11 = vsel %vm1310_vm15, %v2708_v17, %v2691_v31  ;;  %v2762_v13 = vrot.slane %v2757_v16, 4 }
 0x960   : > { %v2993_v23 = vpack.c.b16 %v2992_v19, %v2991_v6  ;;  %v2940_v24 = vpack.c.bf16 %v2765_v21, %v2765_v21  ;;  %v2969_v25 = vunpack.c.l.b16 %v2939_v9  ;;  %v2937_v26 = vpack.c.bf16 %v2709_v11, %v2709_v11 }
 0x961   : > { %3027 = vmatpush.bf16.msrb.mxu0 %v3015_v20  ;;  %v2763_v28 = vsel %vm1310_vm15, %v2762_v13, %v2745_v58 }
 0x962   : > { %3005 = vmatpush.bf16.msra.mxu3 %v2993_v23  ;;  %v2970_v22 = vunpack.c.l.b16 %v2940_v24  ;;  %v2938_v29 = vpack.c.bf16 %v2763_v28, %v2763_v28  ;;  %v2947_v18 = vunpack.c.l.b16 %v2937_v26 }
 0x964   : > { %v2971_v46 = vpack.c.b16 %v2970_v22, %v2969_v25  ;;  %v2948_v32 = vunpack.c.l.b16 %v2938_v29 }
 0x966   : > { %2983 = vmatpush.bf16.msra.mxu2 %v2971_v46  ;;  %v2949_v33 = vpack.c.b16 %v2948_v32, %v2947_v18 }
 0x968   : > { %2961 = vmatpush.bf16.msra.mxu1 %v2949_v33 }
 0x9a3   : > { %v2915_v48 = vpop.xlane.xlu1 %2914 }
 0x9a4   : > { %4148 = vrcp.f32 %v2915_v48 }
 0x9aa   : > { %v4149_v34 = vpop.eup %4148 }
 0x9ab   : > { %v2921_v35 = vpop.xlane.xlu0 %2920  ;;  %v2929_v15 = vmul.f32 %v4149_v34, %v5756_v63 }
 0x9ac   : > { %4150 = vrcp.f32 %v2921_v35  ;;  %v2918_v38 = vpop.xlane.xlu2 %2917 }
 0x9ad   : > { %4152 = vrcp.f32 %v2918_v38  ;;  %v2933_v54 = vpack.c.bf16 %v2929_v15, %v2929_v15 }
 0x9af   : > { %3746 = vmatmul.msk.bf16.vlgmr.msra.gmra.mxu1 %vm2007_vm4, %v2933_v54 }
 0x9b2   : > { %v4151_v53 = vpop.eup %4150 }
 0x9b3   : > { %v4153_v40 = vpop.eup %4152  ;;  %v2931_v55 = vmul.f32 %v4151_v53, %v5760_v14  ;;  %v2924_v43 = vpop.xlane.xlu0 %2923 }
 0x9b4   : > { %v2930_v44 = vmul.f32 %v4153_v40, %v5762_v39  ;;  %4154 = vrcp.f32 %v2924_v43 }
 0x9b5   : > { %v2935_v41 = vpack.c.bf16 %v2931_v55, %v2931_v55 }
 0x9b6   : > { %v2934_v45 = vpack.c.bf16 %v2930_v44, %v2930_v44 }
 0x9b7   : > { %3748 = vmatmul.msk.bf16.vlgmr.msra.gmra.mxu3 %vm2007_vm4, %v2935_v41 }
 0x9b8   : > { %3747 = vmatmul.msk.bf16.vlgmr.msra.gmra.mxu2 %vm2007_vm4, %v2934_v45 }
 0x9ba   : > { %v4155_v63 = vpop.eup %4154 }
 0x9bb   : > { %v2932_v30 = vmul.f32 %v4155_v63, %v5768_v47 }
 0x9bd   : > { %v2936_v7 = vpack.c.bf16 %v2932_v30, %v2932_v30 }
 0x9bf   : > { %3749 = vmatmul.msk.bf16.vlgmr.msrb.gmra.mxu0 %vm2007_vm4, %v2936_v7 }
 0xa2c   : > { %v2963_v31 = vpop.f32.mrf.mxu1 }
 0xa2d   : > { %v3035_v37 = vrot.slane %v2963_v31, 4 }
 0xa34   : > { %v2965_v36 = vpop.f32.mrf.mxu1 }
 0xa3a   : > { %v3007_v14 = vpop.f32.mrf.mxu3 }
 0xa3b   : > { %v2985_v49 = vpop.f32.mrf.mxu2  ;;  %v3033_v50 = vrot.slane %v3007_v14, 4  ;;  %v3036_v39 = vsel %vm1310_vm15, %v3007_v14, %v3035_v37 }
 0xa3c   : > { %v3047_v51 = vrot.slane %v2985_v49, 4  ;;  %v3044_v52 = vperm.slane %v3036_v39, %v5340_v42  ;;  %v3029_v57 = vpop.f32.mrf.mxu0 }
 0xa3d   : > { %v3034_v58 = vsel %vm1310_vm15, %v3033_v50, %v2963_v31  ;;  %v3045_v60 = vrot.slane %v3029_v57, 4 }
 0xa3e   : > { %v3040_v47 = vperm.slane %v3034_v58, %v5340_v42  ;;  %v3071_v61 = vrot.slane %v3044_v52, 4  ;;  %v3048_v0 = vsel %vm1310_vm15, %v3029_v57, %v3047_v51  ;;  %v3801_v58 = vld [vmem:[#allocation23 + $0x8] sm:$0xff] }
 0xa3f   : > { %v3046_v1 = vsel %vm1310_vm15, %v3045_v60, %v2985_v49  ;;  %v3056_v2 = vperm.slane %v3048_v0, %v5340_v42  ;;  %3183 = vmatpush.bf16.msrb.mxu1 %v3801_v58  ;;  %v3800_v60 = vld [vmem:[#allocation23] sm:$0xff] }
 0xa40   : > { %v3059_v3 = vrot.slane %v3040_v47, 4  ;;  %v3052_v4 = vperm.slane %v3046_v1, %v5340_v42 }
 0xa41   : > { %v3069_v5 = vrot.slane %v3056_v2, 4  ;;  %v3072_v62 = vsel %vm1310_vm15, %v3056_v2, %v3071_v61 }
 0xa42   : > { %v3057_v6 = vrot.slane %v3052_v4, 4  ;;  %v3060_v8 = vsel %vm1310_vm15, %v3052_v4, %v3059_v3  ;;  %v3080_v9 = vperm.slane %v3072_v62, %v5353_v56  ;;  %v3009_v12 = vpop.f32.mrf.mxu3  ;;  %v4105_v4 = vld [vmem:[#allocation25] ss:$0 sm:$0xff] }
 0xa43   : > { %v3068_v16 = vperm.slane %v3060_v8, %v5353_v56  ;;  %v3070_v17 = vsel %vm1310_vm15, %v3069_v5, %v3044_v52  ;;  %v2987_v19 = vpop.f32.mrf.mxu2  ;;  %3184 = vmatpush.bf16.msrb.mxu1 %v3800_v60 }
 0xa44   : > { %v3058_v20 = vsel %vm1310_vm15, %v3057_v6, %v3040_v47  ;;  %v3076_v21 = vperm.slane %v3070_v17, %v5353_v56  ;;  %v3087_v11 = vrot.slane %v3080_v9, 4  ;;  %v3031_v13 = vpop.f32.mrf.mxu0 }
 0xa45   : > { %v3064_v23 = vperm.slane %v3058_v20, %v5353_v56  ;;  %v3083_v24 = vrot.slane %v3068_v16, 4 }
 0xa46   : > { %v3085_v25 = vrot.slane %v3076_v21, 4  ;;  %v3088_v26 = vsel %vm1310_vm15, 0.0, %v3087_v11  ;;  %v3100_v28 = vsel %vm1310_vm15, %v3087_v11, %v3076_v21  ;;  %v3803_v21 = vld [vmem:[#allocation26 + $0x8] sm:$0xff]  ;;  %v3802_v11 = vld [vmem:[#allocation26] sm:$0xff] }
 0xa47   : > { %v3081_v22 = vrot.slane %v3064_v23, 4  ;;  %v3084_v29 = vsel %vm1310_vm15, 0.0, %v3083_v24  ;;  %v3104_v18 = vperm.slane %v3100_v28, %v5340_v42  ;;  %v3105_v46 = vrot.slane %v3088_v26, 4  ;;  %3263 = vmatpush.bf16.msrb.mxu2 %v3803_v21 }
 0xa48   : > { %v3086_v32 = vsel %vm1310_vm15, 0.0, %v3085_v25  ;;  %v3094_v33 = vrot.slane %v3084_v29, 4  ;;  %v3089_v48 = vsel %vm1310_vm15, %v3083_v24, %v3064_v23  ;;  %v3806_v29 = vld [vmem:[%s6064_s13 + $0x10] sm:$0xff] }
 0xa49   : > { %v3082_v34 = vsel %vm1310_vm15, 0.0, %v3081_v22  ;;  %v3093_v35 = vperm.slane %v3089_v48, %v5340_v42  ;;  %v3106_v15 = vsel %vm1310_vm15, %v3105_v46, %v3086_v32  ;;  %v3125_v38 = vrot.slane %v3104_v18, 4 }
 0xa4a   : > { %v3095_v54 = vsel %vm1310_vm15, %v3094_v33, %v3082_v34  ;;  %v3110_v53 = vperm.slane %v3106_v15, %v5340_v42 }
 0xa4b   : > { %v3099_v40 = vperm.slane %v3095_v54, %v5340_v42  ;;  %v3113_v55 = vrot.slane %v3093_v35, 4  ;;  %3264 = vmatpush.bf16.msrb.mxu2 %v3802_v11 }
 0xa4c   : > { %v3126_v43 = vsel %vm1310_vm15, %v3110_v53, %v3125_v38  ;;  %v3123_v44 = vrot.slane %v3110_v53, 4  ;;  %v4163_v38 = vld [vmem:[%s6062_s3] sm:$0x7] }
 0xa4d   : > { %v3114_v41 = vsel %vm1310_vm15, %v3099_v40, %v3113_v55  ;;  %v3134_v45 = vperm.slane %v3126_v43, %v5353_v56  ;;  %v3111_v63 = vrot.slane %v3099_v40, 4  ;;  %v3213_v54 = vperm.slane %v4163_v38, 2 }
 0xa4e   : > { %v3122_v30 = vperm.slane %v3114_v41, %v5353_v56  ;;  %v3124_v7 = vsel %vm1310_vm15, %v3123_v44, %v3104_v18  ;;  %v4164_v44 = vld [vmem:[#allocation31] sm:$0x7] }
 0xa4f   : > { %v3139_v31 = vrot.slane %v3134_v45, 4  ;;  %v3112_v36 = vsel %vm1310_vm15, %v3111_v63, %v3093_v35  ;;  %v3130_v37 = vperm.slane %v3124_v7, %v5353_v56  ;;  %v3231_v41 = vperm.slane %v4164_v44, 2 }
 0xa50   : > { %v3141_v14 = vrot.slane %v3122_v30, 4  ;;  %v3118_v42 = vperm.slane %v3112_v36, %v5353_v56 }
 0xa51   : > { %v3140_v49 = vsel %vm1310_vm15, %v3139_v31, %v3122_v30  ;;  %v3135_v50 = vrot.slane %v3130_v37, 4 }
 0xa52   : > { %3148 = vrot.lane.b32.xlu0 %v3140_v49, %s4882_s0  ;;  %v3142_v39 = vsel %vm1310_vm15, %v3134_v45, %v3141_v14  ;;  %v3137_v51 = vrot.slane %v3118_v42, 4  ;;  %v3804_v14 = vld [vmem:[%s6064_s13] sm:$0xff] }
 0xa53   : > { %3152 = vrot.lane.b32.xlu1 %v3142_v39, %s4884_s10  ;;  %v3136_v52 = vsel %vm1310_vm15, %v3135_v50, %v3118_v42  ;;  %v4106_v42 = vld [vmem:[#allocation28] ss:$0 sm:$0xff]  ;;  %s3786_s10 = sshll.u32 %s6060_s27, 3 }
 0xa54   : > { %v3138_v57 = vsel %vm1310_vm15, %v3130_v37, %v3137_v51  ;;  %v3805_v37 = vld [vmem:[%s6064_s13 + $0x8] sm:$0xff]  ;;  %s3339_s22 = scalar_lea.hbm %s6065_s16, %s3786_s10 }
 0xa55   : > { %3144 = vrot.lane.b32.xlu2 %v3138_v57, %s4883_s20  ;;  %v4107_v57 = vld [vmem:[#allocation29] ss:$0 sm:$0xff]  ;;  %s3343_s21 = sshll.u32 %s3339_s22, 4  ;;  %s3344_s21 = int_to_ptr.hbm [resolvable:$true] %s3343_s21 }
 0xa56   : > { %s4749_s9 = sshra.s32 %s3344_s21, 4  ;;  %s4750_s9 = int_to_ptr.hbm [resolvable:$true] %s4749_s9 }
 0xa57   : > { %s4751_s27 = scalar_lea.hbm %s4750_s9, 8  ;;  %p4756_p8 = scmp.lt.s32.totalorder %s4750_s9, %s6065_s16 }
 0xa58   : > { %p4752_p1 = scmp.ne.s32.totalorder %s4750_s9, %s4751_s27  ;;  %p4757_p10 = scmp.lt.s32.totalorder %s4755_s7, %s4751_s27 }
 0xa5a   : > { %p4753_p5 = pnand %p4752_p1, %p5138_p2  ;;  %p4758_p11 = por %p4757_p10, %p4756_p8 }
 0xa5c   : > { %p4754_p6 = pneg %p4753_p5 }
 0xa5e   : > { %p4759_p12 = pnand %p4758_p11, %p4754_p6 }
 0xaaf   : > { %v3145_v56 = vpop.permute.xlu2 %3144 }
 0xab0   : > { %v3155_v47 = vsel %vm1670_vm1, %v3136_v52, %v3145_v56 }
 0xac4   : > { %v3149_v61 = vpop.permute.xlu0 %3148 }
 0xac5   : > { %v3156_v0 = vsel %vm2007_vm4, %v3155_v47, %v3149_v61  ;;  %v3153_v1 = vpop.permute.xlu1 %3152  ;;  %vm3308_vm4 = vcmask 523264  }
 0xac6   : > { %v3157_v2 = vsel %vm2009_vm5, %v3156_v0, %v3153_v1 }
 0xac7   : > { %v3158_v3 = vpack.c.bf16 %v3157_v2, %v3157_v2 }
 0xac9   : > { %3758 = vmatmul.msk.bf16.vlgmr.msrb.gmra.mxu1 %vm1123_vm0, %v3158_v3 }
 0xb46   : > { %v3186_v5 = vpop.f32.mrf.mxu1 }
 0xb47   : > { %v3187_v62 = vadd.f32 %v4105_v4, %v3186_v5 }
 0xb49   : > { %v5908_v6 = vadd.f32 %v3187_v62, %v5569_v59 }
 0xb4b   : > { %v3191_v8 = vsel %vm1123_vm0, %v5908_v6, 0.0 }
 0xb4c   : > { %3192 = vadd.xlane.f32.xlu0 %v3191_v8 }
 0xb4e   : > { %v3188_v9 = vpop.f32.mrf.mxu1 }
 0xbbf   : > { %v3193_v12 = vpop.xlane.xlu0 %3192 }
 0xbc0   : > { %v3194_v16 = vmul.f32 %v3193_v12, %v5298_v10  ;;  %v3807_v10 = vld [vmem:[%s6064_s13 + $0x18] sm:$0xff] }
 0xbc1   : > { %3316 = vmatpush.bf16.msrb.mxu3 %v3807_v10 }
 0xbc2   : > { %v3195_v17 = vsub.f32 %v5908_v6, %v3194_v16 }
 0xbc4   : > { %v3196_v19 = vmul.f32 %v3195_v17, %v3195_v17  ;;  %v3214_v45 = vmul.f32 %v3213_v54, %v3195_v17 }
 0xbc5   : > { %3317 = vmatpush.bf16.msrb.mxu3 %v3806_v29 }
 0xbc6   : > { %v3197_v20 = vsel %vm1123_vm0, %v3196_v19, 0.0 }
 0xbc7   : > { %3198 = vadd.xlane.f32.xlu2 %v3197_v20 }
 0xbc9   : > { %3318 = vmatpush.bf16.msrb.mxu3 %v3805_v37 }
 0xbcd   : > { %3319 = vmatpush.bf16.msrb.mxu3 %v3804_v14 }
 0xc3a   : > { %v3199_v13 = vpop.xlane.xlu2 %3198 }
 0xc3b   : > { %v3200_v59 = vmul.f32 %v3199_v13, %v5312_v27 }
 0xc3d   : > { %4156 = vrsqrt.f32 %v3200_v59  ;;  %vm3208_vm13 = vcmp.eq.f32.partialorder %v3200_v59, inf  ;;  %v3211_v46 = vand.u32 2147483648, %v3200_v59  ;;  %vm3210_vm14 = vcmp.eq.f32.partialorder %v3200_v59, 0.0 }
 0xc43   : > { %v4157_v23 = vpop.eup %4156 }
 0xc44   : > { %v3202_v24 = vmul.f32 %v4157_v23, %v3200_v59 }
 0xc46   : > { %v3203_v25 = vmul.f32 %v4157_v23, %v3202_v24 }
 0xc48   : > { %v3204_v26 = vmul.f32 0.5, %v3203_v25 }
 0xc4a   : > { %v3205_v28 = vsub.f32 1.5, %v3204_v26 }
 0xc4c   : > { %v3206_v22 = vmul.f32 %v4157_v23, %v3205_v28 }
 0xc4e   : > { %v3207_v18 = vmul.f32 %v3206_v22, %v3200_v59 }
 0xc50   : > { %v3209_v27 = vsel %vm3208_vm13, %v3200_v59, %v3207_v18 }
 0xc51   : > { %v3212_v32 = vsel %vm3210_vm14, %v3211_v46, %v3209_v27 }
 0xc52   : > { %v3215_v33 = vadd.f32 1e-06, %v3212_v32 }
 0xc54   : > { %4158 = vrcp.f32 %v3215_v33  ;;  %v3227_v15 = vand.u32 2147483648, %v3215_v33  ;;  %v3225_v40 = vand.u32 2147483647, %v3215_v33  ;;  %vm3221_vm1 = vweird.f32 %v3215_v33 }
 0xc56   : > { %v3228_v43 = vor.u32 1.1754944e-38, %v3227_v15  ;;  %vm3226_vm3 = vcmp.eq.f32.partialorder %v3225_v40, 8.507059e+37 }
 0xc5a   : > { %v4159_v48 = vpop.eup %4158 }
 0xc5b   : > { %v3217_v34 = vmul.f32 %v4159_v48, %v3215_v33  ;;  %vm3222_vm15 = vweird.f32 %v4159_v48 }
 0xc5c   : > { %vm3223_vm2 = vmor %vm3221_vm1, %vm3222_vm15 }
 0xc5d   : > { %v3218_v35 = vsub.f32 1.0, %v3217_v34 }
 0xc5f   : > { %v3219_v53 = vmul.f32 %v4159_v48, %v3218_v35 }
 0xc61   : > { %v3220_v55 = vadd.f32 %v4159_v48, %v3219_v53 }
 0xc63   : > { %v3224_v63 = vsel %vm3223_vm2, %v4159_v48, %v3220_v55 }
 0xc64   : > { %v3229_v30 = vsel %vm3226_vm3, %v3228_v43, %v3224_v63 }
 0xc65   : > { %v3230_v7 = vmul.f32 %v3229_v30, %v3214_v45 }
 0xc67   : > { %v3232_v31 = vadd.f32 %v3231_v41, %v3230_v7 }
 0xc69   : > { %v3233_v36 = vpack.c.bf16 %v3232_v31, %v3232_v31 }
 0xc6b   : > { %3767 = vmatmul.msk.bf16.vlgmr.msrb.gmra.mxu2 %vm1123_vm0, %v3233_v36 }
 0xcee   : > { %v3266_v49 = vpop.f32.mrf.mxu2 }
 0xcef   : > { %v3267_v50 = vadd.f32 %v4106_v42, %v3266_v49 }
 0xcf1   : > { %v3270_v39 = vmax.f32 %v3267_v50, 0.0 }
 0xcf3   : > { %v3271_v51 = vpack.c.bf16 %v3270_v39, %v3270_v39 }
 0xcf5   : > { %3784 = vmatmul.msk.bf16.vlgmr.msrb.gmra.mxu3 %vm3308_vm4, %v3271_v51 }
 0xcf6   : > { %v3268_v52 = vpop.f32.mrf.mxu2 }
 0xd78   : > { %v3321_v58 = vpop.f32.mrf.mxu3 }
 0xd79   : > { %v3322_v60 = vadd.f32 %v4107_v57, %v3321_v58 }
 0xd7b   : > { %v3325_v56 = vadd.f32 %v3322_v60, %v5908_v6 }
 0xd7d   : > { %3326 = vst.msk [vmem:[%s1097_s17] sm:$0xff] %vm1123_vm0, %v3325_v56 }
 0xd7e   : > { %4762 = shalt.err (!%p4759_p12)
}
 0xd7f   : > { %3878 = dma.vmem_to_hbm [thread:$0]  (%p5138_p2), %s3342_s6, 128, %s3344_s21, %s3328_s18  }
 0xd80   : > { %v3323_v47 = vpop.f32.mrf.mxu3 }
 0xd81 PF: > { %s3355_s11 = sand.u32 1, %s4833_s4   ;;  %p6066_p13 = scmp.ge.s32.totalorder %s4853_s1, 2 }
 0xd82   : > { %s3356_s15 = scalar_lea.sflag [#allocation4], %s3355_s11 }
 0xd83   : > { %p3940_p0 = pnand %p6066_p13, %p5145_p7 }
 0xd85   : > { %p3941_p4 = pneg %p3940_p0 }
 0xd87   : > { %4828 = dma.done.wait (%p3941_p4), %s3356_s15, 128  }
 0xd88   : > { %4830 = vsyncadd (%p3941_p4), %s3356_s15, 4294967168  ;;  %s50_s1 = sadd.s32 1, %s4853_s1   ;;  %s6067_s28 = sld [smem:[#allocation47_spill]] }
 0xd89   : > { %p47_p9 = scmp.ge.s32.totalorder %s50_s1, 4   ;;  %s6068_s8 = sld [smem:[#allocation46_spill]] }
 0xd8a   : > { %s6069_s4 = smov %s4837_s30  ;;  %s6070_s30 = smov %s4841_s24 }
 0xd8b   : > { %s6072_s25 = smov %s4849_s5  ;;  %49 = sbr.rel (!%p47_p9) target bundleno = 40 (0x28), region = 251 }
 0xd8e   : > { %s6071_s24 = smov %s6067_s28 }
 0xd8f   : > { %s6073_s5 = smov %s6068_s8 }
 0xd90   :  { %3362 = vsyncpa [#allocation3], 1 }
 0xd91   :  { %3364 = vsyncpa [#allocation3 + $0x1], 1 }
 0xd92   :  { %3365 = vsyncpa [#allocation6], 1 }
 0xd93   :  { %3367 = vsyncpa [#allocation6 + $0x1], 1 }
 0xd94   :  { %3368 = vsyncpa [#allocation9], 1 }
 0xd95   :  { %3369 = vsyncpa [#allocation12], 1 }
 0xd96   :  { %3370 = vsyncpa [#allocation15], 1 }
 0xd97   :  { %3371 = vsyncpa [#allocation18], 1 }
 0xd98   :  { %3372 = vsyncpa [#allocation21], 1 }
 0xd99   :  { %3373 = vsyncpa [#allocation24], 1 }
 0xd9a   :  { %3374 = vsyncpa [#allocation27], 1 }
 0xd9b   :  { %3375 = vsyncpa [#allocation30], 1 }
 0xd9c   :  { %3376 = vsyncpa [#allocation4], 1 }
 0xd9d   :  { %3378 = vsyncpa [#allocation4 + $0x1], 1 }

</bundles_post_ra>
